<compile_context>
chip_gen: v7x
topology: tpu7x:2x2x1
jax: 0.10.0
libtpu: 0.0.40
codegen_flags: <defaults>
</compile_context>

<pallas_src>
import jax
import jax.numpy as jnp
import numpy as np
from jax.experimental import pallas as pl
from jax.experimental.pallas import tpu as pltpu


def _eucb_kernel(x_ref, taps_ref, shift_ref, pww_ref, pwb_ref, o_ref):
    # x_ref    : (C, H+2, W+2)   VMEM  zero-padded original-resolution input, one batch
    # taps_ref : (2*2*2*2*C,)    SMEM  BN-scaled collapsed polyphase depthwise taps,
    #                                  flat index (((r*2+s)*2+a)*2+b)*C + c
    # shift_ref: (C,)            SMEM  folded BN shift  (beta - mean * gamma/sqrt(var+eps))
    # pww_ref  : (C_out*C,)      SMEM  1x1 conv weight, flat index co*C + c
    # pwb_ref  : (C_out,)        SMEM  1x1 conv bias
    # o_ref    : (4*C_out, H, W) VMEM  phase-major output: row (r*2+s)*C_out + co holds
    #                                  the (H, W) plane of out[co, 2p+r, 2q+s]
    C, Hp, Wp = x_ref.shape
    H, W = Hp - 2, Wp - 2
    C_out = pwb_ref.shape[0]

    for r in range(2):
        for s in range(2):
            ph = 2 * r + s

            # --- depthwise: polyphase-collapsed 2x2 taps + folded BN + ReLU ---
            y = []
            for c in range(C):
                acc = None
                for a in range(2):
                    for b in range(2):
                        t = taps_ref[((ph * 2 + a) * 2 + b) * C + c]       # SMEM scalar
                        win = x_ref[c, pl.ds(r + a, H), pl.ds(s + b, W)]   # ref-side slice
                        term = t * win
                        acc = term if acc is None else acc + term
                y.append(jnp.maximum(acc + shift_ref[c], 0.0))

            # channel_shuffle(groups == C): channels_per_group == 1 -> identity permutation.

            # --- pointwise 1x1 conv: C_out*C broadcast FMAs on the VPU (too small for MXU) ---
            for co in range(C_out):
                out = pwb_ref[co] + pww_ref[co * C] * y[0]
                for c in range(1, C):
                    out = out + pww_ref[co * C + c] * y[c]
                o_ref[ph * C_out + co] = out.astype(o_ref.dtype)


def eucb_forward(x_nchw, params):
    """EUCB forward. x_nchw: (B, C, H, W) float32 -> (B, C_out, 2H, 2W) float32."""
    wdw, bn_gamma, bn_beta, bn_mean, bn_var, wpw, bpw = params
    B, C, H, W = x_nchw.shape
    C_out = wpw.shape[0]
    H2, W2 = 2 * H, 2 * W
    Hp, Wp = H + 2, W + 2
    eps = 1e-5

    # 1-pixel zero halo at ORIGINAL resolution; the 2x upsample is fused in the kernel,
    # so no 4x upsampled activation is ever materialized in HBM.
    xpad = jnp.pad(x_nchw.astype(jnp.float32), ((0, 0), (0, 0), (1, 1), (1, 1)))

    # ---- tiny parameter folding (pure JAX, runs once) ----
    inv_std = (bn_gamma / jnp.sqrt(bn_var + eps)).astype(jnp.float32)        # (C,)
    shift = (bn_beta - bn_mean * inv_std).astype(jnp.float32)                # (C,)

    # Polyphase collapse of (nearest-2x upsample -> 3x3 conv, pad=1):
    #   out[c, 2p+r, 2q+s] = sum_{a,b in {0,1}} T[r,s,a,b,c] * xpad[c, p+r+a, q+s+b]
    # R[r, a, ki] maps the 3 kernel rows onto the 2 original-resolution rows per phase.
    R = jnp.array([[[1., 0., 0.], [0., 1., 1.]],
                   [[1., 1., 0.], [0., 0., 1.]]], dtype=jnp.float32)         # (r, a, ki)
    taps = jnp.einsum('rai,sbj,cij->rsabc', R, R, wdw.astype(jnp.float32))   # (2,2,2,2,C)
    taps = taps * inv_std[None, None, None, None, :]                         # fold BN scale
    taps_flat = taps.reshape(-1)                                             # (16*C,)

    pww_flat = wpw.astype(jnp.float32).reshape(-1)                           # (C_out*C,)
    pwb = bpw.astype(jnp.float32)                                            # (C_out,)

    smem = pl.BlockSpec(memory_space=pltpu.SMEM)
    grid_spec = pltpu.PrefetchScalarGridSpec(
        num_scalar_prefetch=0,
        grid=(B,),                       # one batch per grid step; "parallel" lets v7x's
        in_specs=[                       # two TensorCores each take a batch.
            pl.BlockSpec((None, C, Hp, Wp), lambda b: (b, 0, 0, 0)),
            smem, smem, smem, smem,
        ],
        out_specs=pl.BlockSpec((None, 4 * C_out, H, W), lambda b: (b, 0, 0, 0)),
    )
    # TODO(synk): for production-sized H/W, add an H-tile grid axis with halo-overlapping
    # row blocks (DMA/compute overlap, and keeps double-buffered tiles under v7x's 64 MiB
    # VMEM); at the test shapes a whole image fits trivially.

    out = pl.pallas_call(
        _eucb_kernel,
        out_shape=jax.ShapeDtypeStruct((B, 4 * C_out, H, W), jnp.float32),
        grid_spec=grid_spec,
        compiler_params=pltpu.CompilerParams(dimension_semantics=("parallel",)),
    )(xpad, taps_flat, shift, pww_flat, pwb)

    # Phase-major (b, r, s, co, p, q) -> NCHW (b, co, 2p+r, 2q+s).
    # One small transpose of the final output only (the previous version round-tripped
    # the 4x-upsampled activation through two full NHWC<->NCHW transposes).
    out = out.reshape(B, 2, 2, C_out, H, W)
    out = jnp.transpose(out, (0, 3, 4, 1, 5, 2)).reshape(B, C_out, H2, W2)
    return out


def eucb_reference(x_nchw, params):
    """Pure-JAX reference (no Pallas) used only to verify the kernel."""
    wdw, bn_gamma, bn_beta, bn_mean, bn_var, wpw, bpw = params
    B, C, H, W = x_nchw.shape
    eps = 1e-5
    xu = jnp.repeat(jnp.repeat(x_nchw, 2, axis=2), 2, axis=3)
    y = jax.lax.conv_general_dilated(
        xu, wdw.reshape(C, 1, 3, 3),
        window_strides=(1, 1), padding="SAME",
        dimension_numbers=("NCHW", "OIHW", "NCHW"),
        feature_group_count=C)
    inv_std = bn_gamma / jnp.sqrt(bn_var + eps)
    y = y * inv_std[None, :, None, None] + (bn_beta - bn_mean * inv_std)[None, :, None, None]
    y = jnp.maximum(y, 0.0)
    # channel_shuffle(groups=C): channels_per_group == 1 -> identity
    return jnp.einsum("oc,bchw->bohw", wpw, y) + bpw[None, :, None, None]


if __name__ == "__main__":
    B, C_in, C_out, H, W = 2, 4, 8, 16, 16

    key = jax.random.PRNGKey(0)
    kx, k1, k2, k3, k4, k5, k6, k7 = jax.random.split(key, 8)

    x = jax.random.normal(kx, (B, C_in, H, W), dtype=jnp.float32)

    # Deterministic parameter init (shapes follow the PyTorch module __init__).
    wdw = 0.2 * jax.random.normal(k1, (C_in, 3, 3), dtype=jnp.float32)          # depthwise conv
    bn_gamma = 1.0 + 0.1 * jax.random.normal(k2, (C_in,), dtype=jnp.float32)
    bn_beta = 0.1 * jax.random.normal(k3, (C_in,), dtype=jnp.float32)
    bn_mean = 0.1 * jax.random.normal(k4, (C_in,), dtype=jnp.float32)           # running_mean
    bn_var = 0.5 + jnp.abs(jax.random.normal(k5, (C_in,), dtype=jnp.float32))   # running_var
    wpw = 0.3 * jax.random.normal(k6, (C_out, C_in), dtype=jnp.float32)         # 1x1 conv weight
    bpw = 0.1 * jax.random.normal(k7, (C_out,), dtype=jnp.float32)              # 1x1 conv bias

    params = (wdw, bn_gamma, bn_beta, bn_mean, bn_var, wpw, bpw)

    out = jax.block_until_ready(jax.jit(eucb_forward)(x, params))
    ref = jax.block_until_ready(eucb_reference(x, params))

    assert out.shape == (B, C_out, 2 * H, 2 * W), out.shape
    np.testing.assert_allclose(np.asarray(out), np.asarray(ref), rtol=1e-4, atol=1e-4)

    print("KERNEL_OK")
</pallas_src>

<mosaic_0001>
module attributes {stable_mosaic.version = 11 : i64} {
  func.func @_eucb_kernel(%arg0: i32, %arg1: memref<1x4x18x18xf32, #tpu.memory_space<vmem>>, %arg2: memref<64xf32, #tpu.memory_space<smem>>, %arg3: memref<4xf32, #tpu.memory_space<smem>>, %arg4: memref<32xf32, #tpu.memory_space<smem>>, %arg5: memref<8xf32, #tpu.memory_space<smem>>, %arg6: memref<1x32x16x16xf32, #tpu.memory_space<vmem>>) attributes {dimension_semantics = [#tpu.dimension_semantics<parallel>], iteration_bounds = array<i64: 2>, scalar_prefetch = 0 : i64, scratch_operands = 0 : i64, tpu.core_type = #tpu.core_type<tc>, window_params = [{transform_indices = @transform_0, window_bounds = array<i64: 1, 4, 18, 18>}, {transform_indices = @transform_1, window_bounds = array<i64: 64>}, {transform_indices = @transform_2, window_bounds = array<i64: 4>}, {transform_indices = @transform_3, window_bounds = array<i64: 32>}, {transform_indices = @transform_4, window_bounds = array<i64: 8>}, {transform_indices = @transform_5, window_bounds = array<i64: 1, 32, 16, 16>}]} {
    %c0 = arith.constant 0 : index
    %0 = memref.load %arg2[%c0] : memref<64xf32, #tpu.memory_space<smem>>
    %c0_0 = arith.constant 0 : index
    %c0_1 = arith.constant 0 : index
    %c0_2 = arith.constant 0 : index
    %c0_3 = arith.constant 0 : index
    %1 = vector.load %arg1[%c0_0, %c0_1, %c0_2, %c0_3] : memref<1x4x18x18xf32, #tpu.memory_space<vmem>>, vector<1x1x16x16xf32>
    %2 = vector.shape_cast %1 : vector<1x1x16x16xf32> to vector<16x16xf32>
    %3 = vector.broadcast %0 : f32 to vector<16x16xf32>
    %4 = arith.mulf %3, %2 : vector<16x16xf32>
    %c4 = arith.constant 4 : index
    %5 = memref.load %arg2[%c4] : memref<64xf32, #tpu.memory_space<smem>>
    %c0_4 = arith.constant 0 : index
    %c0_5 = arith.constant 0 : index
    %c0_6 = arith.constant 0 : index
    %c1 = arith.constant 1 : index
    %6 = vector.load %arg1[%c0_4, %c0_5, %c0_6, %c1] : memref<1x4x18x18xf32, #tpu.memory_space<vmem>>, vector<1x1x16x16xf32>
    %7 = vector.shape_cast %6 : vector<1x1x16x16xf32> to vector<16x16xf32>
    %8 = vector.broadcast %5 : f32 to vector<16x16xf32>
    %9 = arith.mulf %8, %7 : vector<16x16xf32>
    %10 = arith.addf %4, %9 : vector<16x16xf32>
    %c8 = arith.constant 8 : index
    %11 = memref.load %arg2[%c8] : memref<64xf32, #tpu.memory_space<smem>>
    %c0_7 = arith.constant 0 : index
    %c0_8 = arith.constant 0 : index
    %c1_9 = arith.constant 1 : index
    %c0_10 = arith.constant 0 : index
    %12 = vector.load %arg1[%c0_7, %c0_8, %c1_9, %c0_10] : memref<1x4x18x18xf32, #tpu.memory_space<vmem>>, vector<1x1x16x16xf32>
    %13 = vector.shape_cast %12 : vector<1x1x16x16xf32> to vector<16x16xf32>
    %14 = vector.broadcast %11 : f32 to vector<16x16xf32>
    %15 = arith.mulf %14, %13 : vector<16x16xf32>
    %16 = arith.addf %10, %15 : vector<16x16xf32>
    %c12 = arith.constant 12 : index
    %17 = memref.load %arg2[%c12] : memref<64xf32, #tpu.memory_space<smem>>
    %c0_11 = arith.constant 0 : index
    %c0_12 = arith.constant 0 : index
    %c1_13 = arith.constant 1 : index
    %c1_14 = arith.constant 1 : index
    %18 = vector.load %arg1[%c0_11, %c0_12, %c1_13, %c1_14] : memref<1x4x18x18xf32, #tpu.memory_space<vmem>>, vector<1x1x16x16xf32>
    %19 = vector.shape_cast %18 : vector<1x1x16x16xf32> to vector<16x16xf32>
    %20 = vector.broadcast %17 : f32 to vector<16x16xf32>
    %21 = arith.mulf %20, %19 : vector<16x16xf32>
    %22 = arith.addf %16, %21 : vector<16x16xf32>
    %c0_15 = arith.constant 0 : index
    %23 = memref.load %arg3[%c0_15] : memref<4xf32, #tpu.memory_space<smem>>
    %24 = vector.broadcast %23 : f32 to vector<16x16xf32>
    %25 = arith.addf %22, %24 : vector<16x16xf32>
    %cst = arith.constant 0.000000e+00 : f32
    %26 = vector.broadcast %cst : f32 to vector<16x16xf32>
    %27 = arith.maximumf %25, %26 : vector<16x16xf32>
    %c1_16 = arith.constant 1 : index
    %28 = memref.load %arg2[%c1_16] : memref<64xf32, #tpu.memory_space<smem>>
    %c0_17 = arith.constant 0 : index
    %c1_18 = arith.constant 1 : index
    %c0_19 = arith.constant 0 : index
    %c0_20 = arith.constant 0 : index
    %29 = vector.load %arg1[%c0_17, %c1_18, %c0_19, %c0_20] : memref<1x4x18x18xf32, #tpu.memory_space<vmem>>, vector<1x1x16x16xf32>
    %30 = vector.shape_cast %29 : vector<1x1x16x16xf32> to vector<16x16xf32>
    %31 = vector.broadcast %28 : f32 to vector<16x16xf32>
    %32 = arith.mulf %31, %30 : vector<16x16xf32>
    %c5 = arith.constant 5 : index
    %33 = memref.load %arg2[%c5] : memref<64xf32, #tpu.memory_space<smem>>
    %c0_21 = arith.constant 0 : index
    %c1_22 = arith.constant 1 : index
    %c0_23 = arith.constant 0 : index
    %c1_24 = arith.constant 1 : index
    %34 = vector.load %arg1[%c0_21, %c1_22, %c0_23, %c1_24] : memref<1x4x18x18xf32, #tpu.memory_space<vmem>>, vector<1x1x16x16xf32>
    %35 = vector.shape_cast %34 : vector<1x1x16x16xf32> to vector<16x16xf32>
    %36 = vector.broadcast %33 : f32 to vector<16x16xf32>
    %37 = arith.mulf %36, %35 : vector<16x16xf32>
    %38 = arith.addf %32, %37 : vector<16x16xf32>
    %c9 = arith.constant 9 : index
    %39 = memref.load %arg2[%c9] : memref<64xf32, #tpu.memory_space<smem>>
    %c0_25 = arith.constant 0 : index
    %c1_26 = arith.constant 1 : index
    %c1_27 = arith.constant 1 : index
    %c0_28 = arith.constant 0 : index
    %40 = vector.load %arg1[%c0_25, %c1_26, %c1_27, %c0_28] : memref<1x4x18x18xf32, #tpu.memory_space<vmem>>, vector<1x1x16x16xf32>
    %41 = vector.shape_cast %40 : vector<1x1x16x16xf32> to vector<16x16xf32>
    %42 = vector.broadcast %39 : f32 to vector<16x16xf32>
    %43 = arith.mulf %42, %41 : vector<16x16xf32>
    %44 = arith.addf %38, %43 : vector<16x16xf32>
    %c13 = arith.constant 13 : index
    %45 = memref.load %arg2[%c13] : memref<64xf32, #tpu.memory_space<smem>>
    %c0_29 = arith.constant 0 : index
    %c1_30 = arith.constant 1 : index
    %c1_31 = arith.constant 1 : index
    %c1_32 = arith.constant 1 : index
    %46 = vector.load %arg1[%c0_29, %c1_30, %c1_31, %c1_32] : memref<1x4x18x18xf32, #tpu.memory_space<vmem>>, vector<1x1x16x16xf32>
    %47 = vector.shape_cast %46 : vector<1x1x16x16xf32> to vector<16x16xf32>
    %48 = vector.broadcast %45 : f32 to vector<16x16xf32>
    %49 = arith.mulf %48, %47 : vector<16x16xf32>
    %50 = arith.addf %44, %49 : vector<16x16xf32>
    %c1_33 = arith.constant 1 : index
    %51 = memref.load %arg3[%c1_33] : memref<4xf32, #tpu.memory_space<smem>>
    %52 = vector.broadcast %51 : f32 to vector<16x16xf32>
    %53 = arith.addf %50, %52 : vector<16x16xf32>
    %cst_34 = arith.constant 0.000000e+00 : f32
    %54 = vector.broadcast %cst_34 : f32 to vector<16x16xf32>
    %55 = arith.maximumf %53, %54 : vector<16x16xf32>
    %c2 = arith.constant 2 : index
    %56 = memref.load %arg2[%c2] : memref<64xf32, #tpu.memory_space<smem>>
    %c0_35 = arith.constant 0 : index
    %c2_36 = arith.constant 2 : index
    %c0_37 = arith.constant 0 : index
    %c0_38 = arith.constant 0 : index
    %57 = vector.load %arg1[%c0_35, %c2_36, %c0_37, %c0_38] : memref<1x4x18x18xf32, #tpu.memory_space<vmem>>, vector<1x1x16x16xf32>
    %58 = vector.shape_cast %57 : vector<1x1x16x16xf32> to vector<16x16xf32>
    %59 = vector.broadcast %56 : f32 to vector<16x16xf32>
    %60 = arith.mulf %59, %58 : vector<16x16xf32>
    %c6 = arith.constant 6 : index
    %61 = memref.load %arg2[%c6] : memref<64xf32, #tpu.memory_space<smem>>
    %c0_39 = arith.constant 0 : index
    %c2_40 = arith.constant 2 : index
    %c0_41 = arith.constant 0 : index
    %c1_42 = arith.constant 1 : index
    %62 = vector.load %arg1[%c0_39, %c2_40, %c0_41, %c1_42] : memref<1x4x18x18xf32, #tpu.memory_space<vmem>>, vector<1x1x16x16xf32>
    %63 = vector.shape_cast %62 : vector<1x1x16x16xf32> to vector<16x16xf32>
    %64 = vector.broadcast %61 : f32 to vector<16x16xf32>
    %65 = arith.mulf %64, %63 : vector<16x16xf32>
    %66 = arith.addf %60, %65 : vector<16x16xf32>
    %c10 = arith.constant 10 : index
    %67 = memref.load %arg2[%c10] : memref<64xf32, #tpu.memory_space<smem>>
    %c0_43 = arith.constant 0 : index
    %c2_44 = arith.constant 2 : index
    %c1_45 = arith.constant 1 : index
    %c0_46 = arith.constant 0 : index
    %68 = vector.load %arg1[%c0_43, %c2_44, %c1_45, %c0_46] : memref<1x4x18x18xf32, #tpu.memory_space<vmem>>, vector<1x1x16x16xf32>
    %69 = vector.shape_cast %68 : vector<1x1x16x16xf32> to vector<16x16xf32>
    %70 = vector.broadcast %67 : f32 to vector<16x16xf32>
    %71 = arith.mulf %70, %69 : vector<16x16xf32>
    %72 = arith.addf %66, %71 : vector<16x16xf32>
    %c14 = arith.constant 14 : index
    %73 = memref.load %arg2[%c14] : memref<64xf32, #tpu.memory_space<smem>>
    %c0_47 = arith.constant 0 : index
    %c2_48 = arith.constant 2 : index
    %c1_49 = arith.constant 1 : index
    %c1_50 = arith.constant 1 : index
    %74 = vector.load %arg1[%c0_47, %c2_48, %c1_49, %c1_50] : memref<1x4x18x18xf32, #tpu.memory_space<vmem>>, vector<1x1x16x16xf32>
    %75 = vector.shape_cast %74 : vector<1x1x16x16xf32> to vector<16x16xf32>
    %76 = vector.broadcast %73 : f32 to vector<16x16xf32>
    %77 = arith.mulf %76, %75 : vector<16x16xf32>
    %78 = arith.addf %72, %77 : vector<16x16xf32>
    %c2_51 = arith.constant 2 : index
    %79 = memref.load %arg3[%c2_51] : memref<4xf32, #tpu.memory_space<smem>>
    %80 = vector.broadcast %79 : f32 to vector<16x16xf32>
    %81 = arith.addf %78, %80 : vector<16x16xf32>
    %cst_52 = arith.constant 0.000000e+00 : f32
    %82 = vector.broadcast %cst_52 : f32 to vector<16x16xf32>
    %83 = arith.maximumf %81, %82 : vector<16x16xf32>
    %c3 = arith.constant 3 : index
    %84 = memref.load %arg2[%c3] : memref<64xf32, #tpu.memory_space<smem>>
    %c0_53 = arith.constant 0 : index
    %c3_54 = arith.constant 3 : index
    %c0_55 = arith.constant 0 : index
    %c0_56 = arith.constant 0 : index
    %85 = vector.load %arg1[%c0_53, %c3_54, %c0_55, %c0_56] : memref<1x4x18x18xf32, #tpu.memory_space<vmem>>, vector<1x1x16x16xf32>
    %86 = vector.shape_cast %85 : vector<1x1x16x16xf32> to vector<16x16xf32>
    %87 = vector.broadcast %84 : f32 to vector<16x16xf32>
    %88 = arith.mulf %87, %86 : vector<16x16xf32>
    %c7 = arith.constant 7 : index
    %89 = memref.load %arg2[%c7] : memref<64xf32, #tpu.memory_space<smem>>
    %c0_57 = arith.constant 0 : index
    %c3_58 = arith.constant 3 : index
    %c0_59 = arith.constant 0 : index
    %c1_60 = arith.constant 1 : index
    %90 = vector.load %arg1[%c0_57, %c3_58, %c0_59, %c1_60] : memref<1x4x18x18xf32, #tpu.memory_space<vmem>>, vector<1x1x16x16xf32>
    %91 = vector.shape_cast %90 : vector<1x1x16x16xf32> to vector<16x16xf32>
    %92 = vector.broadcast %89 : f32 to vector<16x16xf32>
    %93 = arith.mulf %92, %91 : vector<16x16xf32>
    %94 = arith.addf %88, %93 : vector<16x16xf32>
    %c11 = arith.constant 11 : index
    %95 = memref.load %arg2[%c11] : memref<64xf32, #tpu.memory_space<smem>>
    %c0_61 = arith.constant 0 : index
    %c3_62 = arith.constant 3 : index
    %c1_63 = arith.constant 1 : index
    %c0_64 = arith.constant 0 : index
    %96 = vector.load %arg1[%c0_61, %c3_62, %c1_63, %c0_64] : memref<1x4x18x18xf32, #tpu.memory_space<vmem>>, vector<1x1x16x16xf32>
    %97 = vector.shape_cast %96 : vector<1x1x16x16xf32> to vector<16x16xf32>
    %98 = vector.broadcast %95 : f32 to vector<16x16xf32>
    %99 = arith.mulf %98, %97 : vector<16x16xf32>
    %100 = arith.addf %94, %99 : vector<16x16xf32>
    %c15 = arith.constant 15 : index
    %101 = memref.load %arg2[%c15] : memref<64xf32, #tpu.memory_space<smem>>
    %c0_65 = arith.constant 0 : index
    %c3_66 = arith.constant 3 : index
    %c1_67 = arith.constant 1 : index
    %c1_68 = arith.constant 1 : index
    %102 = vector.load %arg1[%c0_65, %c3_66, %c1_67, %c1_68] : memref<1x4x18x18xf32, #tpu.memory_space<vmem>>, vector<1x1x16x16xf32>
    %103 = vector.shape_cast %102 : vector<1x1x16x16xf32> to vector<16x16xf32>
    %104 = vector.broadcast %101 : f32 to vector<16x16xf32>
    %105 = arith.mulf %104, %103 : vector<16x16xf32>
    %106 = arith.addf %100, %105 : vector<16x16xf32>
    %c3_69 = arith.constant 3 : index
    %107 = memref.load %arg3[%c3_69] : memref<4xf32, #tpu.memory_space<smem>>
    %108 = vector.broadcast %107 : f32 to vector<16x16xf32>
    %109 = arith.addf %106, %108 : vector<16x16xf32>
    %cst_70 = arith.constant 0.000000e+00 : f32
    %110 = vector.broadcast %cst_70 : f32 to vector<16x16xf32>
    %111 = arith.maximumf %109, %110 : vector<16x16xf32>
    %c0_71 = arith.constant 0 : index
    %112 = memref.load %arg5[%c0_71] : memref<8xf32, #tpu.memory_space<smem>>
    %c0_72 = arith.constant 0 : index
    %113 = memref.load %arg4[%c0_72] : memref<32xf32, #tpu.memory_space<smem>>
    %114 = vector.broadcast %113 : f32 to vector<16x16xf32>
    %115 = arith.mulf %114, %27 : vector<16x16xf32>
    %116 = vector.broadcast %112 : f32 to vector<16x16xf32>
    %117 = arith.addf %116, %115 : vector<16x16xf32>
    %c1_73 = arith.constant 1 : index
    %118 = memref.load %arg4[%c1_73] : memref<32xf32, #tpu.memory_space<smem>>
    %119 = vector.broadcast %118 : f32 to vector<16x16xf32>
    %120 = arith.mulf %119, %55 : vector<16x16xf32>
    %121 = arith.addf %117, %120 : vector<16x16xf32>
    %c2_74 = arith.constant 2 : index
    %122 = memref.load %arg4[%c2_74] : memref<32xf32, #tpu.memory_space<smem>>
    %123 = vector.broadcast %122 : f32 to vector<16x16xf32>
    %124 = arith.mulf %123, %83 : vector<16x16xf32>
    %125 = arith.addf %121, %124 : vector<16x16xf32>
    %c3_75 = arith.constant 3 : index
    %126 = memref.load %arg4[%c3_75] : memref<32xf32, #tpu.memory_space<smem>>
    %127 = vector.broadcast %126 : f32 to vector<16x16xf32>
    %128 = arith.mulf %127, %111 : vector<16x16xf32>
    %129 = arith.addf %125, %128 : vector<16x16xf32>
    %c0_76 = arith.constant 0 : index
    %c0_77 = arith.constant 0 : index
    %c0_78 = arith.constant 0 : index
    %c0_79 = arith.constant 0 : index
    %130 = vector.load %arg6[%c0_76, %c0_77, %c0_78, %c0_79] : memref<1x32x16x16xf32, #tpu.memory_space<vmem>>, vector<1x1x16x16xf32>
    %131 = vector.shape_cast %130 : vector<1x1x16x16xf32> to vector<16x16xf32>
    %132 = vector.shape_cast %129 : vector<16x16xf32> to vector<1x1x16x16xf32>
    tpu.vector_store %arg6[%c0_76, %c0_77, %c0_78, %c0_79], %132 {strides = array<i32>} : memref<1x32x16x16xf32, #tpu.memory_space<vmem>>, vector<1x1x16x16xf32>,
    %c1_80 = arith.constant 1 : index
    %133 = memref.load %arg5[%c1_80] : memref<8xf32, #tpu.memory_space<smem>>
    %c4_81 = arith.constant 4 : index
    %134 = memref.load %arg4[%c4_81] : memref<32xf32, #tpu.memory_space<smem>>
    %135 = vector.broadcast %134 : f32 to vector<16x16xf32>
    %136 = arith.mulf %135, %27 : vector<16x16xf32>
    %137 = vector.broadcast %133 : f32 to vector<16x16xf32>
    %138 = arith.addf %137, %136 : vector<16x16xf32>
    %c5_82 = arith.constant 5 : index
    %139 = memref.load %arg4[%c5_82] : memref<32xf32, #tpu.memory_space<smem>>
    %140 = vector.broadcast %139 : f32 to vector<16x16xf32>
    %141 = arith.mulf %140, %55 : vector<16x16xf32>
    %142 = arith.addf %138, %141 : vector<16x16xf32>
    %c6_83 = arith.constant 6 : index
    %143 = memref.load %arg4[%c6_83] : memref<32xf32, #tpu.memory_space<smem>>
    %144 = vector.broadcast %143 : f32 to vector<16x16xf32>
    %145 = arith.mulf %144, %83 : vector<16x16xf32>
    %146 = arith.addf %142, %145 : vector<16x16xf32>
    %c7_84 = arith.constant 7 : index
    %147 = memref.load %arg4[%c7_84] : memref<32xf32, #tpu.memory_space<smem>>
    %148 = vector.broadcast %147 : f32 to vector<16x16xf32>
    %149 = arith.mulf %148, %111 : vector<16x16xf32>
    %150 = arith.addf %146, %149 : vector<16x16xf32>
    %c0_85 = arith.constant 0 : index
    %c1_86 = arith.constant 1 : index
    %c0_87 = arith.constant 0 : index
    %c0_88 = arith.constant 0 : index
    %151 = vector.load %arg6[%c0_85, %c1_86, %c0_87, %c0_88] : memref<1x32x16x16xf32, #tpu.memory_space<vmem>>, vector<1x1x16x16xf32>
    %152 = vector.shape_cast %151 : vector<1x1x16x16xf32> to vector<16x16xf32>
    %153 = vector.shape_cast %150 : vector<16x16xf32> to vector<1x1x16x16xf32>
    tpu.vector_store %arg6[%c0_85, %c1_86, %c0_87, %c0_88], %153 {strides = array<i32>} : memref<1x32x16x16xf32, #tpu.memory_space<vmem>>, vector<1x1x16x16xf32>,
    %c2_89 = arith.constant 2 : index
    %154 = memref.load %arg5[%c2_89] : memref<8xf32, #tpu.memory_space<smem>>
    %c8_90 = arith.constant 8 : index
    %155 = memref.load %arg4[%c8_90] : memref<32xf32, #tpu.memory_space<smem>>
    %156 = vector.broadcast %155 : f32 to vector<16x16xf32>
    %157 = arith.mulf %156, %27 : vector<16x16xf32>
    %158 = vector.broadcast %154 : f32 to vector<16x16xf32>
    %159 = arith.addf %158, %157 : vector<16x16xf32>
    %c9_91 = arith.constant 9 : index
    %160 = memref.load %arg4[%c9_91] : memref<32xf32, #tpu.memory_space<smem>>
    %161 = vector.broadcast %160 : f32 to vector<16x16xf32>
    %162 = arith.mulf %161, %55 : vector<16x16xf32>
    %163 = arith.addf %159, %162 : vector<16x16xf32>
    %c10_92 = arith.constant 10 : index
    %164 = memref.load %arg4[%c10_92] : memref<32xf32, #tpu.memory_space<smem>>
    %165 = vector.broadcast %164 : f32 to vector<16x16xf32>
    %166 = arith.mulf %165, %83 : vector<16x16xf32>
    %167 = arith.addf %163, %166 : vector<16x16xf32>
    %c11_93 = arith.constant 11 : index
    %168 = memref.load %arg4[%c11_93] : memref<32xf32, #tpu.memory_space<smem>>
    %169 = vector.broadcast %168 : f32 to vector<16x16xf32>
    %170 = arith.mulf %169, %111 : vector<16x16xf32>
    %171 = arith.addf %167, %170 : vector<16x16xf32>
    %c0_94 = arith.constant 0 : index
    %c2_95 = arith.constant 2 : index
    %c0_96 = arith.constant 0 : index
    %c0_97 = arith.constant 0 : index
    %172 = vector.load %arg6[%c0_94, %c2_95, %c0_96, %c0_97] : memref<1x32x16x16xf32, #tpu.memory_space<vmem>>, vector<1x1x16x16xf32>
    %173 = vector.shape_cast %172 : vector<1x1x16x16xf32> to vector<16x16xf32>
    %174 = vector.shape_cast %171 : vector<16x16xf32> to vector<1x1x16x16xf32>
    tpu.vector_store %arg6[%c0_94, %c2_95, %c0_96, %c0_97], %174 {strides = array<i32>} : memref<1x32x16x16xf32, #tpu.memory_space<vmem>>, vector<1x1x16x16xf32>,
    %c3_98 = arith.constant 3 : index
    %175 = memref.load %arg5[%c3_98] : memref<8xf32, #tpu.memory_space<smem>>
    %c12_99 = arith.constant 12 : index
    %176 = memref.load %arg4[%c12_99] : memref<32xf32, #tpu.memory_space<smem>>
    %177 = vector.broadcast %176 : f32 to vector<16x16xf32>
    %178 = arith.mulf %177, %27 : vector<16x16xf32>
    %179 = vector.broadcast %175 : f32 to vector<16x16xf32>
    %180 = arith.addf %179, %178 : vector<16x16xf32>
    %c13_100 = arith.constant 13 : index
    %181 = memref.load %arg4[%c13_100] : memref<32xf32, #tpu.memory_space<smem>>
    %182 = vector.broadcast %181 : f32 to vector<16x16xf32>
    %183 = arith.mulf %182, %55 : vector<16x16xf32>
    %184 = arith.addf %180, %183 : vector<16x16xf32>
    %c14_101 = arith.constant 14 : index
    %185 = memref.load %arg4[%c14_101] : memref<32xf32, #tpu.memory_space<smem>>
    %186 = vector.broadcast %185 : f32 to vector<16x16xf32>
    %187 = arith.mulf %186, %83 : vector<16x16xf32>
    %188 = arith.addf %184, %187 : vector<16x16xf32>
    %c15_102 = arith.constant 15 : index
    %189 = memref.load %arg4[%c15_102] : memref<32xf32, #tpu.memory_space<smem>>
    %190 = vector.broadcast %189 : f32 to vector<16x16xf32>
    %191 = arith.mulf %190, %111 : vector<16x16xf32>
    %192 = arith.addf %188, %191 : vector<16x16xf32>
    %c0_103 = arith.constant 0 : index
    %c3_104 = arith.constant 3 : index
    %c0_105 = arith.constant 0 : index
    %c0_106 = arith.constant 0 : index
    %193 = vector.load %arg6[%c0_103, %c3_104, %c0_105, %c0_106] : memref<1x32x16x16xf32, #tpu.memory_space<vmem>>, vector<1x1x16x16xf32>
    %194 = vector.shape_cast %193 : vector<1x1x16x16xf32> to vector<16x16xf32>
    %195 = vector.shape_cast %192 : vector<16x16xf32> to vector<1x1x16x16xf32>
    tpu.vector_store %arg6[%c0_103, %c3_104, %c0_105, %c0_106], %195 {strides = array<i32>} : memref<1x32x16x16xf32, #tpu.memory_space<vmem>>, vector<1x1x16x16xf32>,
    %c4_107 = arith.constant 4 : index
    %196 = memref.load %arg5[%c4_107] : memref<8xf32, #tpu.memory_space<smem>>
    %c16 = arith.constant 16 : index
    %197 = memref.load %arg4[%c16] : memref<32xf32, #tpu.memory_space<smem>>
    %198 = vector.broadcast %197 : f32 to vector<16x16xf32>
    %199 = arith.mulf %198, %27 : vector<16x16xf32>
    %200 = vector.broadcast %196 : f32 to vector<16x16xf32>
    %201 = arith.addf %200, %199 : vector<16x16xf32>
    %c17 = arith.constant 17 : index
    %202 = memref.load %arg4[%c17] : memref<32xf32, #tpu.memory_space<smem>>
    %203 = vector.broadcast %202 : f32 to vector<16x16xf32>
    %204 = arith.mulf %203, %55 : vector<16x16xf32>
    %205 = arith.addf %201, %204 : vector<16x16xf32>
    %c18 = arith.constant 18 : index
    %206 = memref.load %arg4[%c18] : memref<32xf32, #tpu.memory_space<smem>>
    %207 = vector.broadcast %206 : f32 to vector<16x16xf32>
    %208 = arith.mulf %207, %83 : vector<16x16xf32>
    %209 = arith.addf %205, %208 : vector<16x16xf32>
    %c19 = arith.constant 19 : index
    %210 = memref.load %arg4[%c19] : memref<32xf32, #tpu.memory_space<smem>>
    %211 = vector.broadcast %210 : f32 to vector<16x16xf32>
    %212 = arith.mulf %211, %111 : vector<16x16xf32>
    %213 = arith.addf %209, %212 : vector<16x16xf32>
    %c0_108 = arith.constant 0 : index
    %c4_109 = arith.constant 4 : index
    %c0_110 = arith.constant 0 : index
    %c0_111 = arith.constant 0 : index
    %214 = vector.load %arg6[%c0_108, %c4_109, %c0_110, %c0_111] : memref<1x32x16x16xf32, #tpu.memory_space<vmem>>, vector<1x1x16x16xf32>
    %215 = vector.shape_cast %214 : vector<1x1x16x16xf32> to vector<16x16xf32>
    %216 = vector.shape_cast %213 : vector<16x16xf32> to vector<1x1x16x16xf32>
    tpu.vector_store %arg6[%c0_108, %c4_109, %c0_110, %c0_111], %216 {strides = array<i32>} : memref<1x32x16x16xf32, #tpu.memory_space<vmem>>, vector<1x1x16x16xf32>,
    %c5_112 = arith.constant 5 : index
    %217 = memref.load %arg5[%c5_112] : memref<8xf32, #tpu.memory_space<smem>>
    %c20 = arith.constant 20 : index
    %218 = memref.load %arg4[%c20] : memref<32xf32, #tpu.memory_space<smem>>
    %219 = vector.broadcast %218 : f32 to vector<16x16xf32>
    %220 = arith.mulf %219, %27 : vector<16x16xf32>
    %221 = vector.broadcast %217 : f32 to vector<16x16xf32>
    %222 = arith.addf %221, %220 : vector<16x16xf32>
    %c21 = arith.constant 21 : index
    %223 = memref.load %arg4[%c21] : memref<32xf32, #tpu.memory_space<smem>>
    %224 = vector.broadcast %223 : f32 to vector<16x16xf32>
    %225 = arith.mulf %224, %55 : vector<16x16xf32>
    %226 = arith.addf %222, %225 : vector<16x16xf32>
    %c22 = arith.constant 22 : index
    %227 = memref.load %arg4[%c22] : memref<32xf32, #tpu.memory_space<smem>>
    %228 = vector.broadcast %227 : f32 to vector<16x16xf32>
    %229 = arith.mulf %228, %83 : vector<16x16xf32>
    %230 = arith.addf %226, %229 : vector<16x16xf32>
    %c23 = arith.constant 23 : index
    %231 = memref.load %arg4[%c23] : memref<32xf32, #tpu.memory_space<smem>>
    %232 = vector.broadcast %231 : f32 to vector<16x16xf32>
    %233 = arith.mulf %232, %111 : vector<16x16xf32>
    %234 = arith.addf %230, %233 : vector<16x16xf32>
    %c0_113 = arith.constant 0 : index
    %c5_114 = arith.constant 5 : index
    %c0_115 = arith.constant 0 : index
    %c0_116 = arith.constant 0 : index
    %235 = vector.load %arg6[%c0_113, %c5_114, %c0_115, %c0_116] : memref<1x32x16x16xf32, #tpu.memory_space<vmem>>, vector<1x1x16x16xf32>
    %236 = vector.shape_cast %235 : vector<1x1x16x16xf32> to vector<16x16xf32>
    %237 = vector.shape_cast %234 : vector<16x16xf32> to vector<1x1x16x16xf32>
    tpu.vector_store %arg6[%c0_113, %c5_114, %c0_115, %c0_116], %237 {strides = array<i32>} : memref<1x32x16x16xf32, #tpu.memory_space<vmem>>, vector<1x1x16x16xf32>,
    %c6_117 = arith.constant 6 : index
    %238 = memref.load %arg5[%c6_117] : memref<8xf32, #tpu.memory_space<smem>>
    %c24 = arith.constant 24 : index
    %239 = memref.load %arg4[%c24] : memref<32xf32, #tpu.memory_space<smem>>
    %240 = vector.broadcast %239 : f32 to vector<16x16xf32>
    %241 = arith.mulf %240, %27 : vector<16x16xf32>
    %242 = vector.broadcast %238 : f32 to vector<16x16xf32>
    %243 = arith.addf %242, %241 : vector<16x16xf32>
    %c25 = arith.constant 25 : index
    %244 = memref.load %arg4[%c25] : memref<32xf32, #tpu.memory_space<smem>>
    %245 = vector.broadcast %244 : f32 to vector<16x16xf32>
    %246 = arith.mulf %245, %55 : vector<16x16xf32>
    %247 = arith.addf %243, %246 : vector<16x16xf32>
    %c26 = arith.constant 26 : index
    %248 = memref.load %arg4[%c26] : memref<32xf32, #tpu.memory_space<smem>>
    %249 = vector.broadcast %248 : f32 to vector<16x16xf32>
    %250 = arith.mulf %249, %83 : vector<16x16xf32>
    %251 = arith.addf %247, %250 : vector<16x16xf32>
    %c27 = arith.constant 27 : index
    %252 = memref.load %arg4[%c27] : memref<32xf32, #tpu.memory_space<smem>>
    %253 = vector.broadcast %252 : f32 to vector<16x16xf32>
    %254 = arith.mulf %253, %111 : vector<16x16xf32>
    %255 = arith.addf %251, %254 : vector<16x16xf32>
    %c0_118 = arith.constant 0 : index
    %c6_119 = arith.constant 6 : index
    %c0_120 = arith.constant 0 : index
    %c0_121 = arith.constant 0 : index
    %256 = vector.load %arg6[%c0_118, %c6_119, %c0_120, %c0_121] : memref<1x32x16x16xf32, #tpu.memory_space<vmem>>, vector<1x1x16x16xf32>
    %257 = vector.shape_cast %256 : vector<1x1x16x16xf32> to vector<16x16xf32>
    %258 = vector.shape_cast %255 : vector<16x16xf32> to vector<1x1x16x16xf32>
    tpu.vector_store %arg6[%c0_118, %c6_119, %c0_120, %c0_121], %258 {strides = array<i32>} : memref<1x32x16x16xf32, #tpu.memory_space<vmem>>, vector<1x1x16x16xf32>,
    %c7_122 = arith.constant 7 : index
    %259 = memref.load %arg5[%c7_122] : memref<8xf32, #tpu.memory_space<smem>>
    %c28 = arith.constant 28 : index
    %260 = memref.load %arg4[%c28] : memref<32xf32, #tpu.memory_space<smem>>
    %261 = vector.broadcast %260 : f32 to vector<16x16xf32>
    %262 = arith.mulf %261, %27 : vector<16x16xf32>
    %263 = vector.broadcast %259 : f32 to vector<16x16xf32>
    %264 = arith.addf %263, %262 : vector<16x16xf32>
    %c29 = arith.constant 29 : index
    %265 = memref.load %arg4[%c29] : memref<32xf32, #tpu.memory_space<smem>>
    %266 = vector.broadcast %265 : f32 to vector<16x16xf32>
    %267 = arith.mulf %266, %55 : vector<16x16xf32>
    %268 = arith.addf %264, %267 : vector<16x16xf32>
    %c30 = arith.constant 30 : index
    %269 = memref.load %arg4[%c30] : memref<32xf32, #tpu.memory_space<smem>>
    %270 = vector.broadcast %269 : f32 to vector<16x16xf32>
    %271 = arith.mulf %270, %83 : vector<16x16xf32>
    %272 = arith.addf %268, %271 : vector<16x16xf32>
    %c31 = arith.constant 31 : index
    %273 = memref.load %arg4[%c31] : memref<32xf32, #tpu.memory_space<smem>>
    %274 = vector.broadcast %273 : f32 to vector<16x16xf32>
    %275 = arith.mulf %274, %111 : vector<16x16xf32>
    %276 = arith.addf %272, %275 : vector<16x16xf32>
    %c0_123 = arith.constant 0 : index
    %c7_124 = arith.constant 7 : index
    %c0_125 = arith.constant 0 : index
    %c0_126 = arith.constant 0 : index
    %277 = vector.load %arg6[%c0_123, %c7_124, %c0_125, %c0_126] : memref<1x32x16x16xf32, #tpu.memory_space<vmem>>, vector<1x1x16x16xf32>
    %278 = vector.shape_cast %277 : vector<1x1x16x16xf32> to vector<16x16xf32>
    %279 = vector.shape_cast %276 : vector<16x16xf32> to vector<1x1x16x16xf32>
    tpu.vector_store %arg6[%c0_123, %c7_124, %c0_125, %c0_126], %279 {strides = array<i32>} : memref<1x32x16x16xf32, #tpu.memory_space<vmem>>, vector<1x1x16x16xf32>,
    %c16_127 = arith.constant 16 : index
    %280 = memref.load %arg2[%c16_127] : memref<64xf32, #tpu.memory_space<smem>>
    %c0_128 = arith.constant 0 : index
    %c0_129 = arith.constant 0 : index
    %c0_130 = arith.constant 0 : index
    %c1_131 = arith.constant 1 : index
    %281 = vector.load %arg1[%c0_128, %c0_129, %c0_130, %c1_131] : memref<1x4x18x18xf32, #tpu.memory_space<vmem>>, vector<1x1x16x16xf32>
    %282 = vector.shape_cast %281 : vector<1x1x16x16xf32> to vector<16x16xf32>
    %283 = vector.broadcast %280 : f32 to vector<16x16xf32>
    %284 = arith.mulf %283, %282 : vector<16x16xf32>
    %c20_132 = arith.constant 20 : index
    %285 = memref.load %arg2[%c20_132] : memref<64xf32, #tpu.memory_space<smem>>
    %c0_133 = arith.constant 0 : index
    %c0_134 = arith.constant 0 : index
    %c0_135 = arith.constant 0 : index
    %c2_136 = arith.constant 2 : index
    %286 = vector.load %arg1[%c0_133, %c0_134, %c0_135, %c2_136] : memref<1x4x18x18xf32, #tpu.memory_space<vmem>>, vector<1x1x16x16xf32>
    %287 = vector.shape_cast %286 : vector<1x1x16x16xf32> to vector<16x16xf32>
    %288 = vector.broadcast %285 : f32 to vector<16x16xf32>
    %289 = arith.mulf %288, %287 : vector<16x16xf32>
    %290 = arith.addf %284, %289 : vector<16x16xf32>
    %c24_137 = arith.constant 24 : index
    %291 = memref.load %arg2[%c24_137] : memref<64xf32, #tpu.memory_space<smem>>
    %c0_138 = arith.constant 0 : index
    %c0_139 = arith.constant 0 : index
    %c1_140 = arith.constant 1 : index
    %c1_141 = arith.constant 1 : index
    %292 = vector.load %arg1[%c0_138, %c0_139, %c1_140, %c1_141] : memref<1x4x18x18xf32, #tpu.memory_space<vmem>>, vector<1x1x16x16xf32>
    %293 = vector.shape_cast %292 : vector<1x1x16x16xf32> to vector<16x16xf32>
    %294 = vector.broadcast %291 : f32 to vector<16x16xf32>
    %295 = arith.mulf %294, %293 : vector<16x16xf32>
    %296 = arith.addf %290, %295 : vector<16x16xf32>
    %c28_142 = arith.constant 28 : index
    %297 = memref.load %arg2[%c28_142] : memref<64xf32, #tpu.memory_space<smem>>
    %c0_143 = arith.constant 0 : index
    %c0_144 = arith.constant 0 : index
    %c1_145 = arith.constant 1 : index
    %c2_146 = arith.constant 2 : index
    %298 = vector.load %arg1[%c0_143, %c0_144, %c1_145, %c2_146] : memref<1x4x18x18xf32, #tpu.memory_space<vmem>>, vector<1x1x16x16xf32>
    %299 = vector.shape_cast %298 : vector<1x1x16x16xf32> to vector<16x16xf32>
    %300 = vector.broadcast %297 : f32 to vector<16x16xf32>
    %301 = arith.mulf %300, %299 : vector<16x16xf32>
    %302 = arith.addf %296, %301 : vector<16x16xf32>
    %c0_147 = arith.constant 0 : index
    %303 = memref.load %arg3[%c0_147] : memref<4xf32, #tpu.memory_space<smem>>
    %304 = vector.broadcast %303 : f32 to vector<16x16xf32>
    %305 = arith.addf %302, %304 : vector<16x16xf32>
    %cst_148 = arith.constant 0.000000e+00 : f32
    %306 = vector.broadcast %cst_148 : f32 to vector<16x16xf32>
    %307 = arith.maximumf %305, %306 : vector<16x16xf32>
    %c17_149 = arith.constant 17 : index
    %308 = memref.load %arg2[%c17_149] : memref<64xf32, #tpu.memory_space<smem>>
    %c0_150 = arith.constant 0 : index
    %c1_151 = arith.constant 1 : index
    %c0_152 = arith.constant 0 : index
    %c1_153 = arith.constant 1 : index
    %309 = vector.load %arg1[%c0_150, %c1_151, %c0_152, %c1_153] : memref<1x4x18x18xf32, #tpu.memory_space<vmem>>, vector<1x1x16x16xf32>
    %310 = vector.shape_cast %309 : vector<1x1x16x16xf32> to vector<16x16xf32>
    %311 = vector.broadcast %308 : f32 to vector<16x16xf32>
    %312 = arith.mulf %311, %310 : vector<16x16xf32>
    %c21_154 = arith.constant 21 : index
    %313 = memref.load %arg2[%c21_154] : memref<64xf32, #tpu.memory_space<smem>>
    %c0_155 = arith.constant 0 : index
    %c1_156 = arith.constant 1 : index
    %c0_157 = arith.constant 0 : index
    %c2_158 = arith.constant 2 : index
    %314 = vector.load %arg1[%c0_155, %c1_156, %c0_157, %c2_158] : memref<1x4x18x18xf32, #tpu.memory_space<vmem>>, vector<1x1x16x16xf32>
    %315 = vector.shape_cast %314 : vector<1x1x16x16xf32> to vector<16x16xf32>
    %316 = vector.broadcast %313 : f32 to vector<16x16xf32>
    %317 = arith.mulf %316, %315 : vector<16x16xf32>
    %318 = arith.addf %312, %317 : vector<16x16xf32>
    %c25_159 = arith.constant 25 : index
    %319 = memref.load %arg2[%c25_159] : memref<64xf32, #tpu.memory_space<smem>>
    %c0_160 = arith.constant 0 : index
    %c1_161 = arith.constant 1 : index
    %c1_162 = arith.constant 1 : index
    %c1_163 = arith.constant 1 : index
    %320 = vector.load %arg1[%c0_160, %c1_161, %c1_162, %c1_163] : memref<1x4x18x18xf32, #tpu.memory_space<vmem>>, vector<1x1x16x16xf32>
    %321 = vector.shape_cast %320 : vector<1x1x16x16xf32> to vector<16x16xf32>
    %322 = vector.broadcast %319 : f32 to vector<16x16xf32>
    %323 = arith.mulf %322, %321 : vector<16x16xf32>
    %324 = arith.addf %318, %323 : vector<16x16xf32>
    %c29_164 = arith.constant 29 : index
    %325 = memref.load %arg2[%c29_164] : memref<64xf32, #tpu.memory_space<smem>>
    %c0_165 = arith.constant 0 : index
    %c1_166 = arith.constant 1 : index
    %c1_167 = arith.constant 1 : index
    %c2_168 = arith.constant 2 : index
    %326 = vector.load %arg1[%c0_165, %c1_166, %c1_167, %c2_168] : memref<1x4x18x18xf32, #tpu.memory_space<vmem>>, vector<1x1x16x16xf32>
    %327 = vector.shape_cast %326 : vector<1x1x16x16xf32> to vector<16x16xf32>
    %328 = vector.broadcast %325 : f32 to vector<16x16xf32>
    %329 = arith.mulf %328, %327 : vector<16x16xf32>
    %330 = arith.addf %324, %329 : vector<16x16xf32>
    %c1_169 = arith.constant 1 : index
    %331 = memref.load %arg3[%c1_169] : memref<4xf32, #tpu.memory_space<smem>>
    %332 = vector.broadcast %331 : f32 to vector<16x16xf32>
    %333 = arith.addf %330, %332 : vector<16x16xf32>
    %cst_170 = arith.constant 0.000000e+00 : f32
    %334 = vector.broadcast %cst_170 : f32 to vector<16x16xf32>
    %335 = arith.maximumf %333, %334 : vector<16x16xf32>
    %c18_171 = arith.constant 18 : index
    %336 = memref.load %arg2[%c18_171] : memref<64xf32, #tpu.memory_space<smem>>
    %c0_172 = arith.constant 0 : index
    %c2_173 = arith.constant 2 : index
    %c0_174 = arith.constant 0 : index
    %c1_175 = arith.constant 1 : index
    %337 = vector.load %arg1[%c0_172, %c2_173, %c0_174, %c1_175] : memref<1x4x18x18xf32, #tpu.memory_space<vmem>>, vector<1x1x16x16xf32>
    %338 = vector.shape_cast %337 : vector<1x1x16x16xf32> to vector<16x16xf32>
    %339 = vector.broadcast %336 : f32 to vector<16x16xf32>
    %340 = arith.mulf %339, %338 : vector<16x16xf32>
    %c22_176 = arith.constant 22 : index
    %341 = memref.load %arg2[%c22_176] : memref<64xf32, #tpu.memory_space<smem>>
    %c0_177 = arith.constant 0 : index
    %c2_178 = arith.constant 2 : index
    %c0_179 = arith.constant 0 : index
    %c2_180 = arith.constant 2 : index
    %342 = vector.load %arg1[%c0_177, %c2_178, %c0_179, %c2_180] : memref<1x4x18x18xf32, #tpu.memory_space<vmem>>, vector<1x1x16x16xf32>
    %343 = vector.shape_cast %342 : vector<1x1x16x16xf32> to vector<16x16xf32>
    %344 = vector.broadcast %341 : f32 to vector<16x16xf32>
    %345 = arith.mulf %344, %343 : vector<16x16xf32>
    %346 = arith.addf %340, %345 : vector<16x16xf32>
    %c26_181 = arith.constant 26 : index
    %347 = memref.load %arg2[%c26_181] : memref<64xf32, #tpu.memory_space<smem>>
    %c0_182 = arith.constant 0 : index
    %c2_183 = arith.constant 2 : index
    %c1_184 = arith.constant 1 : index
    %c1_185 = arith.constant 1 : index
    %348 = vector.load %arg1[%c0_182, %c2_183, %c1_184, %c1_185] : memref<1x4x18x18xf32, #tpu.memory_space<vmem>>, vector<1x1x16x16xf32>
    %349 = vector.shape_cast %348 : vector<1x1x16x16xf32> to vector<16x16xf32>
    %350 = vector.broadcast %347 : f32 to vector<16x16xf32>
    %351 = arith.mulf %350, %349 : vector<16x16xf32>
    %352 = arith.addf %346, %351 : vector<16x16xf32>
    %c30_186 = arith.constant 30 : index
    %353 = memref.load %arg2[%c30_186] : memref<64xf32, #tpu.memory_space<smem>>
    %c0_187 = arith.constant 0 : index
    %c2_188 = arith.constant 2 : index
    %c1_189 = arith.constant 1 : index
    %c2_190 = arith.constant 2 : index
    %354 = vector.load %arg1[%c0_187, %c2_188, %c1_189, %c2_190] : memref<1x4x18x18xf32, #tpu.memory_space<vmem>>, vector<1x1x16x16xf32>
    %355 = vector.shape_cast %354 : vector<1x1x16x16xf32> to vector<16x16xf32>
    %356 = vector.broadcast %353 : f32 to vector<16x16xf32>
    %357 = arith.mulf %356, %355 : vector<16x16xf32>
    %358 = arith.addf %352, %357 : vector<16x16xf32>
    %c2_191 = arith.constant 2 : index
    %359 = memref.load %arg3[%c2_191] : memref<4xf32, #tpu.memory_space<smem>>
    %360 = vector.broadcast %359 : f32 to vector<16x16xf32>
    %361 = arith.addf %358, %360 : vector<16x16xf32>
    %cst_192 = arith.constant 0.000000e+00 : f32
    %362 = vector.broadcast %cst_192 : f32 to vector<16x16xf32>
    %363 = arith.maximumf %361, %362 : vector<16x16xf32>
    %c19_193 = arith.constant 19 : index
    %364 = memref.load %arg2[%c19_193] : memref<64xf32, #tpu.memory_space<smem>>
    %c0_194 = arith.constant 0 : index
    %c3_195 = arith.constant 3 : index
    %c0_196 = arith.constant 0 : index
    %c1_197 = arith.constant 1 : index
    %365 = vector.load %arg1[%c0_194, %c3_195, %c0_196, %c1_197] : memref<1x4x18x18xf32, #tpu.memory_space<vmem>>, vector<1x1x16x16xf32>
    %366 = vector.shape_cast %365 : vector<1x1x16x16xf32> to vector<16x16xf32>
    %367 = vector.broadcast %364 : f32 to vector<16x16xf32>
    %368 = arith.mulf %367, %366 : vector<16x16xf32>
    %c23_198 = arith.constant 23 : index
    %369 = memref.load %arg2[%c23_198] : memref<64xf32, #tpu.memory_space<smem>>
    %c0_199 = arith.constant 0 : index
    %c3_200 = arith.constant 3 : index
    %c0_201 = arith.constant 0 : index
    %c2_202 = arith.constant 2 : index
    %370 = vector.load %arg1[%c0_199, %c3_200, %c0_201, %c2_202] : memref<1x4x18x18xf32, #tpu.memory_space<vmem>>, vector<1x1x16x16xf32>
    %371 = vector.shape_cast %370 : vector<1x1x16x16xf32> to vector<16x16xf32>
    %372 = vector.broadcast %369 : f32 to vector<16x16xf32>
    %373 = arith.mulf %372, %371 : vector<16x16xf32>
    %374 = arith.addf %368, %373 : vector<16x16xf32>
    %c27_203 = arith.constant 27 : index
    %375 = memref.load %arg2[%c27_203] : memref<64xf32, #tpu.memory_space<smem>>
    %c0_204 = arith.constant 0 : index
    %c3_205 = arith.constant 3 : index
    %c1_206 = arith.constant 1 : index
    %c1_207 = arith.constant 1 : index
    %376 = vector.load %arg1[%c0_204, %c3_205, %c1_206, %c1_207] : memref<1x4x18x18xf32, #tpu.memory_space<vmem>>, vector<1x1x16x16xf32>
    %377 = vector.shape_cast %376 : vector<1x1x16x16xf32> to vector<16x16xf32>
    %378 = vector.broadcast %375 : f32 to vector<16x16xf32>
    %379 = arith.mulf %378, %377 : vector<16x16xf32>
    %380 = arith.addf %374, %379 : vector<16x16xf32>
    %c31_208 = arith.constant 31 : index
    %381 = memref.load %arg2[%c31_208] : memref<64xf32, #tpu.memory_space<smem>>
    %c0_209 = arith.constant 0 : index
    %c3_210 = arith.constant 3 : index
    %c1_211 = arith.constant 1 : index
    %c2_212 = arith.constant 2 : index
    %382 = vector.load %arg1[%c0_209, %c3_210, %c1_211, %c2_212] : memref<1x4x18x18xf32, #tpu.memory_space<vmem>>, vector<1x1x16x16xf32>
    %383 = vector.shape_cast %382 : vector<1x1x16x16xf32> to vector<16x16xf32>
    %384 = vector.broadcast %381 : f32 to vector<16x16xf32>
    %385 = arith.mulf %384, %383 : vector<16x16xf32>
    %386 = arith.addf %380, %385 : vector<16x16xf32>
    %c3_213 = arith.constant 3 : index
    %387 = memref.load %arg3[%c3_213] : memref<4xf32, #tpu.memory_space<smem>>
    %388 = vector.broadcast %387 : f32 to vector<16x16xf32>
    %389 = arith.addf %386, %388 : vector<16x16xf32>
    %cst_214 = arith.constant 0.000000e+00 : f32
    %390 = vector.broadcast %cst_214 : f32 to vector<16x16xf32>
    %391 = arith.maximumf %389, %390 : vector<16x16xf32>
    %c0_215 = arith.constant 0 : index
    %392 = memref.load %arg5[%c0_215] : memref<8xf32, #tpu.memory_space<smem>>
    %c0_216 = arith.constant 0 : index
    %393 = memref.load %arg4[%c0_216] : memref<32xf32, #tpu.memory_space<smem>>
    %394 = vector.broadcast %393 : f32 to vector<16x16xf32>
    %395 = arith.mulf %394, %307 : vector<16x16xf32>
    %396 = vector.broadcast %392 : f32 to vector<16x16xf32>
    %397 = arith.addf %396, %395 : vector<16x16xf32>
    %c1_217 = arith.constant 1 : index
    %398 = memref.load %arg4[%c1_217] : memref<32xf32, #tpu.memory_space<smem>>
    %399 = vector.broadcast %398 : f32 to vector<16x16xf32>
    %400 = arith.mulf %399, %335 : vector<16x16xf32>
    %401 = arith.addf %397, %400 : vector<16x16xf32>
    %c2_218 = arith.constant 2 : index
    %402 = memref.load %arg4[%c2_218] : memref<32xf32, #tpu.memory_space<smem>>
    %403 = vector.broadcast %402 : f32 to vector<16x16xf32>
    %404 = arith.mulf %403, %363 : vector<16x16xf32>
    %405 = arith.addf %401, %404 : vector<16x16xf32>
    %c3_219 = arith.constant 3 : index
    %406 = memref.load %arg4[%c3_219] : memref<32xf32, #tpu.memory_space<smem>>
    %407 = vector.broadcast %406 : f32 to vector<16x16xf32>
    %408 = arith.mulf %407, %391 : vector<16x16xf32>
    %409 = arith.addf %405, %408 : vector<16x16xf32>
    %c0_220 = arith.constant 0 : index
    %c8_221 = arith.constant 8 : index
    %c0_222 = arith.constant 0 : index
    %c0_223 = arith.constant 0 : index
    %410 = vector.load %arg6[%c0_220, %c8_221, %c0_222, %c0_223] : memref<1x32x16x16xf32, #tpu.memory_space<vmem>>, vector<1x1x16x16xf32>
    %411 = vector.shape_cast %410 : vector<1x1x16x16xf32> to vector<16x16xf32>
    %412 = vector.shape_cast %409 : vector<16x16xf32> to vector<1x1x16x16xf32>
    tpu.vector_store %arg6[%c0_220, %c8_221, %c0_222, %c0_223], %412 {strides = array<i32>} : memref<1x32x16x16xf32, #tpu.memory_space<vmem>>, vector<1x1x16x16xf32>,
    %c1_224 = arith.constant 1 : index
    %413 = memref.load %arg5[%c1_224] : memref<8xf32, #tpu.memory_space<smem>>
    %c4_225 = arith.constant 4 : index
    %414 = memref.load %arg4[%c4_225] : memref<32xf32, #tpu.memory_space<smem>>
    %415 = vector.broadcast %414 : f32 to vector<16x16xf32>
    %416 = arith.mulf %415, %307 : vector<16x16xf32>
    %417 = vector.broadcast %413 : f32 to vector<16x16xf32>
    %418 = arith.addf %417, %416 : vector<16x16xf32>
    %c5_226 = arith.constant 5 : index
    %419 = memref.load %arg4[%c5_226] : memref<32xf32, #tpu.memory_space<smem>>
    %420 = vector.broadcast %419 : f32 to vector<16x16xf32>
    %421 = arith.mulf %420, %335 : vector<16x16xf32>
    %422 = arith.addf %418, %421 : vector<16x16xf32>
    %c6_227 = arith.constant 6 : index
    %423 = memref.load %arg4[%c6_227] : memref<32xf32, #tpu.memory_space<smem>>
    %424 = vector.broadcast %423 : f32 to vector<16x16xf32>
    %425 = arith.mulf %424, %363 : vector<16x16xf32>
    %426 = arith.addf %422, %425 : vector<16x16xf32>
    %c7_228 = arith.constant 7 : index
    %427 = memref.load %arg4[%c7_228] : memref<32xf32, #tpu.memory_space<smem>>
    %428 = vector.broadcast %427 : f32 to vector<16x16xf32>
    %429 = arith.mulf %428, %391 : vector<16x16xf32>
    %430 = arith.addf %426, %429 : vector<16x16xf32>
    %c0_229 = arith.constant 0 : index
    %c9_230 = arith.constant 9 : index
    %c0_231 = arith.constant 0 : index
    %c0_232 = arith.constant 0 : index
    %431 = vector.load %arg6[%c0_229, %c9_230, %c0_231, %c0_232] : memref<1x32x16x16xf32, #tpu.memory_space<vmem>>, vector<1x1x16x16xf32>
    %432 = vector.shape_cast %431 : vector<1x1x16x16xf32> to vector<16x16xf32>
    %433 = vector.shape_cast %430 : vector<16x16xf32> to vector<1x1x16x16xf32>
    tpu.vector_store %arg6[%c0_229, %c9_230, %c0_231, %c0_232], %433 {strides = array<i32>} : memref<1x32x16x16xf32, #tpu.memory_space<vmem>>, vector<1x1x16x16xf32>,
    %c2_233 = arith.constant 2 : index
    %434 = memref.load %arg5[%c2_233] : memref<8xf32, #tpu.memory_space<smem>>
    %c8_234 = arith.constant 8 : index
    %435 = memref.load %arg4[%c8_234] : memref<32xf32, #tpu.memory_space<smem>>
    %436 = vector.broadcast %435 : f32 to vector<16x16xf32>
    %437 = arith.mulf %436, %307 : vector<16x16xf32>
    %438 = vector.broadcast %434 : f32 to vector<16x16xf32>
    %439 = arith.addf %438, %437 : vector<16x16xf32>
    %c9_235 = arith.constant 9 : index
    %440 = memref.load %arg4[%c9_235] : memref<32xf32, #tpu.memory_space<smem>>
    %441 = vector.broadcast %440 : f32 to vector<16x16xf32>
    %442 = arith.mulf %441, %335 : vector<16x16xf32>
    %443 = arith.addf %439, %442 : vector<16x16xf32>
    %c10_236 = arith.constant 10 : index
    %444 = memref.load %arg4[%c10_236] : memref<32xf32, #tpu.memory_space<smem>>
    %445 = vector.broadcast %444 : f32 to vector<16x16xf32>
    %446 = arith.mulf %445, %363 : vector<16x16xf32>
    %447 = arith.addf %443, %446 : vector<16x16xf32>
    %c11_237 = arith.constant 11 : index
    %448 = memref.load %arg4[%c11_237] : memref<32xf32, #tpu.memory_space<smem>>
    %449 = vector.broadcast %448 : f32 to vector<16x16xf32>
    %450 = arith.mulf %449, %391 : vector<16x16xf32>
    %451 = arith.addf %447, %450 : vector<16x16xf32>
    %c0_238 = arith.constant 0 : index
    %c10_239 = arith.constant 10 : index
    %c0_240 = arith.constant 0 : index
    %c0_241 = arith.constant 0 : index
    %452 = vector.load %arg6[%c0_238, %c10_239, %c0_240, %c0_241] : memref<1x32x16x16xf32, #tpu.memory_space<vmem>>, vector<1x1x16x16xf32>
    %453 = vector.shape_cast %452 : vector<1x1x16x16xf32> to vector<16x16xf32>
    %454 = vector.shape_cast %451 : vector<16x16xf32> to vector<1x1x16x16xf32>
    tpu.vector_store %arg6[%c0_238, %c10_239, %c0_240, %c0_241], %454 {strides = array<i32>} : memref<1x32x16x16xf32, #tpu.memory_space<vmem>>, vector<1x1x16x16xf32>,
    %c3_242 = arith.constant 3 : index
    %455 = memref.load %arg5[%c3_242] : memref<8xf32, #tpu.memory_space<smem>>
    %c12_243 = arith.constant 12 : index
    %456 = memref.load %arg4[%c12_243] : memref<32xf32, #tpu.memory_space<smem>>
    %457 = vector.broadcast %456 : f32 to vector<16x16xf32>
    %458 = arith.mulf %457, %307 : vector<16x16xf32>
    %459 = vector.broadcast %455 : f32 to vector<16x16xf32>
    %460 = arith.addf %459, %458 : vector<16x16xf32>
    %c13_244 = arith.constant 13 : index
    %461 = memref.load %arg4[%c13_244] : memref<32xf32, #tpu.memory_space<smem>>
    %462 = vector.broadcast %461 : f32 to vector<16x16xf32>
    %463 = arith.mulf %462, %335 : vector<16x16xf32>
    %464 = arith.addf %460, %463 : vector<16x16xf32>
    %c14_245 = arith.constant 14 : index
    %465 = memref.load %arg4[%c14_245] : memref<32xf32, #tpu.memory_space<smem>>
    %466 = vector.broadcast %465 : f32 to vector<16x16xf32>
    %467 = arith.mulf %466, %363 : vector<16x16xf32>
    %468 = arith.addf %464, %467 : vector<16x16xf32>
    %c15_246 = arith.constant 15 : index
    %469 = memref.load %arg4[%c15_246] : memref<32xf32, #tpu.memory_space<smem>>
    %470 = vector.broadcast %469 : f32 to vector<16x16xf32>
    %471 = arith.mulf %470, %391 : vector<16x16xf32>
    %472 = arith.addf %468, %471 : vector<16x16xf32>
    %c0_247 = arith.constant 0 : index
    %c11_248 = arith.constant 11 : index
    %c0_249 = arith.constant 0 : index
    %c0_250 = arith.constant 0 : index
    %473 = vector.load %arg6[%c0_247, %c11_248, %c0_249, %c0_250] : memref<1x32x16x16xf32, #tpu.memory_space<vmem>>, vector<1x1x16x16xf32>
    %474 = vector.shape_cast %473 : vector<1x1x16x16xf32> to vector<16x16xf32>
    %475 = vector.shape_cast %472 : vector<16x16xf32> to vector<1x1x16x16xf32>
    tpu.vector_store %arg6[%c0_247, %c11_248, %c0_249, %c0_250], %475 {strides = array<i32>} : memref<1x32x16x16xf32, #tpu.memory_space<vmem>>, vector<1x1x16x16xf32>,
    %c4_251 = arith.constant 4 : index
    %476 = memref.load %arg5[%c4_251] : memref<8xf32, #tpu.memory_space<smem>>
    %c16_252 = arith.constant 16 : index
    %477 = memref.load %arg4[%c16_252] : memref<32xf32, #tpu.memory_space<smem>>
    %478 = vector.broadcast %477 : f32 to vector<16x16xf32>
    %479 = arith.mulf %478, %307 : vector<16x16xf32>
    %480 = vector.broadcast %476 : f32 to vector<16x16xf32>
    %481 = arith.addf %480, %479 : vector<16x16xf32>
    %c17_253 = arith.constant 17 : index
    %482 = memref.load %arg4[%c17_253] : memref<32xf32, #tpu.memory_space<smem>>
    %483 = vector.broadcast %482 : f32 to vector<16x16xf32>
    %484 = arith.mulf %483, %335 : vector<16x16xf32>
    %485 = arith.addf %481, %484 : vector<16x16xf32>
    %c18_254 = arith.constant 18 : index
    %486 = memref.load %arg4[%c18_254] : memref<32xf32, #tpu.memory_space<smem>>
    %487 = vector.broadcast %486 : f32 to vector<16x16xf32>
    %488 = arith.mulf %487, %363 : vector<16x16xf32>
    %489 = arith.addf %485, %488 : vector<16x16xf32>
    %c19_255 = arith.constant 19 : index
    %490 = memref.load %arg4[%c19_255] : memref<32xf32, #tpu.memory_space<smem>>
    %491 = vector.broadcast %490 : f32 to vector<16x16xf32>
    %492 = arith.mulf %491, %391 : vector<16x16xf32>
    %493 = arith.addf %489, %492 : vector<16x16xf32>
    %c0_256 = arith.constant 0 : index
    %c12_257 = arith.constant 12 : index
    %c0_258 = arith.constant 0 : index
    %c0_259 = arith.constant 0 : index
    %494 = vector.load %arg6[%c0_256, %c12_257, %c0_258, %c0_259] : memref<1x32x16x16xf32, #tpu.memory_space<vmem>>, vector<1x1x16x16xf32>
    %495 = vector.shape_cast %494 : vector<1x1x16x16xf32> to vector<16x16xf32>
    %496 = vector.shape_cast %493 : vector<16x16xf32> to vector<1x1x16x16xf32>
    tpu.vector_store %arg6[%c0_256, %c12_257, %c0_258, %c0_259], %496 {strides = array<i32>} : memref<1x32x16x16xf32, #tpu.memory_space<vmem>>, vector<1x1x16x16xf32>,
    %c5_260 = arith.constant 5 : index
    %497 = memref.load %arg5[%c5_260] : memref<8xf32, #tpu.memory_space<smem>>
    %c20_261 = arith.constant 20 : index
    %498 = memref.load %arg4[%c20_261] : memref<32xf32, #tpu.memory_space<smem>>
    %499 = vector.broadcast %498 : f32 to vector<16x16xf32>
    %500 = arith.mulf %499, %307 : vector<16x16xf32>
    %501 = vector.broadcast %497 : f32 to vector<16x16xf32>
    %502 = arith.addf %501, %500 : vector<16x16xf32>
    %c21_262 = arith.constant 21 : index
    %503 = memref.load %arg4[%c21_262] : memref<32xf32, #tpu.memory_space<smem>>
    %504 = vector.broadcast %503 : f32 to vector<16x16xf32>
    %505 = arith.mulf %504, %335 : vector<16x16xf32>
    %506 = arith.addf %502, %505 : vector<16x16xf32>
    %c22_263 = arith.constant 22 : index
    %507 = memref.load %arg4[%c22_263] : memref<32xf32, #tpu.memory_space<smem>>
    %508 = vector.broadcast %507 : f32 to vector<16x16xf32>
    %509 = arith.mulf %508, %363 : vector<16x16xf32>
    %510 = arith.addf %506, %509 : vector<16x16xf32>
    %c23_264 = arith.constant 23 : index
    %511 = memref.load %arg4[%c23_264] : memref<32xf32, #tpu.memory_space<smem>>
    %512 = vector.broadcast %511 : f32 to vector<16x16xf32>
    %513 = arith.mulf %512, %391 : vector<16x16xf32>
    %514 = arith.addf %510, %513 : vector<16x16xf32>
    %c0_265 = arith.constant 0 : index
    %c13_266 = arith.constant 13 : index
    %c0_267 = arith.constant 0 : index
    %c0_268 = arith.constant 0 : index
    %515 = vector.load %arg6[%c0_265, %c13_266, %c0_267, %c0_268] : memref<1x32x16x16xf32, #tpu.memory_space<vmem>>, vector<1x1x16x16xf32>
    %516 = vector.shape_cast %515 : vector<1x1x16x16xf32> to vector<16x16xf32>
    %517 = vector.shape_cast %514 : vector<16x16xf32> to vector<1x1x16x16xf32>
    tpu.vector_store %arg6[%c0_265, %c13_266, %c0_267, %c0_268], %517 {strides = array<i32>} : memref<1x32x16x16xf32, #tpu.memory_space<vmem>>, vector<1x1x16x16xf32>,
    %c6_269 = arith.constant 6 : index
    %518 = memref.load %arg5[%c6_269] : memref<8xf32, #tpu.memory_space<smem>>
    %c24_270 = arith.constant 24 : index
    %519 = memref.load %arg4[%c24_270] : memref<32xf32, #tpu.memory_space<smem>>
    %520 = vector.broadcast %519 : f32 to vector<16x16xf32>
    %521 = arith.mulf %520, %307 : vector<16x16xf32>
    %522 = vector.broadcast %518 : f32 to vector<16x16xf32>
    %523 = arith.addf %522, %521 : vector<16x16xf32>
    %c25_271 = arith.constant 25 : index
    %524 = memref.load %arg4[%c25_271] : memref<32xf32, #tpu.memory_space<smem>>
    %525 = vector.broadcast %524 : f32 to vector<16x16xf32>
    %526 = arith.mulf %525, %335 : vector<16x16xf32>
    %527 = arith.addf %523, %526 : vector<16x16xf32>
    %c26_272 = arith.constant 26 : index
    %528 = memref.load %arg4[%c26_272] : memref<32xf32, #tpu.memory_space<smem>>
    %529 = vector.broadcast %528 : f32 to vector<16x16xf32>
    %530 = arith.mulf %529, %363 : vector<16x16xf32>
    %531 = arith.addf %527, %530 : vector<16x16xf32>
    %c27_273 = arith.constant 27 : index
    %532 = memref.load %arg4[%c27_273] : memref<32xf32, #tpu.memory_space<smem>>
    %533 = vector.broadcast %532 : f32 to vector<16x16xf32>
    %534 = arith.mulf %533, %391 : vector<16x16xf32>
    %535 = arith.addf %531, %534 : vector<16x16xf32>
    %c0_274 = arith.constant 0 : index
    %c14_275 = arith.constant 14 : index
    %c0_276 = arith.constant 0 : index
    %c0_277 = arith.constant 0 : index
    %536 = vector.load %arg6[%c0_274, %c14_275, %c0_276, %c0_277] : memref<1x32x16x16xf32, #tpu.memory_space<vmem>>, vector<1x1x16x16xf32>
    %537 = vector.shape_cast %536 : vector<1x1x16x16xf32> to vector<16x16xf32>
    %538 = vector.shape_cast %535 : vector<16x16xf32> to vector<1x1x16x16xf32>
    tpu.vector_store %arg6[%c0_274, %c14_275, %c0_276, %c0_277], %538 {strides = array<i32>} : memref<1x32x16x16xf32, #tpu.memory_space<vmem>>, vector<1x1x16x16xf32>,
    %c7_278 = arith.constant 7 : index
    %539 = memref.load %arg5[%c7_278] : memref<8xf32, #tpu.memory_space<smem>>
    %c28_279 = arith.constant 28 : index
    %540 = memref.load %arg4[%c28_279] : memref<32xf32, #tpu.memory_space<smem>>
    %541 = vector.broadcast %540 : f32 to vector<16x16xf32>
    %542 = arith.mulf %541, %307 : vector<16x16xf32>
    %543 = vector.broadcast %539 : f32 to vector<16x16xf32>
    %544 = arith.addf %543, %542 : vector<16x16xf32>
    %c29_280 = arith.constant 29 : index
    %545 = memref.load %arg4[%c29_280] : memref<32xf32, #tpu.memory_space<smem>>
    %546 = vector.broadcast %545 : f32 to vector<16x16xf32>
    %547 = arith.mulf %546, %335 : vector<16x16xf32>
    %548 = arith.addf %544, %547 : vector<16x16xf32>
    %c30_281 = arith.constant 30 : index
    %549 = memref.load %arg4[%c30_281] : memref<32xf32, #tpu.memory_space<smem>>
    %550 = vector.broadcast %549 : f32 to vector<16x16xf32>
    %551 = arith.mulf %550, %363 : vector<16x16xf32>
    %552 = arith.addf %548, %551 : vector<16x16xf32>
    %c31_282 = arith.constant 31 : index
    %553 = memref.load %arg4[%c31_282] : memref<32xf32, #tpu.memory_space<smem>>
    %554 = vector.broadcast %553 : f32 to vector<16x16xf32>
    %555 = arith.mulf %554, %391 : vector<16x16xf32>
    %556 = arith.addf %552, %555 : vector<16x16xf32>
    %c0_283 = arith.constant 0 : index
    %c15_284 = arith.constant 15 : index
    %c0_285 = arith.constant 0 : index
    %c0_286 = arith.constant 0 : index
    %557 = vector.load %arg6[%c0_283, %c15_284, %c0_285, %c0_286] : memref<1x32x16x16xf32, #tpu.memory_space<vmem>>, vector<1x1x16x16xf32>
    %558 = vector.shape_cast %557 : vector<1x1x16x16xf32> to vector<16x16xf32>
    %559 = vector.shape_cast %556 : vector<16x16xf32> to vector<1x1x16x16xf32>
    tpu.vector_store %arg6[%c0_283, %c15_284, %c0_285, %c0_286], %559 {strides = array<i32>} : memref<1x32x16x16xf32, #tpu.memory_space<vmem>>, vector<1x1x16x16xf32>,
    %c32 = arith.constant 32 : index
    %560 = memref.load %arg2[%c32] : memref<64xf32, #tpu.memory_space<smem>>
    %c0_287 = arith.constant 0 : index
    %c0_288 = arith.constant 0 : index
    %c1_289 = arith.constant 1 : index
    %c0_290 = arith.constant 0 : index
    %561 = vector.load %arg1[%c0_287, %c0_288, %c1_289, %c0_290] : memref<1x4x18x18xf32, #tpu.memory_space<vmem>>, vector<1x1x16x16xf32>
    %562 = vector.shape_cast %561 : vector<1x1x16x16xf32> to vector<16x16xf32>
    %563 = vector.broadcast %560 : f32 to vector<16x16xf32>
    %564 = arith.mulf %563, %562 : vector<16x16xf32>
    %c36 = arith.constant 36 : index
    %565 = memref.load %arg2[%c36] : memref<64xf32, #tpu.memory_space<smem>>
    %c0_291 = arith.constant 0 : index
    %c0_292 = arith.constant 0 : index
    %c1_293 = arith.constant 1 : index
    %c1_294 = arith.constant 1 : index
    %566 = vector.load %arg1[%c0_291, %c0_292, %c1_293, %c1_294] : memref<1x4x18x18xf32, #tpu.memory_space<vmem>>, vector<1x1x16x16xf32>
    %567 = vector.shape_cast %566 : vector<1x1x16x16xf32> to vector<16x16xf32>
    %568 = vector.broadcast %565 : f32 to vector<16x16xf32>
    %569 = arith.mulf %568, %567 : vector<16x16xf32>
    %570 = arith.addf %564, %569 : vector<16x16xf32>
    %c40 = arith.constant 40 : index
    %571 = memref.load %arg2[%c40] : memref<64xf32, #tpu.memory_space<smem>>
    %c0_295 = arith.constant 0 : index
    %c0_296 = arith.constant 0 : index
    %c2_297 = arith.constant 2 : index
    %c0_298 = arith.constant 0 : index
    %572 = vector.load %arg1[%c0_295, %c0_296, %c2_297, %c0_298] : memref<1x4x18x18xf32, #tpu.memory_space<vmem>>, vector<1x1x16x16xf32>
    %573 = vector.shape_cast %572 : vector<1x1x16x16xf32> to vector<16x16xf32>
    %574 = vector.broadcast %571 : f32 to vector<16x16xf32>
    %575 = arith.mulf %574, %573 : vector<16x16xf32>
    %576 = arith.addf %570, %575 : vector<16x16xf32>
    %c44 = arith.constant 44 : index
    %577 = memref.load %arg2[%c44] : memref<64xf32, #tpu.memory_space<smem>>
    %c0_299 = arith.constant 0 : index
    %c0_300 = arith.constant 0 : index
    %c2_301 = arith.constant 2 : index
    %c1_302 = arith.constant 1 : index
    %578 = vector.load %arg1[%c0_299, %c0_300, %c2_301, %c1_302] : memref<1x4x18x18xf32, #tpu.memory_space<vmem>>, vector<1x1x16x16xf32>
    %579 = vector.shape_cast %578 : vector<1x1x16x16xf32> to vector<16x16xf32>
    %580 = vector.broadcast %577 : f32 to vector<16x16xf32>
    %581 = arith.mulf %580, %579 : vector<16x16xf32>
    %582 = arith.addf %576, %581 : vector<16x16xf32>
    %c0_303 = arith.constant 0 : index
    %583 = memref.load %arg3[%c0_303] : memref<4xf32, #tpu.memory_space<smem>>
    %584 = vector.broadcast %583 : f32 to vector<16x16xf32>
    %585 = arith.addf %582, %584 : vector<16x16xf32>
    %cst_304 = arith.constant 0.000000e+00 : f32
    %586 = vector.broadcast %cst_304 : f32 to vector<16x16xf32>
    %587 = arith.maximumf %585, %586 : vector<16x16xf32>
    %c33 = arith.constant 33 : index
    %588 = memref.load %arg2[%c33] : memref<64xf32, #tpu.memory_space<smem>>
    %c0_305 = arith.constant 0 : index
    %c1_306 = arith.constant 1 : index
    %c1_307 = arith.constant 1 : index
    %c0_308 = arith.constant 0 : index
    %589 = vector.load %arg1[%c0_305, %c1_306, %c1_307, %c0_308] : memref<1x4x18x18xf32, #tpu.memory_space<vmem>>, vector<1x1x16x16xf32>
    %590 = vector.shape_cast %589 : vector<1x1x16x16xf32> to vector<16x16xf32>
    %591 = vector.broadcast %588 : f32 to vector<16x16xf32>
    %592 = arith.mulf %591, %590 : vector<16x16xf32>
    %c37 = arith.constant 37 : index
    %593 = memref.load %arg2[%c37] : memref<64xf32, #tpu.memory_space<smem>>
    %c0_309 = arith.constant 0 : index
    %c1_310 = arith.constant 1 : index
    %c1_311 = arith.constant 1 : index
    %c1_312 = arith.constant 1 : index
    %594 = vector.load %arg1[%c0_309, %c1_310, %c1_311, %c1_312] : memref<1x4x18x18xf32, #tpu.memory_space<vmem>>, vector<1x1x16x16xf32>
    %595 = vector.shape_cast %594 : vector<1x1x16x16xf32> to vector<16x16xf32>
    %596 = vector.broadcast %593 : f32 to vector<16x16xf32>
    %597 = arith.mulf %596, %595 : vector<16x16xf32>
    %598 = arith.addf %592, %597 : vector<16x16xf32>
    %c41 = arith.constant 41 : index
    %599 = memref.load %arg2[%c41] : memref<64xf32, #tpu.memory_space<smem>>
    %c0_313 = arith.constant 0 : index
    %c1_314 = arith.constant 1 : index
    %c2_315 = arith.constant 2 : index
    %c0_316 = arith.constant 0 : index
    %600 = vector.load %arg1[%c0_313, %c1_314, %c2_315, %c0_316] : memref<1x4x18x18xf32, #tpu.memory_space<vmem>>, vector<1x1x16x16xf32>
    %601 = vector.shape_cast %600 : vector<1x1x16x16xf32> to vector<16x16xf32>
    %602 = vector.broadcast %599 : f32 to vector<16x16xf32>
    %603 = arith.mulf %602, %601 : vector<16x16xf32>
    %604 = arith.addf %598, %603 : vector<16x16xf32>
    %c45 = arith.constant 45 : index
    %605 = memref.load %arg2[%c45] : memref<64xf32, #tpu.memory_space<smem>>
    %c0_317 = arith.constant 0 : index
    %c1_318 = arith.constant 1 : index
    %c2_319 = arith.constant 2 : index
    %c1_320 = arith.constant 1 : index
    %606 = vector.load %arg1[%c0_317, %c1_318, %c2_319, %c1_320] : memref<1x4x18x18xf32, #tpu.memory_space<vmem>>, vector<1x1x16x16xf32>
    %607 = vector.shape_cast %606 : vector<1x1x16x16xf32> to vector<16x16xf32>
    %608 = vector.broadcast %605 : f32 to vector<16x16xf32>
    %609 = arith.mulf %608, %607 : vector<16x16xf32>
    %610 = arith.addf %604, %609 : vector<16x16xf32>
    %c1_321 = arith.constant 1 : index
    %611 = memref.load %arg3[%c1_321] : memref<4xf32, #tpu.memory_space<smem>>
    %612 = vector.broadcast %611 : f32 to vector<16x16xf32>
    %613 = arith.addf %610, %612 : vector<16x16xf32>
    %cst_322 = arith.constant 0.000000e+00 : f32
    %614 = vector.broadcast %cst_322 : f32 to vector<16x16xf32>
    %615 = arith.maximumf %613, %614 : vector<16x16xf32>
    %c34 = arith.constant 34 : index
    %616 = memref.load %arg2[%c34] : memref<64xf32, #tpu.memory_space<smem>>
    %c0_323 = arith.constant 0 : index
    %c2_324 = arith.constant 2 : index
    %c1_325 = arith.constant 1 : index
    %c0_326 = arith.constant 0 : index
    %617 = vector.load %arg1[%c0_323, %c2_324, %c1_325, %c0_326] : memref<1x4x18x18xf32, #tpu.memory_space<vmem>>, vector<1x1x16x16xf32>
    %618 = vector.shape_cast %617 : vector<1x1x16x16xf32> to vector<16x16xf32>
    %619 = vector.broadcast %616 : f32 to vector<16x16xf32>
    %620 = arith.mulf %619, %618 : vector<16x16xf32>
    %c38 = arith.constant 38 : index
    %621 = memref.load %arg2[%c38] : memref<64xf32, #tpu.memory_space<smem>>
    %c0_327 = arith.constant 0 : index
    %c2_328 = arith.constant 2 : index
    %c1_329 = arith.constant 1 : index
    %c1_330 = arith.constant 1 : index
    %622 = vector.load %arg1[%c0_327, %c2_328, %c1_329, %c1_330] : memref<1x4x18x18xf32, #tpu.memory_space<vmem>>, vector<1x1x16x16xf32>
    %623 = vector.shape_cast %622 : vector<1x1x16x16xf32> to vector<16x16xf32>
    %624 = vector.broadcast %621 : f32 to vector<16x16xf32>
    %625 = arith.mulf %624, %623 : vector<16x16xf32>
    %626 = arith.addf %620, %625 : vector<16x16xf32>
    %c42 = arith.constant 42 : index
    %627 = memref.load %arg2[%c42] : memref<64xf32, #tpu.memory_space<smem>>
    %c0_331 = arith.constant 0 : index
    %c2_332 = arith.constant 2 : index
    %c2_333 = arith.constant 2 : index
    %c0_334 = arith.constant 0 : index
    %628 = vector.load %arg1[%c0_331, %c2_332, %c2_333, %c0_334] : memref<1x4x18x18xf32, #tpu.memory_space<vmem>>, vector<1x1x16x16xf32>
    %629 = vector.shape_cast %628 : vector<1x1x16x16xf32> to vector<16x16xf32>
    %630 = vector.broadcast %627 : f32 to vector<16x16xf32>
    %631 = arith.mulf %630, %629 : vector<16x16xf32>
    %632 = arith.addf %626, %631 : vector<16x16xf32>
    %c46 = arith.constant 46 : index
    %633 = memref.load %arg2[%c46] : memref<64xf32, #tpu.memory_space<smem>>
    %c0_335 = arith.constant 0 : index
    %c2_336 = arith.constant 2 : index
    %c2_337 = arith.constant 2 : index
    %c1_338 = arith.constant 1 : index
    %634 = vector.load %arg1[%c0_335, %c2_336, %c2_337, %c1_338] : memref<1x4x18x18xf32, #tpu.memory_space<vmem>>, vector<1x1x16x16xf32>
    %635 = vector.shape_cast %634 : vector<1x1x16x16xf32> to vector<16x16xf32>
    %636 = vector.broadcast %633 : f32 to vector<16x16xf32>
    %637 = arith.mulf %636, %635 : vector<16x16xf32>
    %638 = arith.addf %632, %637 : vector<16x16xf32>
    %c2_339 = arith.constant 2 : index
    %639 = memref.load %arg3[%c2_339] : memref<4xf32, #tpu.memory_space<smem>>
    %640 = vector.broadcast %639 : f32 to vector<16x16xf32>
    %641 = arith.addf %638, %640 : vector<16x16xf32>
    %cst_340 = arith.constant 0.000000e+00 : f32
    %642 = vector.broadcast %cst_340 : f32 to vector<16x16xf32>
    %643 = arith.maximumf %641, %642 : vector<16x16xf32>
    %c35 = arith.constant 35 : index
    %644 = memref.load %arg2[%c35] : memref<64xf32, #tpu.memory_space<smem>>
    %c0_341 = arith.constant 0 : index
    %c3_342 = arith.constant 3 : index
    %c1_343 = arith.constant 1 : index
    %c0_344 = arith.constant 0 : index
    %645 = vector.load %arg1[%c0_341, %c3_342, %c1_343, %c0_344] : memref<1x4x18x18xf32, #tpu.memory_space<vmem>>, vector<1x1x16x16xf32>
    %646 = vector.shape_cast %645 : vector<1x1x16x16xf32> to vector<16x16xf32>
    %647 = vector.broadcast %644 : f32 to vector<16x16xf32>
    %648 = arith.mulf %647, %646 : vector<16x16xf32>
    %c39 = arith.constant 39 : index
    %649 = memref.load %arg2[%c39] : memref<64xf32, #tpu.memory_space<smem>>
    %c0_345 = arith.constant 0 : index
    %c3_346 = arith.constant 3 : index
    %c1_347 = arith.constant 1 : index
    %c1_348 = arith.constant 1 : index
    %650 = vector.load %arg1[%c0_345, %c3_346, %c1_347, %c1_348] : memref<1x4x18x18xf32, #tpu.memory_space<vmem>>, vector<1x1x16x16xf32>
    %651 = vector.shape_cast %650 : vector<1x1x16x16xf32> to vector<16x16xf32>
    %652 = vector.broadcast %649 : f32 to vector<16x16xf32>
    %653 = arith.mulf %652, %651 : vector<16x16xf32>
    %654 = arith.addf %648, %653 : vector<16x16xf32>
    %c43 = arith.constant 43 : index
    %655 = memref.load %arg2[%c43] : memref<64xf32, #tpu.memory_space<smem>>
    %c0_349 = arith.constant 0 : index
    %c3_350 = arith.constant 3 : index
    %c2_351 = arith.constant 2 : index
    %c0_352 = arith.constant 0 : index
    %656 = vector.load %arg1[%c0_349, %c3_350, %c2_351, %c0_352] : memref<1x4x18x18xf32, #tpu.memory_space<vmem>>, vector<1x1x16x16xf32>
    %657 = vector.shape_cast %656 : vector<1x1x16x16xf32> to vector<16x16xf32>
    %658 = vector.broadcast %655 : f32 to vector<16x16xf32>
    %659 = arith.mulf %658, %657 : vector<16x16xf32>
    %660 = arith.addf %654, %659 : vector<16x16xf32>
    %c47 = arith.constant 47 : index
    %661 = memref.load %arg2[%c47] : memref<64xf32, #tpu.memory_space<smem>>
    %c0_353 = arith.constant 0 : index
    %c3_354 = arith.constant 3 : index
    %c2_355 = arith.constant 2 : index
    %c1_356 = arith.constant 1 : index
    %662 = vector.load %arg1[%c0_353, %c3_354, %c2_355, %c1_356] : memref<1x4x18x18xf32, #tpu.memory_space<vmem>>, vector<1x1x16x16xf32>
    %663 = vector.shape_cast %662 : vector<1x1x16x16xf32> to vector<16x16xf32>
    %664 = vector.broadcast %661 : f32 to vector<16x16xf32>
    %665 = arith.mulf %664, %663 : vector<16x16xf32>
    %666 = arith.addf %660, %665 : vector<16x16xf32>
    %c3_357 = arith.constant 3 : index
    %667 = memref.load %arg3[%c3_357] : memref<4xf32, #tpu.memory_space<smem>>
    %668 = vector.broadcast %667 : f32 to vector<16x16xf32>
    %669 = arith.addf %666, %668 : vector<16x16xf32>
    %cst_358 = arith.constant 0.000000e+00 : f32
    %670 = vector.broadcast %cst_358 : f32 to vector<16x16xf32>
    %671 = arith.maximumf %669, %670 : vector<16x16xf32>
    %c0_359 = arith.constant 0 : index
    %672 = memref.load %arg5[%c0_359] : memref<8xf32, #tpu.memory_space<smem>>
    %c0_360 = arith.constant 0 : index
    %673 = memref.load %arg4[%c0_360] : memref<32xf32, #tpu.memory_space<smem>>
    %674 = vector.broadcast %673 : f32 to vector<16x16xf32>
    %675 = arith.mulf %674, %587 : vector<16x16xf32>
    %676 = vector.broadcast %672 : f32 to vector<16x16xf32>
    %677 = arith.addf %676, %675 : vector<16x16xf32>
    %c1_361 = arith.constant 1 : index
    %678 = memref.load %arg4[%c1_361] : memref<32xf32, #tpu.memory_space<smem>>
    %679 = vector.broadcast %678 : f32 to vector<16x16xf32>
    %680 = arith.mulf %679, %615 : vector<16x16xf32>
    %681 = arith.addf %677, %680 : vector<16x16xf32>
    %c2_362 = arith.constant 2 : index
    %682 = memref.load %arg4[%c2_362] : memref<32xf32, #tpu.memory_space<smem>>
    %683 = vector.broadcast %682 : f32 to vector<16x16xf32>
    %684 = arith.mulf %683, %643 : vector<16x16xf32>
    %685 = arith.addf %681, %684 : vector<16x16xf32>
    %c3_363 = arith.constant 3 : index
    %686 = memref.load %arg4[%c3_363] : memref<32xf32, #tpu.memory_space<smem>>
    %687 = vector.broadcast %686 : f32 to vector<16x16xf32>
    %688 = arith.mulf %687, %671 : vector<16x16xf32>
    %689 = arith.addf %685, %688 : vector<16x16xf32>
    %c0_364 = arith.constant 0 : index
    %c16_365 = arith.constant 16 : index
    %c0_366 = arith.constant 0 : index
    %c0_367 = arith.constant 0 : index
    %690 = vector.load %arg6[%c0_364, %c16_365, %c0_366, %c0_367] : memref<1x32x16x16xf32, #tpu.memory_space<vmem>>, vector<1x1x16x16xf32>
    %691 = vector.shape_cast %690 : vector<1x1x16x16xf32> to vector<16x16xf32>
    %692 = vector.shape_cast %689 : vector<16x16xf32> to vector<1x1x16x16xf32>
    tpu.vector_store %arg6[%c0_364, %c16_365, %c0_366, %c0_367], %692 {strides = array<i32>} : memref<1x32x16x16xf32, #tpu.memory_space<vmem>>, vector<1x1x16x16xf32>,
    %c1_368 = arith.constant 1 : index
    %693 = memref.load %arg5[%c1_368] : memref<8xf32, #tpu.memory_space<smem>>
    %c4_369 = arith.constant 4 : index
    %694 = memref.load %arg4[%c4_369] : memref<32xf32, #tpu.memory_space<smem>>
    %695 = vector.broadcast %694 : f32 to vector<16x16xf32>
    %696 = arith.mulf %695, %587 : vector<16x16xf32>
    %697 = vector.broadcast %693 : f32 to vector<16x16xf32>
    %698 = arith.addf %697, %696 : vector<16x16xf32>
    %c5_370 = arith.constant 5 : index
    %699 = memref.load %arg4[%c5_370] : memref<32xf32, #tpu.memory_space<smem>>
    %700 = vector.broadcast %699 : f32 to vector<16x16xf32>
    %701 = arith.mulf %700, %615 : vector<16x16xf32>
    %702 = arith.addf %698, %701 : vector<16x16xf32>
    %c6_371 = arith.constant 6 : index
    %703 = memref.load %arg4[%c6_371] : memref<32xf32, #tpu.memory_space<smem>>
    %704 = vector.broadcast %703 : f32 to vector<16x16xf32>
    %705 = arith.mulf %704, %643 : vector<16x16xf32>
    %706 = arith.addf %702, %705 : vector<16x16xf32>
    %c7_372 = arith.constant 7 : index
    %707 = memref.load %arg4[%c7_372] : memref<32xf32, #tpu.memory_space<smem>>
    %708 = vector.broadcast %707 : f32 to vector<16x16xf32>
    %709 = arith.mulf %708, %671 : vector<16x16xf32>
    %710 = arith.addf %706, %709 : vector<16x16xf32>
    %c0_373 = arith.constant 0 : index
    %c17_374 = arith.constant 17 : index
    %c0_375 = arith.constant 0 : index
    %c0_376 = arith.constant 0 : index
    %711 = vector.load %arg6[%c0_373, %c17_374, %c0_375, %c0_376] : memref<1x32x16x16xf32, #tpu.memory_space<vmem>>, vector<1x1x16x16xf32>
    %712 = vector.shape_cast %711 : vector<1x1x16x16xf32> to vector<16x16xf32>
    %713 = vector.shape_cast %710 : vector<16x16xf32> to vector<1x1x16x16xf32>
    tpu.vector_store %arg6[%c0_373, %c17_374, %c0_375, %c0_376], %713 {strides = array<i32>} : memref<1x32x16x16xf32, #tpu.memory_space<vmem>>, vector<1x1x16x16xf32>,
    %c2_377 = arith.constant 2 : index
    %714 = memref.load %arg5[%c2_377] : memref<8xf32, #tpu.memory_space<smem>>
    %c8_378 = arith.constant 8 : index
    %715 = memref.load %arg4[%c8_378] : memref<32xf32, #tpu.memory_space<smem>>
    %716 = vector.broadcast %715 : f32 to vector<16x16xf32>
    %717 = arith.mulf %716, %587 : vector<16x16xf32>
    %718 = vector.broadcast %714 : f32 to vector<16x16xf32>
    %719 = arith.addf %718, %717 : vector<16x16xf32>
    %c9_379 = arith.constant 9 : index
    %720 = memref.load %arg4[%c9_379] : memref<32xf32, #tpu.memory_space<smem>>
    %721 = vector.broadcast %720 : f32 to vector<16x16xf32>
    %722 = arith.mulf %721, %615 : vector<16x16xf32>
    %723 = arith.addf %719, %722 : vector<16x16xf32>
    %c10_380 = arith.constant 10 : index
    %724 = memref.load %arg4[%c10_380] : memref<32xf32, #tpu.memory_space<smem>>
    %725 = vector.broadcast %724 : f32 to vector<16x16xf32>
    %726 = arith.mulf %725, %643 : vector<16x16xf32>
    %727 = arith.addf %723, %726 : vector<16x16xf32>
    %c11_381 = arith.constant 11 : index
    %728 = memref.load %arg4[%c11_381] : memref<32xf32, #tpu.memory_space<smem>>
    %729 = vector.broadcast %728 : f32 to vector<16x16xf32>
    %730 = arith.mulf %729, %671 : vector<16x16xf32>
    %731 = arith.addf %727, %730 : vector<16x16xf32>
    %c0_382 = arith.constant 0 : index
    %c18_383 = arith.constant 18 : index
    %c0_384 = arith.constant 0 : index
    %c0_385 = arith.constant 0 : index
    %732 = vector.load %arg6[%c0_382, %c18_383, %c0_384, %c0_385] : memref<1x32x16x16xf32, #tpu.memory_space<vmem>>, vector<1x1x16x16xf32>
    %733 = vector.shape_cast %732 : vector<1x1x16x16xf32> to vector<16x16xf32>
    %734 = vector.shape_cast %731 : vector<16x16xf32> to vector<1x1x16x16xf32>
    tpu.vector_store %arg6[%c0_382, %c18_383, %c0_384, %c0_385], %734 {strides = array<i32>} : memref<1x32x16x16xf32, #tpu.memory_space<vmem>>, vector<1x1x16x16xf32>,
    %c3_386 = arith.constant 3 : index
    %735 = memref.load %arg5[%c3_386] : memref<8xf32, #tpu.memory_space<smem>>
    %c12_387 = arith.constant 12 : index
    %736 = memref.load %arg4[%c12_387] : memref<32xf32, #tpu.memory_space<smem>>
    %737 = vector.broadcast %736 : f32 to vector<16x16xf32>
    %738 = arith.mulf %737, %587 : vector<16x16xf32>
    %739 = vector.broadcast %735 : f32 to vector<16x16xf32>
    %740 = arith.addf %739, %738 : vector<16x16xf32>
    %c13_388 = arith.constant 13 : index
    %741 = memref.load %arg4[%c13_388] : memref<32xf32, #tpu.memory_space<smem>>
    %742 = vector.broadcast %741 : f32 to vector<16x16xf32>
    %743 = arith.mulf %742, %615 : vector<16x16xf32>
    %744 = arith.addf %740, %743 : vector<16x16xf32>
    %c14_389 = arith.constant 14 : index
    %745 = memref.load %arg4[%c14_389] : memref<32xf32, #tpu.memory_space<smem>>
    %746 = vector.broadcast %745 : f32 to vector<16x16xf32>
    %747 = arith.mulf %746, %643 : vector<16x16xf32>
    %748 = arith.addf %744, %747 : vector<16x16xf32>
    %c15_390 = arith.constant 15 : index
    %749 = memref.load %arg4[%c15_390] : memref<32xf32, #tpu.memory_space<smem>>
    %750 = vector.broadcast %749 : f32 to vector<16x16xf32>
    %751 = arith.mulf %750, %671 : vector<16x16xf32>
    %752 = arith.addf %748, %751 : vector<16x16xf32>
    %c0_391 = arith.constant 0 : index
    %c19_392 = arith.constant 19 : index
    %c0_393 = arith.constant 0 : index
    %c0_394 = arith.constant 0 : index
    %753 = vector.load %arg6[%c0_391, %c19_392, %c0_393, %c0_394] : memref<1x32x16x16xf32, #tpu.memory_space<vmem>>, vector<1x1x16x16xf32>
    %754 = vector.shape_cast %753 : vector<1x1x16x16xf32> to vector<16x16xf32>
    %755 = vector.shape_cast %752 : vector<16x16xf32> to vector<1x1x16x16xf32>
    tpu.vector_store %arg6[%c0_391, %c19_392, %c0_393, %c0_394], %755 {strides = array<i32>} : memref<1x32x16x16xf32, #tpu.memory_space<vmem>>, vector<1x1x16x16xf32>,
    %c4_395 = arith.constant 4 : index
    %756 = memref.load %arg5[%c4_395] : memref<8xf32, #tpu.memory_space<smem>>
    %c16_396 = arith.constant 16 : index
    %757 = memref.load %arg4[%c16_396] : memref<32xf32, #tpu.memory_space<smem>>
    %758 = vector.broadcast %757 : f32 to vector<16x16xf32>
    %759 = arith.mulf %758, %587 : vector<16x16xf32>
    %760 = vector.broadcast %756 : f32 to vector<16x16xf32>
    %761 = arith.addf %760, %759 : vector<16x16xf32>
    %c17_397 = arith.constant 17 : index
    %762 = memref.load %arg4[%c17_397] : memref<32xf32, #tpu.memory_space<smem>>
    %763 = vector.broadcast %762 : f32 to vector<16x16xf32>
    %764 = arith.mulf %763, %615 : vector<16x16xf32>
    %765 = arith.addf %761, %764 : vector<16x16xf32>
    %c18_398 = arith.constant 18 : index
    %766 = memref.load %arg4[%c18_398] : memref<32xf32, #tpu.memory_space<smem>>
    %767 = vector.broadcast %766 : f32 to vector<16x16xf32>
    %768 = arith.mulf %767, %643 : vector<16x16xf32>
    %769 = arith.addf %765, %768 : vector<16x16xf32>
    %c19_399 = arith.constant 19 : index
    %770 = memref.load %arg4[%c19_399] : memref<32xf32, #tpu.memory_space<smem>>
    %771 = vector.broadcast %770 : f32 to vector<16x16xf32>
    %772 = arith.mulf %771, %671 : vector<16x16xf32>
    %773 = arith.addf %769, %772 : vector<16x16xf32>
    %c0_400 = arith.constant 0 : index
    %c20_401 = arith.constant 20 : index
    %c0_402 = arith.constant 0 : index
    %c0_403 = arith.constant 0 : index
    %774 = vector.load %arg6[%c0_400, %c20_401, %c0_402, %c0_403] : memref<1x32x16x16xf32, #tpu.memory_space<vmem>>, vector<1x1x16x16xf32>
    %775 = vector.shape_cast %774 : vector<1x1x16x16xf32> to vector<16x16xf32>
    %776 = vector.shape_cast %773 : vector<16x16xf32> to vector<1x1x16x16xf32>
    tpu.vector_store %arg6[%c0_400, %c20_401, %c0_402, %c0_403], %776 {strides = array<i32>} : memref<1x32x16x16xf32, #tpu.memory_space<vmem>>, vector<1x1x16x16xf32>,
    %c5_404 = arith.constant 5 : index
    %777 = memref.load %arg5[%c5_404] : memref<8xf32, #tpu.memory_space<smem>>
    %c20_405 = arith.constant 20 : index
    %778 = memref.load %arg4[%c20_405] : memref<32xf32, #tpu.memory_space<smem>>
    %779 = vector.broadcast %778 : f32 to vector<16x16xf32>
    %780 = arith.mulf %779, %587 : vector<16x16xf32>
    %781 = vector.broadcast %777 : f32 to vector<16x16xf32>
    %782 = arith.addf %781, %780 : vector<16x16xf32>
    %c21_406 = arith.constant 21 : index
    %783 = memref.load %arg4[%c21_406] : memref<32xf32, #tpu.memory_space<smem>>
    %784 = vector.broadcast %783 : f32 to vector<16x16xf32>
    %785 = arith.mulf %784, %615 : vector<16x16xf32>
    %786 = arith.addf %782, %785 : vector<16x16xf32>
    %c22_407 = arith.constant 22 : index
    %787 = memref.load %arg4[%c22_407] : memref<32xf32, #tpu.memory_space<smem>>
    %788 = vector.broadcast %787 : f32 to vector<16x16xf32>
    %789 = arith.mulf %788, %643 : vector<16x16xf32>
    %790 = arith.addf %786, %789 : vector<16x16xf32>
    %c23_408 = arith.constant 23 : index
    %791 = memref.load %arg4[%c23_408] : memref<32xf32, #tpu.memory_space<smem>>
    %792 = vector.broadcast %791 : f32 to vector<16x16xf32>
    %793 = arith.mulf %792, %671 : vector<16x16xf32>
    %794 = arith.addf %790, %793 : vector<16x16xf32>
    %c0_409 = arith.constant 0 : index
    %c21_410 = arith.constant 21 : index
    %c0_411 = arith.constant 0 : index
    %c0_412 = arith.constant 0 : index
    %795 = vector.load %arg6[%c0_409, %c21_410, %c0_411, %c0_412] : memref<1x32x16x16xf32, #tpu.memory_space<vmem>>, vector<1x1x16x16xf32>
    %796 = vector.shape_cast %795 : vector<1x1x16x16xf32> to vector<16x16xf32>
    %797 = vector.shape_cast %794 : vector<16x16xf32> to vector<1x1x16x16xf32>
    tpu.vector_store %arg6[%c0_409, %c21_410, %c0_411, %c0_412], %797 {strides = array<i32>} : memref<1x32x16x16xf32, #tpu.memory_space<vmem>>, vector<1x1x16x16xf32>,
    %c6_413 = arith.constant 6 : index
    %798 = memref.load %arg5[%c6_413] : memref<8xf32, #tpu.memory_space<smem>>
    %c24_414 = arith.constant 24 : index
    %799 = memref.load %arg4[%c24_414] : memref<32xf32, #tpu.memory_space<smem>>
    %800 = vector.broadcast %799 : f32 to vector<16x16xf32>
    %801 = arith.mulf %800, %587 : vector<16x16xf32>
    %802 = vector.broadcast %798 : f32 to vector<16x16xf32>
    %803 = arith.addf %802, %801 : vector<16x16xf32>
    %c25_415 = arith.constant 25 : index
    %804 = memref.load %arg4[%c25_415] : memref<32xf32, #tpu.memory_space<smem>>
    %805 = vector.broadcast %804 : f32 to vector<16x16xf32>
    %806 = arith.mulf %805, %615 : vector<16x16xf32>
    %807 = arith.addf %803, %806 : vector<16x16xf32>
    %c26_416 = arith.constant 26 : index
    %808 = memref.load %arg4[%c26_416] : memref<32xf32, #tpu.memory_space<smem>>
    %809 = vector.broadcast %808 : f32 to vector<16x16xf32>
    %810 = arith.mulf %809, %643 : vector<16x16xf32>
    %811 = arith.addf %807, %810 : vector<16x16xf32>
    %c27_417 = arith.constant 27 : index
    %812 = memref.load %arg4[%c27_417] : memref<32xf32, #tpu.memory_space<smem>>
    %813 = vector.broadcast %812 : f32 to vector<16x16xf32>
    %814 = arith.mulf %813, %671 : vector<16x16xf32>
    %815 = arith.addf %811, %814 : vector<16x16xf32>
    %c0_418 = arith.constant 0 : index
    %c22_419 = arith.constant 22 : index
    %c0_420 = arith.constant 0 : index
    %c0_421 = arith.constant 0 : index
    %816 = vector.load %arg6[%c0_418, %c22_419, %c0_420, %c0_421] : memref<1x32x16x16xf32, #tpu.memory_space<vmem>>, vector<1x1x16x16xf32>
    %817 = vector.shape_cast %816 : vector<1x1x16x16xf32> to vector<16x16xf32>
    %818 = vector.shape_cast %815 : vector<16x16xf32> to vector<1x1x16x16xf32>
    tpu.vector_store %arg6[%c0_418, %c22_419, %c0_420, %c0_421], %818 {strides = array<i32>} : memref<1x32x16x16xf32, #tpu.memory_space<vmem>>, vector<1x1x16x16xf32>,
    %c7_422 = arith.constant 7 : index
    %819 = memref.load %arg5[%c7_422] : memref<8xf32, #tpu.memory_space<smem>>
    %c28_423 = arith.constant 28 : index
    %820 = memref.load %arg4[%c28_423] : memref<32xf32, #tpu.memory_space<smem>>
    %821 = vector.broadcast %820 : f32 to vector<16x16xf32>
    %822 = arith.mulf %821, %587 : vector<16x16xf32>
    %823 = vector.broadcast %819 : f32 to vector<16x16xf32>
    %824 = arith.addf %823, %822 : vector<16x16xf32>
    %c29_424 = arith.constant 29 : index
    %825 = memref.load %arg4[%c29_424] : memref<32xf32, #tpu.memory_space<smem>>
    %826 = vector.broadcast %825 : f32 to vector<16x16xf32>
    %827 = arith.mulf %826, %615 : vector<16x16xf32>
    %828 = arith.addf %824, %827 : vector<16x16xf32>
    %c30_425 = arith.constant 30 : index
    %829 = memref.load %arg4[%c30_425] : memref<32xf32, #tpu.memory_space<smem>>
    %830 = vector.broadcast %829 : f32 to vector<16x16xf32>
    %831 = arith.mulf %830, %643 : vector<16x16xf32>
    %832 = arith.addf %828, %831 : vector<16x16xf32>
    %c31_426 = arith.constant 31 : index
    %833 = memref.load %arg4[%c31_426] : memref<32xf32, #tpu.memory_space<smem>>
    %834 = vector.broadcast %833 : f32 to vector<16x16xf32>
    %835 = arith.mulf %834, %671 : vector<16x16xf32>
    %836 = arith.addf %832, %835 : vector<16x16xf32>
    %c0_427 = arith.constant 0 : index
    %c23_428 = arith.constant 23 : index
    %c0_429 = arith.constant 0 : index
    %c0_430 = arith.constant 0 : index
    %837 = vector.load %arg6[%c0_427, %c23_428, %c0_429, %c0_430] : memref<1x32x16x16xf32, #tpu.memory_space<vmem>>, vector<1x1x16x16xf32>
    %838 = vector.shape_cast %837 : vector<1x1x16x16xf32> to vector<16x16xf32>
    %839 = vector.shape_cast %836 : vector<16x16xf32> to vector<1x1x16x16xf32>
    tpu.vector_store %arg6[%c0_427, %c23_428, %c0_429, %c0_430], %839 {strides = array<i32>} : memref<1x32x16x16xf32, #tpu.memory_space<vmem>>, vector<1x1x16x16xf32>,
    %c48 = arith.constant 48 : index
    %840 = memref.load %arg2[%c48] : memref<64xf32, #tpu.memory_space<smem>>
    %c0_431 = arith.constant 0 : index
    %c0_432 = arith.constant 0 : index
    %c1_433 = arith.constant 1 : index
    %c1_434 = arith.constant 1 : index
    %841 = vector.load %arg1[%c0_431, %c0_432, %c1_433, %c1_434] : memref<1x4x18x18xf32, #tpu.memory_space<vmem>>, vector<1x1x16x16xf32>
    %842 = vector.shape_cast %841 : vector<1x1x16x16xf32> to vector<16x16xf32>
    %843 = vector.broadcast %840 : f32 to vector<16x16xf32>
    %844 = arith.mulf %843, %842 : vector<16x16xf32>
    %c52 = arith.constant 52 : index
    %845 = memref.load %arg2[%c52] : memref<64xf32, #tpu.memory_space<smem>>
    %c0_435 = arith.constant 0 : index
    %c0_436 = arith.constant 0 : index
    %c1_437 = arith.constant 1 : index
    %c2_438 = arith.constant 2 : index
    %846 = vector.load %arg1[%c0_435, %c0_436, %c1_437, %c2_438] : memref<1x4x18x18xf32, #tpu.memory_space<vmem>>, vector<1x1x16x16xf32>
    %847 = vector.shape_cast %846 : vector<1x1x16x16xf32> to vector<16x16xf32>
    %848 = vector.broadcast %845 : f32 to vector<16x16xf32>
    %849 = arith.mulf %848, %847 : vector<16x16xf32>
    %850 = arith.addf %844, %849 : vector<16x16xf32>
    %c56 = arith.constant 56 : index
    %851 = memref.load %arg2[%c56] : memref<64xf32, #tpu.memory_space<smem>>
    %c0_439 = arith.constant 0 : index
    %c0_440 = arith.constant 0 : index
    %c2_441 = arith.constant 2 : index
    %c1_442 = arith.constant 1 : index
    %852 = vector.load %arg1[%c0_439, %c0_440, %c2_441, %c1_442] : memref<1x4x18x18xf32, #tpu.memory_space<vmem>>, vector<1x1x16x16xf32>
    %853 = vector.shape_cast %852 : vector<1x1x16x16xf32> to vector<16x16xf32>
    %854 = vector.broadcast %851 : f32 to vector<16x16xf32>
    %855 = arith.mulf %854, %853 : vector<16x16xf32>
    %856 = arith.addf %850, %855 : vector<16x16xf32>
    %c60 = arith.constant 60 : index
    %857 = memref.load %arg2[%c60] : memref<64xf32, #tpu.memory_space<smem>>
    %c0_443 = arith.constant 0 : index
    %c0_444 = arith.constant 0 : index
    %c2_445 = arith.constant 2 : index
    %c2_446 = arith.constant 2 : index
    %858 = vector.load %arg1[%c0_443, %c0_444, %c2_445, %c2_446] : memref<1x4x18x18xf32, #tpu.memory_space<vmem>>, vector<1x1x16x16xf32>
    %859 = vector.shape_cast %858 : vector<1x1x16x16xf32> to vector<16x16xf32>
    %860 = vector.broadcast %857 : f32 to vector<16x16xf32>
    %861 = arith.mulf %860, %859 : vector<16x16xf32>
    %862 = arith.addf %856, %861 : vector<16x16xf32>
    %c0_447 = arith.constant 0 : index
    %863 = memref.load %arg3[%c0_447] : memref<4xf32, #tpu.memory_space<smem>>
    %864 = vector.broadcast %863 : f32 to vector<16x16xf32>
    %865 = arith.addf %862, %864 : vector<16x16xf32>
    %cst_448 = arith.constant 0.000000e+00 : f32
    %866 = vector.broadcast %cst_448 : f32 to vector<16x16xf32>
    %867 = arith.maximumf %865, %866 : vector<16x16xf32>
    %c49 = arith.constant 49 : index
    %868 = memref.load %arg2[%c49] : memref<64xf32, #tpu.memory_space<smem>>
    %c0_449 = arith.constant 0 : index
    %c1_450 = arith.constant 1 : index
    %c1_451 = arith.constant 1 : index
    %c1_452 = arith.constant 1 : index
    %869 = vector.load %arg1[%c0_449, %c1_450, %c1_451, %c1_452] : memref<1x4x18x18xf32, #tpu.memory_space<vmem>>, vector<1x1x16x16xf32>
    %870 = vector.shape_cast %869 : vector<1x1x16x16xf32> to vector<16x16xf32>
    %871 = vector.broadcast %868 : f32 to vector<16x16xf32>
    %872 = arith.mulf %871, %870 : vector<16x16xf32>
    %c53 = arith.constant 53 : index
    %873 = memref.load %arg2[%c53] : memref<64xf32, #tpu.memory_space<smem>>
    %c0_453 = arith.constant 0 : index
    %c1_454 = arith.constant 1 : index
    %c1_455 = arith.constant 1 : index
    %c2_456 = arith.constant 2 : index
    %874 = vector.load %arg1[%c0_453, %c1_454, %c1_455, %c2_456] : memref<1x4x18x18xf32, #tpu.memory_space<vmem>>, vector<1x1x16x16xf32>
    %875 = vector.shape_cast %874 : vector<1x1x16x16xf32> to vector<16x16xf32>
    %876 = vector.broadcast %873 : f32 to vector<16x16xf32>
    %877 = arith.mulf %876, %875 : vector<16x16xf32>
    %878 = arith.addf %872, %877 : vector<16x16xf32>
    %c57 = arith.constant 57 : index
    %879 = memref.load %arg2[%c57] : memref<64xf32, #tpu.memory_space<smem>>
    %c0_457 = arith.constant 0 : index
    %c1_458 = arith.constant 1 : index
    %c2_459 = arith.constant 2 : index
    %c1_460 = arith.constant 1 : index
    %880 = vector.load %arg1[%c0_457, %c1_458, %c2_459, %c1_460] : memref<1x4x18x18xf32, #tpu.memory_space<vmem>>, vector<1x1x16x16xf32>
    %881 = vector.shape_cast %880 : vector<1x1x16x16xf32> to vector<16x16xf32>
    %882 = vector.broadcast %879 : f32 to vector<16x16xf32>
    %883 = arith.mulf %882, %881 : vector<16x16xf32>
    %884 = arith.addf %878, %883 : vector<16x16xf32>
    %c61 = arith.constant 61 : index
    %885 = memref.load %arg2[%c61] : memref<64xf32, #tpu.memory_space<smem>>
    %c0_461 = arith.constant 0 : index
    %c1_462 = arith.constant 1 : index
    %c2_463 = arith.constant 2 : index
    %c2_464 = arith.constant 2 : index
    %886 = vector.load %arg1[%c0_461, %c1_462, %c2_463, %c2_464] : memref<1x4x18x18xf32, #tpu.memory_space<vmem>>, vector<1x1x16x16xf32>
    %887 = vector.shape_cast %886 : vector<1x1x16x16xf32> to vector<16x16xf32>
    %888 = vector.broadcast %885 : f32 to vector<16x16xf32>
    %889 = arith.mulf %888, %887 : vector<16x16xf32>
    %890 = arith.addf %884, %889 : vector<16x16xf32>
    %c1_465 = arith.constant 1 : index
    %891 = memref.load %arg3[%c1_465] : memref<4xf32, #tpu.memory_space<smem>>
    %892 = vector.broadcast %891 : f32 to vector<16x16xf32>
    %893 = arith.addf %890, %892 : vector<16x16xf32>
    %cst_466 = arith.constant 0.000000e+00 : f32
    %894 = vector.broadcast %cst_466 : f32 to vector<16x16xf32>
    %895 = arith.maximumf %893, %894 : vector<16x16xf32>
    %c50 = arith.constant 50 : index
    %896 = memref.load %arg2[%c50] : memref<64xf32, #tpu.memory_space<smem>>
    %c0_467 = arith.constant 0 : index
    %c2_468 = arith.constant 2 : index
    %c1_469 = arith.constant 1 : index
    %c1_470 = arith.constant 1 : index
    %897 = vector.load %arg1[%c0_467, %c2_468, %c1_469, %c1_470] : memref<1x4x18x18xf32, #tpu.memory_space<vmem>>, vector<1x1x16x16xf32>
    %898 = vector.shape_cast %897 : vector<1x1x16x16xf32> to vector<16x16xf32>
    %899 = vector.broadcast %896 : f32 to vector<16x16xf32>
    %900 = arith.mulf %899, %898 : vector<16x16xf32>
    %c54 = arith.constant 54 : index
    %901 = memref.load %arg2[%c54] : memref<64xf32, #tpu.memory_space<smem>>
    %c0_471 = arith.constant 0 : index
    %c2_472 = arith.constant 2 : index
    %c1_473 = arith.constant 1 : index
    %c2_474 = arith.constant 2 : index
    %902 = vector.load %arg1[%c0_471, %c2_472, %c1_473, %c2_474] : memref<1x4x18x18xf32, #tpu.memory_space<vmem>>, vector<1x1x16x16xf32>
    %903 = vector.shape_cast %902 : vector<1x1x16x16xf32> to vector<16x16xf32>
    %904 = vector.broadcast %901 : f32 to vector<16x16xf32>
    %905 = arith.mulf %904, %903 : vector<16x16xf32>
    %906 = arith.addf %900, %905 : vector<16x16xf32>
    %c58 = arith.constant 58 : index
    %907 = memref.load %arg2[%c58] : memref<64xf32, #tpu.memory_space<smem>>
    %c0_475 = arith.constant 0 : index
    %c2_476 = arith.constant 2 : index
    %c2_477 = arith.constant 2 : index
    %c1_478 = arith.constant 1 : index
    %908 = vector.load %arg1[%c0_475, %c2_476, %c2_477, %c1_478] : memref<1x4x18x18xf32, #tpu.memory_space<vmem>>, vector<1x1x16x16xf32>
    %909 = vector.shape_cast %908 : vector<1x1x16x16xf32> to vector<16x16xf32>
    %910 = vector.broadcast %907 : f32 to vector<16x16xf32>
    %911 = arith.mulf %910, %909 : vector<16x16xf32>
    %912 = arith.addf %906, %911 : vector<16x16xf32>
    %c62 = arith.constant 62 : index
    %913 = memref.load %arg2[%c62] : memref<64xf32, #tpu.memory_space<smem>>
    %c0_479 = arith.constant 0 : index
    %c2_480 = arith.constant 2 : index
    %c2_481 = arith.constant 2 : index
    %c2_482 = arith.constant 2 : index
    %914 = vector.load %arg1[%c0_479, %c2_480, %c2_481, %c2_482] : memref<1x4x18x18xf32, #tpu.memory_space<vmem>>, vector<1x1x16x16xf32>
    %915 = vector.shape_cast %914 : vector<1x1x16x16xf32> to vector<16x16xf32>
    %916 = vector.broadcast %913 : f32 to vector<16x16xf32>
    %917 = arith.mulf %916, %915 : vector<16x16xf32>
    %918 = arith.addf %912, %917 : vector<16x16xf32>
    %c2_483 = arith.constant 2 : index
    %919 = memref.load %arg3[%c2_483] : memref<4xf32, #tpu.memory_space<smem>>
    %920 = vector.broadcast %919 : f32 to vector<16x16xf32>
    %921 = arith.addf %918, %920 : vector<16x16xf32>
    %cst_484 = arith.constant 0.000000e+00 : f32
    %922 = vector.broadcast %cst_484 : f32 to vector<16x16xf32>
    %923 = arith.maximumf %921, %922 : vector<16x16xf32>
    %c51 = arith.constant 51 : index
    %924 = memref.load %arg2[%c51] : memref<64xf32, #tpu.memory_space<smem>>
    %c0_485 = arith.constant 0 : index
    %c3_486 = arith.constant 3 : index
    %c1_487 = arith.constant 1 : index
    %c1_488 = arith.constant 1 : index
    %925 = vector.load %arg1[%c0_485, %c3_486, %c1_487, %c1_488] : memref<1x4x18x18xf32, #tpu.memory_space<vmem>>, vector<1x1x16x16xf32>
    %926 = vector.shape_cast %925 : vector<1x1x16x16xf32> to vector<16x16xf32>
    %927 = vector.broadcast %924 : f32 to vector<16x16xf32>
    %928 = arith.mulf %927, %926 : vector<16x16xf32>
    %c55 = arith.constant 55 : index
    %929 = memref.load %arg2[%c55] : memref<64xf32, #tpu.memory_space<smem>>
    %c0_489 = arith.constant 0 : index
    %c3_490 = arith.constant 3 : index
    %c1_491 = arith.constant 1 : index
    %c2_492 = arith.constant 2 : index
    %930 = vector.load %arg1[%c0_489, %c3_490, %c1_491, %c2_492] : memref<1x4x18x18xf32, #tpu.memory_space<vmem>>, vector<1x1x16x16xf32>
    %931 = vector.shape_cast %930 : vector<1x1x16x16xf32> to vector<16x16xf32>
    %932 = vector.broadcast %929 : f32 to vector<16x16xf32>
    %933 = arith.mulf %932, %931 : vector<16x16xf32>
    %934 = arith.addf %928, %933 : vector<16x16xf32>
    %c59 = arith.constant 59 : index
    %935 = memref.load %arg2[%c59] : memref<64xf32, #tpu.memory_space<smem>>
    %c0_493 = arith.constant 0 : index
    %c3_494 = arith.constant 3 : index
    %c2_495 = arith.constant 2 : index
    %c1_496 = arith.constant 1 : index
    %936 = vector.load %arg1[%c0_493, %c3_494, %c2_495, %c1_496] : memref<1x4x18x18xf32, #tpu.memory_space<vmem>>, vector<1x1x16x16xf32>
    %937 = vector.shape_cast %936 : vector<1x1x16x16xf32> to vector<16x16xf32>
    %938 = vector.broadcast %935 : f32 to vector<16x16xf32>
    %939 = arith.mulf %938, %937 : vector<16x16xf32>
    %940 = arith.addf %934, %939 : vector<16x16xf32>
    %c63 = arith.constant 63 : index
    %941 = memref.load %arg2[%c63] : memref<64xf32, #tpu.memory_space<smem>>
    %c0_497 = arith.constant 0 : index
    %c3_498 = arith.constant 3 : index
    %c2_499 = arith.constant 2 : index
    %c2_500 = arith.constant 2 : index
    %942 = vector.load %arg1[%c0_497, %c3_498, %c2_499, %c2_500] : memref<1x4x18x18xf32, #tpu.memory_space<vmem>>, vector<1x1x16x16xf32>
    %943 = vector.shape_cast %942 : vector<1x1x16x16xf32> to vector<16x16xf32>
    %944 = vector.broadcast %941 : f32 to vector<16x16xf32>
    %945 = arith.mulf %944, %943 : vector<16x16xf32>
    %946 = arith.addf %940, %945 : vector<16x16xf32>
    %c3_501 = arith.constant 3 : index
    %947 = memref.load %arg3[%c3_501] : memref<4xf32, #tpu.memory_space<smem>>
    %948 = vector.broadcast %947 : f32 to vector<16x16xf32>
    %949 = arith.addf %946, %948 : vector<16x16xf32>
    %cst_502 = arith.constant 0.000000e+00 : f32
    %950 = vector.broadcast %cst_502 : f32 to vector<16x16xf32>
    %951 = arith.maximumf %949, %950 : vector<16x16xf32>
    %c0_503 = arith.constant 0 : index
    %952 = memref.load %arg5[%c0_503] : memref<8xf32, #tpu.memory_space<smem>>
    %c0_504 = arith.constant 0 : index
    %953 = memref.load %arg4[%c0_504] : memref<32xf32, #tpu.memory_space<smem>>
    %954 = vector.broadcast %953 : f32 to vector<16x16xf32>
    %955 = arith.mulf %954, %867 : vector<16x16xf32>
    %956 = vector.broadcast %952 : f32 to vector<16x16xf32>
    %957 = arith.addf %956, %955 : vector<16x16xf32>
    %c1_505 = arith.constant 1 : index
    %958 = memref.load %arg4[%c1_505] : memref<32xf32, #tpu.memory_space<smem>>
    %959 = vector.broadcast %958 : f32 to vector<16x16xf32>
    %960 = arith.mulf %959, %895 : vector<16x16xf32>
    %961 = arith.addf %957, %960 : vector<16x16xf32>
    %c2_506 = arith.constant 2 : index
    %962 = memref.load %arg4[%c2_506] : memref<32xf32, #tpu.memory_space<smem>>
    %963 = vector.broadcast %962 : f32 to vector<16x16xf32>
    %964 = arith.mulf %963, %923 : vector<16x16xf32>
    %965 = arith.addf %961, %964 : vector<16x16xf32>
    %c3_507 = arith.constant 3 : index
    %966 = memref.load %arg4[%c3_507] : memref<32xf32, #tpu.memory_space<smem>>
    %967 = vector.broadcast %966 : f32 to vector<16x16xf32>
    %968 = arith.mulf %967, %951 : vector<16x16xf32>
    %969 = arith.addf %965, %968 : vector<16x16xf32>
    %c0_508 = arith.constant 0 : index
    %c24_509 = arith.constant 24 : index
    %c0_510 = arith.constant 0 : index
    %c0_511 = arith.constant 0 : index
    %970 = vector.load %arg6[%c0_508, %c24_509, %c0_510, %c0_511] : memref<1x32x16x16xf32, #tpu.memory_space<vmem>>, vector<1x1x16x16xf32>
    %971 = vector.shape_cast %970 : vector<1x1x16x16xf32> to vector<16x16xf32>
    %972 = vector.shape_cast %969 : vector<16x16xf32> to vector<1x1x16x16xf32>
    tpu.vector_store %arg6[%c0_508, %c24_509, %c0_510, %c0_511], %972 {strides = array<i32>} : memref<1x32x16x16xf32, #tpu.memory_space<vmem>>, vector<1x1x16x16xf32>,
    %c1_512 = arith.constant 1 : index
    %973 = memref.load %arg5[%c1_512] : memref<8xf32, #tpu.memory_space<smem>>
    %c4_513 = arith.constant 4 : index
    %974 = memref.load %arg4[%c4_513] : memref<32xf32, #tpu.memory_space<smem>>
    %975 = vector.broadcast %974 : f32 to vector<16x16xf32>
    %976 = arith.mulf %975, %867 : vector<16x16xf32>
    %977 = vector.broadcast %973 : f32 to vector<16x16xf32>
    %978 = arith.addf %977, %976 : vector<16x16xf32>
    %c5_514 = arith.constant 5 : index
    %979 = memref.load %arg4[%c5_514] : memref<32xf32, #tpu.memory_space<smem>>
    %980 = vector.broadcast %979 : f32 to vector<16x16xf32>
    %981 = arith.mulf %980, %895 : vector<16x16xf32>
    %982 = arith.addf %978, %981 : vector<16x16xf32>
    %c6_515 = arith.constant 6 : index
    %983 = memref.load %arg4[%c6_515] : memref<32xf32, #tpu.memory_space<smem>>
    %984 = vector.broadcast %983 : f32 to vector<16x16xf32>
    %985 = arith.mulf %984, %923 : vector<16x16xf32>
    %986 = arith.addf %982, %985 : vector<16x16xf32>
    %c7_516 = arith.constant 7 : index
    %987 = memref.load %arg4[%c7_516] : memref<32xf32, #tpu.memory_space<smem>>
    %988 = vector.broadcast %987 : f32 to vector<16x16xf32>
    %989 = arith.mulf %988, %951 : vector<16x16xf32>
    %990 = arith.addf %986, %989 : vector<16x16xf32>
    %c0_517 = arith.constant 0 : index
    %c25_518 = arith.constant 25 : index
    %c0_519 = arith.constant 0 : index
    %c0_520 = arith.constant 0 : index
    %991 = vector.load %arg6[%c0_517, %c25_518, %c0_519, %c0_520] : memref<1x32x16x16xf32, #tpu.memory_space<vmem>>, vector<1x1x16x16xf32>
    %992 = vector.shape_cast %991 : vector<1x1x16x16xf32> to vector<16x16xf32>
    %993 = vector.shape_cast %990 : vector<16x16xf32> to vector<1x1x16x16xf32>
    tpu.vector_store %arg6[%c0_517, %c25_518, %c0_519, %c0_520], %993 {strides = array<i32>} : memref<1x32x16x16xf32, #tpu.memory_space<vmem>>, vector<1x1x16x16xf32>,
    %c2_521 = arith.constant 2 : index
    %994 = memref.load %arg5[%c2_521] : memref<8xf32, #tpu.memory_space<smem>>
    %c8_522 = arith.constant 8 : index
    %995 = memref.load %arg4[%c8_522] : memref<32xf32, #tpu.memory_space<smem>>
    %996 = vector.broadcast %995 : f32 to vector<16x16xf32>
    %997 = arith.mulf %996, %867 : vector<16x16xf32>
    %998 = vector.broadcast %994 : f32 to vector<16x16xf32>
    %999 = arith.addf %998, %997 : vector<16x16xf32>
    %c9_523 = arith.constant 9 : index
    %1000 = memref.load %arg4[%c9_523] : memref<32xf32, #tpu.memory_space<smem>>
    %1001 = vector.broadcast %1000 : f32 to vector<16x16xf32>
    %1002 = arith.mulf %1001, %895 : vector<16x16xf32>
    %1003 = arith.addf %999, %1002 : vector<16x16xf32>
    %c10_524 = arith.constant 10 : index
    %1004 = memref.load %arg4[%c10_524] : memref<32xf32, #tpu.memory_space<smem>>
    %1005 = vector.broadcast %1004 : f32 to vector<16x16xf32>
    %1006 = arith.mulf %1005, %923 : vector<16x16xf32>
    %1007 = arith.addf %1003, %1006 : vector<16x16xf32>
    %c11_525 = arith.constant 11 : index
    %1008 = memref.load %arg4[%c11_525] : memref<32xf32, #tpu.memory_space<smem>>
    %1009 = vector.broadcast %1008 : f32 to vector<16x16xf32>
    %1010 = arith.mulf %1009, %951 : vector<16x16xf32>
    %1011 = arith.addf %1007, %1010 : vector<16x16xf32>
    %c0_526 = arith.constant 0 : index
    %c26_527 = arith.constant 26 : index
    %c0_528 = arith.constant 0 : index
    %c0_529 = arith.constant 0 : index
    %1012 = vector.load %arg6[%c0_526, %c26_527, %c0_528, %c0_529] : memref<1x32x16x16xf32, #tpu.memory_space<vmem>>, vector<1x1x16x16xf32>
    %1013 = vector.shape_cast %1012 : vector<1x1x16x16xf32> to vector<16x16xf32>
    %1014 = vector.shape_cast %1011 : vector<16x16xf32> to vector<1x1x16x16xf32>
    tpu.vector_store %arg6[%c0_526, %c26_527, %c0_528, %c0_529], %1014 {strides = array<i32>} : memref<1x32x16x16xf32, #tpu.memory_space<vmem>>, vector<1x1x16x16xf32>,
    %c3_530 = arith.constant 3 : index
    %1015 = memref.load %arg5[%c3_530] : memref<8xf32, #tpu.memory_space<smem>>
    %c12_531 = arith.constant 12 : index
    %1016 = memref.load %arg4[%c12_531] : memref<32xf32, #tpu.memory_space<smem>>
    %1017 = vector.broadcast %1016 : f32 to vector<16x16xf32>
    %1018 = arith.mulf %1017, %867 : vector<16x16xf32>
    %1019 = vector.broadcast %1015 : f32 to vector<16x16xf32>
    %1020 = arith.addf %1019, %1018 : vector<16x16xf32>
    %c13_532 = arith.constant 13 : index
    %1021 = memref.load %arg4[%c13_532] : memref<32xf32, #tpu.memory_space<smem>>
    %1022 = vector.broadcast %1021 : f32 to vector<16x16xf32>
    %1023 = arith.mulf %1022, %895 : vector<16x16xf32>
    %1024 = arith.addf %1020, %1023 : vector<16x16xf32>
    %c14_533 = arith.constant 14 : index
    %1025 = memref.load %arg4[%c14_533] : memref<32xf32, #tpu.memory_space<smem>>
    %1026 = vector.broadcast %1025 : f32 to vector<16x16xf32>
    %1027 = arith.mulf %1026, %923 : vector<16x16xf32>
    %1028 = arith.addf %1024, %1027 : vector<16x16xf32>
    %c15_534 = arith.constant 15 : index
    %1029 = memref.load %arg4[%c15_534] : memref<32xf32, #tpu.memory_space<smem>>
    %1030 = vector.broadcast %1029 : f32 to vector<16x16xf32>
    %1031 = arith.mulf %1030, %951 : vector<16x16xf32>
    %1032 = arith.addf %1028, %1031 : vector<16x16xf32>
    %c0_535 = arith.constant 0 : index
    %c27_536 = arith.constant 27 : index
    %c0_537 = arith.constant 0 : index
    %c0_538 = arith.constant 0 : index
    %1033 = vector.load %arg6[%c0_535, %c27_536, %c0_537, %c0_538] : memref<1x32x16x16xf32, #tpu.memory_space<vmem>>, vector<1x1x16x16xf32>
    %1034 = vector.shape_cast %1033 : vector<1x1x16x16xf32> to vector<16x16xf32>
    %1035 = vector.shape_cast %1032 : vector<16x16xf32> to vector<1x1x16x16xf32>
    tpu.vector_store %arg6[%c0_535, %c27_536, %c0_537, %c0_538], %1035 {strides = array<i32>} : memref<1x32x16x16xf32, #tpu.memory_space<vmem>>, vector<1x1x16x16xf32>,
    %c4_539 = arith.constant 4 : index
    %1036 = memref.load %arg5[%c4_539] : memref<8xf32, #tpu.memory_space<smem>>
    %c16_540 = arith.constant 16 : index
    %1037 = memref.load %arg4[%c16_540] : memref<32xf32, #tpu.memory_space<smem>>
    %1038 = vector.broadcast %1037 : f32 to vector<16x16xf32>
    %1039 = arith.mulf %1038, %867 : vector<16x16xf32>
    %1040 = vector.broadcast %1036 : f32 to vector<16x16xf32>
    %1041 = arith.addf %1040, %1039 : vector<16x16xf32>
    %c17_541 = arith.constant 17 : index
    %1042 = memref.load %arg4[%c17_541] : memref<32xf32, #tpu.memory_space<smem>>
    %1043 = vector.broadcast %1042 : f32 to vector<16x16xf32>
    %1044 = arith.mulf %1043, %895 : vector<16x16xf32>
    %1045 = arith.addf %1041, %1044 : vector<16x16xf32>
    %c18_542 = arith.constant 18 : index
    %1046 = memref.load %arg4[%c18_542] : memref<32xf32, #tpu.memory_space<smem>>
    %1047 = vector.broadcast %1046 : f32 to vector<16x16xf32>
    %1048 = arith.mulf %1047, %923 : vector<16x16xf32>
    %1049 = arith.addf %1045, %1048 : vector<16x16xf32>
    %c19_543 = arith.constant 19 : index
    %1050 = memref.load %arg4[%c19_543] : memref<32xf32, #tpu.memory_space<smem>>
    %1051 = vector.broadcast %1050 : f32 to vector<16x16xf32>
    %1052 = arith.mulf %1051, %951 : vector<16x16xf32>
    %1053 = arith.addf %1049, %1052 : vector<16x16xf32>
    %c0_544 = arith.constant 0 : index
    %c28_545 = arith.constant 28 : index
    %c0_546 = arith.constant 0 : index
    %c0_547 = arith.constant 0 : index
    %1054 = vector.load %arg6[%c0_544, %c28_545, %c0_546, %c0_547] : memref<1x32x16x16xf32, #tpu.memory_space<vmem>>, vector<1x1x16x16xf32>
    %1055 = vector.shape_cast %1054 : vector<1x1x16x16xf32> to vector<16x16xf32>
    %1056 = vector.shape_cast %1053 : vector<16x16xf32> to vector<1x1x16x16xf32>
    tpu.vector_store %arg6[%c0_544, %c28_545, %c0_546, %c0_547], %1056 {strides = array<i32>} : memref<1x32x16x16xf32, #tpu.memory_space<vmem>>, vector<1x1x16x16xf32>,
    %c5_548 = arith.constant 5 : index
    %1057 = memref.load %arg5[%c5_548] : memref<8xf32, #tpu.memory_space<smem>>
    %c20_549 = arith.constant 20 : index
    %1058 = memref.load %arg4[%c20_549] : memref<32xf32, #tpu.memory_space<smem>>
    %1059 = vector.broadcast %1058 : f32 to vector<16x16xf32>
    %1060 = arith.mulf %1059, %867 : vector<16x16xf32>
    %1061 = vector.broadcast %1057 : f32 to vector<16x16xf32>
    %1062 = arith.addf %1061, %1060 : vector<16x16xf32>
    %c21_550 = arith.constant 21 : index
    %1063 = memref.load %arg4[%c21_550] : memref<32xf32, #tpu.memory_space<smem>>
    %1064 = vector.broadcast %1063 : f32 to vector<16x16xf32>
    %1065 = arith.mulf %1064, %895 : vector<16x16xf32>
    %1066 = arith.addf %1062, %1065 : vector<16x16xf32>
    %c22_551 = arith.constant 22 : index
    %1067 = memref.load %arg4[%c22_551] : memref<32xf32, #tpu.memory_space<smem>>
    %1068 = vector.broadcast %1067 : f32 to vector<16x16xf32>
    %1069 = arith.mulf %1068, %923 : vector<16x16xf32>
    %1070 = arith.addf %1066, %1069 : vector<16x16xf32>
    %c23_552 = arith.constant 23 : index
    %1071 = memref.load %arg4[%c23_552] : memref<32xf32, #tpu.memory_space<smem>>
    %1072 = vector.broadcast %1071 : f32 to vector<16x16xf32>
    %1073 = arith.mulf %1072, %951 : vector<16x16xf32>
    %1074 = arith.addf %1070, %1073 : vector<16x16xf32>
    %c0_553 = arith.constant 0 : index
    %c29_554 = arith.constant 29 : index
    %c0_555 = arith.constant 0 : index
    %c0_556 = arith.constant 0 : index
    %1075 = vector.load %arg6[%c0_553, %c29_554, %c0_555, %c0_556] : memref<1x32x16x16xf32, #tpu.memory_space<vmem>>, vector<1x1x16x16xf32>
    %1076 = vector.shape_cast %1075 : vector<1x1x16x16xf32> to vector<16x16xf32>
    %1077 = vector.shape_cast %1074 : vector<16x16xf32> to vector<1x1x16x16xf32>
    tpu.vector_store %arg6[%c0_553, %c29_554, %c0_555, %c0_556], %1077 {strides = array<i32>} : memref<1x32x16x16xf32, #tpu.memory_space<vmem>>, vector<1x1x16x16xf32>,
    %c6_557 = arith.constant 6 : index
    %1078 = memref.load %arg5[%c6_557] : memref<8xf32, #tpu.memory_space<smem>>
    %c24_558 = arith.constant 24 : index
    %1079 = memref.load %arg4[%c24_558] : memref<32xf32, #tpu.memory_space<smem>>
    %1080 = vector.broadcast %1079 : f32 to vector<16x16xf32>
    %1081 = arith.mulf %1080, %867 : vector<16x16xf32>
    %1082 = vector.broadcast %1078 : f32 to vector<16x16xf32>
    %1083 = arith.addf %1082, %1081 : vector<16x16xf32>
    %c25_559 = arith.constant 25 : index
    %1084 = memref.load %arg4[%c25_559] : memref<32xf32, #tpu.memory_space<smem>>
    %1085 = vector.broadcast %1084 : f32 to vector<16x16xf32>
    %1086 = arith.mulf %1085, %895 : vector<16x16xf32>
    %1087 = arith.addf %1083, %1086 : vector<16x16xf32>
    %c26_560 = arith.constant 26 : index
    %1088 = memref.load %arg4[%c26_560] : memref<32xf32, #tpu.memory_space<smem>>
    %1089 = vector.broadcast %1088 : f32 to vector<16x16xf32>
    %1090 = arith.mulf %1089, %923 : vector<16x16xf32>
    %1091 = arith.addf %1087, %1090 : vector<16x16xf32>
    %c27_561 = arith.constant 27 : index
    %1092 = memref.load %arg4[%c27_561] : memref<32xf32, #tpu.memory_space<smem>>
    %1093 = vector.broadcast %1092 : f32 to vector<16x16xf32>
    %1094 = arith.mulf %1093, %951 : vector<16x16xf32>
    %1095 = arith.addf %1091, %1094 : vector<16x16xf32>
    %c0_562 = arith.constant 0 : index
    %c30_563 = arith.constant 30 : index
    %c0_564 = arith.constant 0 : index
    %c0_565 = arith.constant 0 : index
    %1096 = vector.load %arg6[%c0_562, %c30_563, %c0_564, %c0_565] : memref<1x32x16x16xf32, #tpu.memory_space<vmem>>, vector<1x1x16x16xf32>
    %1097 = vector.shape_cast %1096 : vector<1x1x16x16xf32> to vector<16x16xf32>
    %1098 = vector.shape_cast %1095 : vector<16x16xf32> to vector<1x1x16x16xf32>
    tpu.vector_store %arg6[%c0_562, %c30_563, %c0_564, %c0_565], %1098 {strides = array<i32>} : memref<1x32x16x16xf32, #tpu.memory_space<vmem>>, vector<1x1x16x16xf32>,
    %c7_566 = arith.constant 7 : index
    %1099 = memref.load %arg5[%c7_566] : memref<8xf32, #tpu.memory_space<smem>>
    %c28_567 = arith.constant 28 : index
    %1100 = memref.load %arg4[%c28_567] : memref<32xf32, #tpu.memory_space<smem>>
    %1101 = vector.broadcast %1100 : f32 to vector<16x16xf32>
    %1102 = arith.mulf %1101, %867 : vector<16x16xf32>
    %1103 = vector.broadcast %1099 : f32 to vector<16x16xf32>
    %1104 = arith.addf %1103, %1102 : vector<16x16xf32>
    %c29_568 = arith.constant 29 : index
    %1105 = memref.load %arg4[%c29_568] : memref<32xf32, #tpu.memory_space<smem>>
    %1106 = vector.broadcast %1105 : f32 to vector<16x16xf32>
    %1107 = arith.mulf %1106, %895 : vector<16x16xf32>
    %1108 = arith.addf %1104, %1107 : vector<16x16xf32>
    %c30_569 = arith.constant 30 : index
    %1109 = memref.load %arg4[%c30_569] : memref<32xf32, #tpu.memory_space<smem>>
    %1110 = vector.broadcast %1109 : f32 to vector<16x16xf32>
    %1111 = arith.mulf %1110, %923 : vector<16x16xf32>
    %1112 = arith.addf %1108, %1111 : vector<16x16xf32>
    %c31_570 = arith.constant 31 : index
    %1113 = memref.load %arg4[%c31_570] : memref<32xf32, #tpu.memory_space<smem>>
    %1114 = vector.broadcast %1113 : f32 to vector<16x16xf32>
    %1115 = arith.mulf %1114, %951 : vector<16x16xf32>
    %1116 = arith.addf %1112, %1115 : vector<16x16xf32>
    %c0_571 = arith.constant 0 : index
    %c31_572 = arith.constant 31 : index
    %c0_573 = arith.constant 0 : index
    %c0_574 = arith.constant 0 : index
    %1117 = vector.load %arg6[%c0_571, %c31_572, %c0_573, %c0_574] : memref<1x32x16x16xf32, #tpu.memory_space<vmem>>, vector<1x1x16x16xf32>
    %1118 = vector.shape_cast %1117 : vector<1x1x16x16xf32> to vector<16x16xf32>
    %1119 = vector.shape_cast %1116 : vector<16x16xf32> to vector<1x1x16x16xf32>
    tpu.vector_store %arg6[%c0_571, %c31_572, %c0_573, %c0_574], %1119 {strides = array<i32>} : memref<1x32x16x16xf32, #tpu.memory_space<vmem>>, vector<1x1x16x16xf32>,
    return
  }
  func.func @transform_0(%arg0: i32) -> (i32, i32, i32, i32) {
    %c0_i32 = arith.constant 0 : i32
    %c0_i32_0 = arith.constant 0 : i32
    %c0_i32_1 = arith.constant 0 : i32
    %c0_i32_2 = arith.constant 0 : i32
    return %arg0, %c0_i32, %c0_i32_0, %c0_i32_1 : i32, i32, i32, i32
  }
  func.func @transform_1(%arg0: i32) -> i32 {
    %c0_i32 = arith.constant 0 : i32
    %c0_i32_0 = arith.constant 0 : i32
    return %c0_i32 : i32
  }
  func.func @transform_2(%arg0: i32) -> i32 {
    %c0_i32 = arith.constant 0 : i32
    %c0_i32_0 = arith.constant 0 : i32
    return %c0_i32 : i32
  }
  func.func @transform_3(%arg0: i32) -> i32 {
    %c0_i32 = arith.constant 0 : i32
    %c0_i32_0 = arith.constant 0 : i32
    return %c0_i32 : i32
  }
  func.func @transform_4(%arg0: i32) -> i32 {
    %c0_i32 = arith.constant 0 : i32
    %c0_i32_0 = arith.constant 0 : i32
    return %c0_i32 : i32
  }
  func.func @transform_5(%arg0: i32) -> (i32, i32, i32, i32) {
    %c0_i32 = arith.constant 0 : i32
    %c0_i32_0 = arith.constant 0 : i32
    %c0_i32_1 = arith.constant 0 : i32
    %c0_i32_2 = arith.constant 0 : i32
    return %arg0, %c0_i32, %c0_i32_0, %c0_i32_1 : i32, i32, i32, i32
  }
}

</mosaic_0001>

<bundles_post_ra>
// kernel: eucb_forward.1
= control target key start
LH: loop header
LB: loop body
LE: loop exit
PB: predicated region body
PF: predicated region fallthrough
CT: control target
= control target key end

     0   :  { %s4707_s0 = inlined_call_operand.vmem [shape: f32[2,4,18,18], index: 0, kind: input, shape index: {}]   ;;  %s4708_s1 = inlined_call_operand.vmem [shape: f32[64], index: 1, kind: input, shape index: {}]   ;;  %s4709_s2 = inlined_call_operand.vmem [shape: f32[4], index: 2, kind: input, shape index: {}]   ;;  %s4710_s3 = inlined_call_operand.vmem [shape: f32[32], index: 3, kind: input, shape index: {}]   ;;  %s4711_s4 = inlined_call_operand.vmem [shape: f32[8], index: 4, kind: input, shape index: {}]   ;;  %s4712_s5 = inlined_call_operand.vmem [shape: f32[2,32,16,16], index: 5, kind: output, shape index: {}]  }
   0x1   :  { %4838 = sst [smem:[#allocation109_spill]] %s4707_s0 }
   0x2   :  { %4839 = sst [smem:[#allocation110_spill]] %s4708_s1 }
   0x3   :  { %4840 = sst [smem:[#allocation111_spill]] %s4709_s2 }
   0x4   :  { %4841 = sst [smem:[#allocation112_spill]] %s4710_s3 }
   0x5   :  { %4842 = sst [smem:[#allocation113_spill]] %s4711_s4 }
   0x6   :  { %4843 = sst [smem:[#allocation114_spill]] %s4712_s5 }
   0x7   :  { %10 = vsyncpa [#allocation3], 0 }
   0x8   :  { %11 = vsyncpa [#allocation5], 0 }
   0x9   :  { %12 = vsyncpa [#allocation8], 0  ;;  %s2737_s18 = smov 0  }
   0xa LB: > { %4844 = sst [smem:[#allocation12_spill]] %s2700_s18  ;;  %s4845_s2 = sld [smem:[#allocation111_spill]]  ;;  %s2700_s18 = sphi %s2737_s18, %s18_s18  }
   0xb   : > { %s2746_s22 = sadd.s32 4294967295, %s2700_s18   ;;  %p2202_p0 = scmp.ge.s32.totalorder %s2700_s18, 1 }
   0xc   : > { %p159_p1 = scmp.lt.s32.totalorder %s2700_s18, 3  ;;  %p2586_p2 = scmp.eq.s32.totalorder %s2746_s22, 0 }
   0xd   : > { %s4847_s1 = sld [smem:[#allocation110_spill]]  ;;  %s4848_s3 = sld [smem:[#allocation112_spill]] }
   0xe   : > { %p2751_p3 = pnand %p2202_p0, %p159_p1  ;;  %s4850_s4 = sld [smem:[#allocation113_spill]] }
  0x10   : > { %s183_s21 = sshll.u32 %s4845_s2, 4  ;;  %p2573_p4 = pneg %p2751_p3  ;;  %s184_s21 = int_to_ptr.vmem [resolvable:$true] %s183_s21 }
  0x11   : > { %s2622_s9 = scalar_lea.vmem %s184_s21, 16  ;;  %p2630_p10 = scmp.lt.s32.totalorder %s184_s21, %s184_s21 }
  0x12   : > { %p2769_p5 = pnand %p2586_p2, %p2573_p4  ;;  %p2623_p6 = scmp.ne.s32.totalorder %s184_s21, %s2622_s9 }
  0x13   : > { %s172_s26 = sshll.u32 %s4847_s1, 4  ;;  %s194_s29 = sshll.u32 %s4848_s3, 4  ;;  %s2758_s26 = int_to_ptr.vmem [resolvable:$true] %s172_s26  ;;  %s2765_s29 = int_to_ptr.vmem [resolvable:$true] %s194_s29 }
  0x14   : > { %s205_s8 = sshll.u32 %s4850_s4, 4  ;;  %p2624_p7 = pneg %p2769_p5  ;;  %s2776_s8 = int_to_ptr.vmem [resolvable:$true] %s205_s8 }
  0x15   : > { %p2631_p11 = scmp.lt.s32.totalorder %s2622_s9, %s2622_s9 }
  0x16   : > { %p2625_p8 = pnand %p2624_p7, %p2623_p6 }
  0x17   : > { %p2632_p12 = por %p2631_p11, %p2630_p10 }
  0x18   : > { %p2626_p9 = pneg %p2625_p8 }
  0x1a   : > { %p2633_p13 = pnand %p2632_p12, %p2626_p9 }
  0x1c   : > { %2636 = shalt.err (!%p2633_p13)
}
  0x1d   : > { %s2702_s10 = smov [#allocation4]   ;;  %s2637_s11 = scalar_lea.vmem %s2758_s26, 16 }
  0x1e   : > { %2579 = dma.vmem_to_smem (!%p2769_p5), %s184_s21, 16, %s2702_s10, [#allocation5]  }
  0x1f   : > { %p2638_p0 = scmp.ne.s32.totalorder %s2758_s26, %s2637_s11  ;;  %p2645_p6 = scmp.lt.s32.totalorder %s2758_s26, %s2758_s26 }
  0x20   : > { %p2646_p8 = scmp.lt.s32.totalorder %s2637_s11, %s2637_s11 }
  0x21   : > { %p2640_p1 = pnand %p2638_p0, %p2624_p7 }
  0x22   : > { %p2647_p10 = por %p2646_p8, %p2645_p6 }
  0x23   : > { %p2641_p4 = pneg %p2640_p1 }
  0x25   : > { %p2648_p9 = pnand %p2647_p10, %p2641_p4 }
  0x27   : > { %2651 = shalt.err (!%p2648_p9)
}
  0x28   : > { %s2703_s12 = smov [#allocation2]   ;;  %s2652_s13 = scalar_lea.vmem %s2765_s29, 16 }
  0x29   : > { %2576 = dma.vmem_to_smem (!%p2769_p5), %s2758_s26, 16, %s2703_s12, [#allocation3]  }
  0x2a   : > { %p2653_p11 = scmp.ne.s32.totalorder %s2765_s29, %s2652_s13  ;;  %p2660_p0 = scmp.lt.s32.totalorder %s2765_s29, %s2765_s29 }
  0x2b   : > { %p2661_p1 = scmp.lt.s32.totalorder %s2652_s13, %s2652_s13 }
  0x2c   : > { %p2655_p12 = pnand %p2653_p11, %p2624_p7 }
  0x2d   : > { %p2662_p4 = por %p2661_p1, %p2660_p0 }
  0x2e   : > { %p2656_p13 = pneg %p2655_p12 }
  0x30   : > { %p2663_p6 = pnand %p2662_p4, %p2656_p13 }
  0x32   : > { %2666 = shalt.err (!%p2663_p6)
}
  0x33   : > { %s2704_s14 = smov [#allocation6]   ;;  %s2667_s15 = scalar_lea.vmem %s2776_s8, 16 }
  0x34   : > { %2582 = dma.vmem_to_smem (!%p2769_p5), %s2765_s29, 16, %s2704_s14, [#allocation5]  }
  0x35   : > { %p2668_p8 = scmp.ne.s32.totalorder %s2776_s8, %s2667_s15  ;;  %p2675_p11 = scmp.lt.s32.totalorder %s2776_s8, %s2776_s8 }
  0x36   : > { %p2676_p12 = scmp.lt.s32.totalorder %s2667_s15, %s2667_s15 }
  0x37   : > { %p2670_p10 = pnand %p2668_p8, %p2624_p7 }
  0x38   : > { %p2677_p13 = por %p2676_p12, %p2675_p11 }
  0x39   : > { %p2671_p9 = pneg %p2670_p10 }
  0x3b   : > { %p2678_p0 = pnand %p2677_p13, %p2671_p9 }
  0x3d   : > { %2681 = shalt.err (!%p2678_p0)
}
  0x3e   : > { %s2705_s16 = smov [#allocation7]   ;;  %226 = sbr.rel (%p2751_p3) target bundleno = 492 (0x1ec), region = 40 }
  0x3f   : > { %2585 = dma.vmem_to_smem (!%p2769_p5), %s2776_s8, 16, %s2705_s16, [#allocation8]  }
  0x45   : > { %2687 = dma.done.wait (%p2586_p2), [#allocation3], 16  }
  0x46   : > { %2689 = vsyncadd (%p2586_p2), [#allocation3], 4294967280 }
  0x47   : > { %2691 = dma.done.wait (%p2586_p2), [#allocation5], 32  }
  0x48   : > { %2693 = vsyncadd (%p2586_p2), [#allocation5], 4294967264 }
  0x49   : > { %2695 = dma.done.wait (%p2586_p2), [#allocation8], 16  }
  0x4a   : > { %2697 = vsyncadd (%p2586_p2), [#allocation8], 4294967280 }
  0x4b   : > { %244 = sfence }
  0x4c   : > { %p267_p3 = scmp.lt.s32.totalorder %s2746_s22, 1  ;;  %s2218_s17 = sld [smem:[#allocation2 + $0xc]]  ;;  %vm498_vm0 = vcmask 130048  }
  0x4d   : > { %s2216_s19 = sld [smem:[#allocation2 + $0x4]]  ;;  %s2222_s20 = sld [smem:[#allocation2 + $0x5]] }
  0x4e   : > { %s5144_s22 = smov (!%p267_p3, %s2746_s22), 1  ;;  %s4852_s0 = sld [smem:[#allocation109_spill]] }
  0x4f   : > { %4851 = sst [smem:[#allocation13_spill]] %s5144_s22  ;;  %s2556_s21 = smul.u32 96, %s5144_s22 }
  0x50   : > { %s2226_s26 = sld [smem:[#allocation2 + $0xd]]  ;;  %s4719_s27 = smov 127  }
  0x51   : > { %s2231_s28 = sld [smem:[#allocation2 + $0x6]]  ;;  %s2240_s30 = sld [smem:[#allocation2 + $0x7]] }
  0x52   : > { %v306_v2 = vstv %s2218_s17  ;;  %s2235_s29 = sld [smem:[#allocation2 + $0xe]]  ;;  %s2244_s6 = sld [smem:[#allocation2 + $0xf]] }
  0x53   : > { %v284_v6 = vstv %s2216_s19  ;;  %v333_v10 = vstv %s2222_s20  ;;  %s2299_s7 = sld [smem:[#allocation2 + $0x14]]  ;;  %s2305_s9 = sld [smem:[#allocation2 + $0x15]] }
  0x54   : > { %s2837_s25 = scalar_lea.vmem %s4852_s0, %s2556_s21  ;;  %s2301_s8 = sld [smem:[#allocation2 + $0x1c]] }
  0x55   : > { %v2840_v0 = vld [vmem:[%s2837_s25 + $0x1] sm:$0xff]  ;;  %v2843_v1 = vld [vmem:[%s2837_s25 + $0x9] sm:$0xff]  ;;  %v2861_v12 = vld [vmem:[%s2837_s25 + $0x18] sm:$0xff]  ;;  %s2309_s10 = sld [smem:[#allocation2 + $0x1d]]  ;;  %s2314_s11 = sld [smem:[#allocation2 + $0x16]] }
  0x56   : > { %v307_v3 = vmul.f32 %v306_v2, %v2840_v0  ;;  %v2847_v4 = vld [vmem:[%s2837_s25] sm:$0xff]  ;;  %v2850_v5 = vld [vmem:[%s2837_s25 + $0x8] sm:$0xff]  ;;  %v308_v7 = vmul.f32 %v306_v2, %v2843_v1  ;;  %v355_v15 = vstv %s2226_s26  ;;  %v334_v16 = vmul.f32 %v2861_v12, %v333_v10  ;;  %v2876_v19 = vld [vmem:[%s2837_s25 + $0x38] sm:$0xff]  ;;  %s2318_s12 = sld [smem:[#allocation2 + $0x1e]]  ;;  %s2469_s13 = sld [smem:[#allocation2 + $0x34]] }
  0x57   : > { %v285_v8 = vmul.f32 %v284_v6, %v2847_v4  ;;  %v2856_v9 = vld [vmem:[%s2837_s25 + $0x20] sm:$0xff]  ;;  %v286_v11 = vmul.f32 %v284_v6, %v2850_v5  ;;  %v382_v20 = vstv %s2231_s28  ;;  %v2881_v22 = vld [vmem:[%s2837_s25 + $0x30] sm:$0xff]  ;;  %v431_v30 = vstv %s2240_s30  ;;  %s2475_s14 = sld [smem:[#allocation2 + $0x35]]  ;;  %s2471_s15 = sld [smem:[#allocation2 + $0x3c]] }
  0x58   : > { %311 = vrot.lane.b32.xlu1 %v307_v3, %s4719_s27  ;;  %v335_v13 = vmul.f32 %v2856_v9, %v333_v10  ;;  %v2866_v14 = vld [vmem:[%s2837_s25 + $0x21] sm:$0xff]  ;;  %v2871_v17 = vld [vmem:[%s2837_s25 + $0x19] sm:$0xff]  ;;  %v384_v23 = vmul.f32 %v2876_v19, %v382_v20  ;;  %v404_v25 = vstv %s2235_s29  ;;  %v383_v26 = vmul.f32 %v2881_v22, %v382_v20  ;;  %s2484_s16 = sld [smem:[#allocation2 + $0x36]]  ;;  %s2950_s17 = sld [smem:[#allocation2 + $0x17]] }
  0x59   : > { %289 = vrot.lane.b32.xlu0 %v285_v8, %s4719_s27  ;;  %v357_v18 = vmul.f32 %v2866_v14, %v355_v15  ;;  %v356_v21 = vmul.f32 %v2871_v17, %v355_v15  ;;  %v2886_v24 = vld [vmem:[%s2837_s25 + $0x39] sm:$0xff]  ;;  %v2891_v27 = vld [vmem:[%s2837_s25 + $0x31] sm:$0xff]  ;;  %v2901_v32 = vld [vmem:[%s2837_s25 + $0x48] sm:$0xff]  ;;  %s2959_s19 = sld [smem:[#allocation2 + $0x3d]]  ;;  %s2963_s20 = sld [smem:[#allocation2 + $0x8]] }
  0x5a   : > { %v406_v28 = vmul.f32 %v2886_v24, %v404_v25  ;;  %v2896_v29 = vld [vmem:[%s2837_s25 + $0x50] sm:$0xff]  ;;  %v405_v31 = vmul.f32 %v2891_v27, %v404_v25  ;;  %v453_v35 = vstv %s2244_s6  ;;  %v432_v36 = vmul.f32 %v2901_v32, %v431_v30  ;;  %v2955_v6 = vld [vmem:[%s2837_s25 + $0x2] sm:$0xff]  ;;  %s2965_s21 = sld [smem:[#allocation2 + $0x37]]  ;;  %s2969_s23 = sld [smem:[#allocation2 + $0x3e]] }
  0x5b   : > { %v433_v33 = vmul.f32 %v2896_v29, %v431_v30  ;;  %v2906_v34 = vld [vmem:[%s2837_s25 + $0x51] sm:$0xff]  ;;  %v2911_v37 = vld [vmem:[%s2837_s25 + $0x49] sm:$0xff]  ;;  %v711_v39 = vstv %s2299_s7  ;;  %v733_v42 = vstv %s2301_s8  ;;  %s2971_s24 = sld [smem:[#allocation2 + $0x1f]]  ;;  %s2976_s28 = sld [smem:[#allocation2]] }
  0x5c   : > { %313 = vrot.lane.b32.xlu1 %v308_v7, %s4719_s27  ;;  %v455_v38 = vmul.f32 %v2906_v34, %v453_v35  ;;  %v454_v40 = vmul.f32 %v2911_v37, %v453_v35  ;;  %v713_v41 = vmul.f32 %v711_v39, %v2850_v5  ;;  %v712_v43 = vmul.f32 %v711_v39, %v2847_v4  ;;  %v2948_v63 = vld [vmem:[%s2837_s25 + $0xa] sm:$0xff]  ;;  %s2974_s26 = sld [smem:[#allocation2 + $0x3f]]  ;;  %s2980_s29 = sld [smem:[#allocation4]] }
  0x5d   : > { %291 = vrot.lane.b32.xlu0 %v286_v11, %s4719_s27  ;;  %v735_v44 = vmul.f32 %v733_v42, %v2843_v1  ;;  %v759_v45 = vstv %s2305_s9  ;;  %v734_v46 = vmul.f32 %v733_v42, %v2840_v0  ;;  %v781_v48 = vstv %s2309_s10  ;;  %s2982_s30 = sld [smem:[#allocation6]]  ;;  %s2984_s6 = sld [smem:[#allocation6 + $0x4]]  ;;  %v3066_v42 = vld [vmem:[%s2837_s25 + $0x4a] sm:$0xff] }
  0x5e   : > { %v761_v47 = vmul.f32 %v2856_v9, %v759_v45  ;;  %v760_v49 = vmul.f32 %v2861_v12, %v759_v45  ;;  %v783_v50 = vmul.f32 %v2866_v14, %v781_v48  ;;  %v807_v51 = vstv %s2314_s11  ;;  %s2986_s7 = sld [smem:[#allocation6 + $0x8]]  ;;  %s2990_s8 = sld [smem:[#allocation6 + $0xc]] }
  0x5f   : > { %v782_v52 = vmul.f32 %v2871_v17, %v781_v48  ;;  %v809_v53 = vmul.f32 %v2876_v19, %v807_v51  ;;  %v829_v54 = vstv %s2318_s12  ;;  %v808_v55 = vmul.f32 %v2881_v22, %v807_v51  ;;  %s2992_s9 = sld [smem:[#allocation6 + $0x10]]  ;;  %s2998_s10 = sld [smem:[#allocation6 + $0x14]] }
  0x60   : > { %340 = vrot.lane.b32.xlu1 %v335_v13, %s4719_s27  ;;  %v831_v56 = vmul.f32 %v2886_v24, %v829_v54  ;;  %v1623_v57 = vstv %s2469_s13  ;;  %v830_v58 = vmul.f32 %v2891_v27, %v829_v54  ;;  %v1671_v60 = vstv %s2475_s14  ;;  %s3000_s11 = sld [smem:[#allocation6 + $0x18]]  ;;  %s3004_s12 = sld [smem:[#allocation6 + $0x1c]]  ;;  %v2397_v54 = vld [vmem:[%s2837_s25 + $0x31] sm:$0xff] }
  0x61   : > { %338 = vrot.lane.b32.xlu0 %v334_v16, %s4719_s27  ;;  %v1625_v59 = vmul.f32 %v1623_v57, %v2843_v1  ;;  %v1624_v61 = vmul.f32 %v1623_v57, %v2840_v0  ;;  %v1673_v62 = vmul.f32 %v2866_v14, %v1671_v60  ;;  %v1645_v2 = vstv %s2471_s15  ;;  %s3006_s13 = sld [smem:[#allocation2 + $0x1]]  ;;  %s3024_s0 = sld [smem:[#allocation6 + $0x5]] }
  0x62   : > { %v1672_v3 = vmul.f32 %v2871_v17, %v1671_v60  ;;  %v1647_v7 = vmul.f32 %v1645_v2, %v2948_v63  ;;  %v1719_v8 = vstv %s2484_s16  ;;  %v1646_v10 = vmul.f32 %v1645_v2, %v2955_v6  ;;  %s3011_s14 = sld [smem:[#allocation2 + $0x9]]  ;;  %s3017_s16 = sld [smem:[#allocation7]] }
  0x63   : > { %v1721_v11 = vmul.f32 %v2886_v24, %v1719_v8  ;;  %v855_v13 = vstv %s2950_s17  ;;  %v1720_v15 = vmul.f32 %v2891_v27, %v1719_v8  ;;  %4853 = sst [smem:[#allocation14_spill]] %s2984_s6  ;;  %v1693_v20 = vstv %s2959_s19  ;;  %s3013_s15 = sld [smem:[#allocation4 + $0x1]] }
  0x64   : > { %362 = vrot.lane.b32.xlu1 %v357_v18, %s4719_s27  ;;  %4854 = sst [smem:[#allocation15_spill]] %s2986_s7  ;;  %v857_v16 = vmul.f32 %v2896_v29, %v855_v13  ;;  %v2995_v18 = vld [vmem:[%s2837_s25 + $0x22] sm:$0xff]  ;;  %s3019_s17 = sld [smem:[#allocation6 + $0x1]]  ;;  %v300_v35 = vstv %s2963_s20  ;;  %v877_v39 = vstv %s2971_s24 }
  0x65   : > { %360 = vrot.lane.b32.xlu0 %v356_v21, %s4719_s27  ;;  %4855 = sst [smem:[#allocation16_spill]] %s2990_s8  ;;  %v856_v21 = vmul.f32 %v2901_v32, %v855_v13  ;;  %v1695_v25 = vmul.f32 %v2995_v18, %v1693_v20  ;;  %s3022_s19 = sld [smem:[#allocation7 + $0x1]]  ;;  %v879_v48 = vmul.f32 %v2906_v34, %v877_v39 }
  0x66   : > { %4856 = sst [smem:[#allocation17_spill]] %s2992_s9  ;;  %s3028_s1 = sld [smem:[#allocation7 + $0x2]] }
  0x67   : > { %4857 = sst [smem:[#allocation18_spill]] %s2998_s10  ;;  %s3030_s2 = sld [smem:[#allocation6 + $0x9]] }
  0x68   : > { %389 = vrot.lane.b32.xlu1 %v384_v23, %s4719_s27  ;;  %4858 = sst [smem:[#allocation19_spill]] %s3000_s11  ;;  %v3009_v23 = vld [vmem:[%s2837_s25 + $0x1a] sm:$0xff]  ;;  %s3032_s3 = sld [smem:[#allocation7 + $0x3]]  ;;  %v349_v2 = vstv %s3011_s14  ;;  %v3140_v8 = vstv %s3017_s16 }
  0x69   : > { %387 = vrot.lane.b32.xlu0 %v383_v26, %s4719_s27  ;;  %4859 = sst [smem:[#allocation20_spill]] %s3004_s12  ;;  %v1767_v26 = vstv %s2965_s21  ;;  %s3034_s4 = sld [smem:[#allocation6 + $0xd]]  ;;  %4879 = vst [vmem:[#allocation37_spill] sm:$0xff] %v3140_v8 }
  0x6a   : > { %4860 = sst [smem:[#allocation21_spill]] %s3019_s17  ;;  %v1769_v30 = vmul.f32 %v2906_v34, %v1767_v26  ;;  %s3038_s21 = sld [smem:[#allocation7 + $0x4]] }
  0x6b   : > { %4861 = sst [smem:[#allocation22_spill]] %s3022_s19  ;;  %s3040_s18 = sld [smem:[#allocation6 + $0x11]] }
  0x6c   : > { %411 = vrot.lane.b32.xlu1 %v406_v28, %s4719_s27  ;;  %4862 = sst [smem:[#allocation23_spill]] %s3024_s0  ;;  %v1694_v28 = vmul.f32 %v3009_v23, %v1693_v20  ;;  %s3046_s5 = sld [smem:[#allocation7 + $0x5]] }
  0x6d   : > { %409 = vrot.lane.b32.xlu0 %v405_v31, %s4719_s27  ;;  %4863 = sst [smem:[#allocation24_spill]] %s3028_s1  ;;  %v3043_v31 = vld [vmem:[%s2837_s25 + $0x3a] sm:$0xff]  ;;  %s3048_s22 = sld [smem:[#allocation6 + $0x15]] }
  0x6e   : > { %4864 = sst [smem:[#allocation25_spill]] %s3030_s2  ;;  %s3086_s24 = sld [smem:[#allocation4 + $0x2]] }
  0x6f   : > { %4865 = sst [smem:[#allocation26_spill]] %s3032_s3  ;;  %s3070_s20 = sld [smem:[#allocation6 + $0x1d]] }
  0x70   : > { %438 = vrot.lane.b32.xlu1 %v433_v33, %s4719_s27  ;;  %4866 = sst [smem:[#allocation27_spill]] %s3034_s4  ;;  %v1741_v33 = vstv %s2969_s23  ;;  %s3056_s4 = sld [smem:[#allocation7 + $0x6]] }
  0x71   : > { %436 = vrot.lane.b32.xlu0 %v432_v36, %s4719_s27  ;;  %4867 = sst [smem:[#allocation28_spill]] %s3038_s21  ;;  %v1768_v36 = vmul.f32 %v2911_v37, %v1767_v26  ;;  %s3058_s21 = sld [smem:[#allocation6 + $0x19]] }
  0x72   : > { %4868 = sst [smem:[#allocation29_spill]] %s3040_s18  ;;  %s3068_s23 = sld [smem:[#allocation7 + $0x7]] }
  0x73   : > { %4869 = sst [smem:[#allocation30_spill]] %s3048_s22  ;;  %s3122_s7 = sld [smem:[#allocation6 + $0x16]] }
  0x74   : > { %460 = vrot.lane.b32.xlu1 %v455_v38, %s4719_s27  ;;  %v3054_v38 = vld [vmem:[%s2837_s25 + $0x32] sm:$0xff]  ;;  %s3074_s22 = sld [smem:[#allocation2 + $0x2]]  ;;  %4874 = sst [smem:[#allocation35_spill]] %s3086_s24 }
  0x75   : > { %458 = vrot.lane.b32.xlu0 %v454_v40, %s4719_s27  ;;  %v3062_v40 = vld [vmem:[%s2837_s25 + $0x52] sm:$0xff]  ;;  %4873 = sst [smem:[#allocation34_spill]] %s3070_s20  ;;  %v1742_v45 = vmul.f32 %v3054_v38, %v1741_v33  ;;  %s3128_s6 = sld [smem:[#allocation6 + $0x1a]] }
  0x76   : > { %4870 = sst [smem:[#allocation31_spill]] %s3056_s4  ;;  %s3076_s4 = sld [smem:[#allocation2 + $0xa]] }
  0x77   : > { %4871 = sst [smem:[#allocation32_spill]] %s3058_s21  ;;  %s3101_s24 = sld [smem:[#allocation6 + $0x6]] }
  0x78   : > { %718 = vrot.lane.b32.xlu1 %v713_v41, %s4719_s27  ;;  %v1789_v41 = vstv %s2974_s26  ;;  %4872 = sst [smem:[#allocation33_spill]] %s3068_s23  ;;  %s3088_s26 = sld [smem:[#allocation2 + $0x24]] }
  0x79   : > { %716 = vrot.lane.b32.xlu0 %v712_v43, %s4719_s27  ;;  %v1743_v43 = vmul.f32 %v3043_v31, %v1741_v33  ;;  %v3097_v51 = vmul.f32 %v3066_v42, %v1789_v41  ;;  %s3111_s20 = sld [smem:[#allocation6 + $0xe]]  ;;  %s4875_s23 = smov 127  }
  0x7a   : > { %s3130_s8 = sld [smem:[#allocation2 + $0x25]]  ;;  %s3143_s12 = sld [smem:[#allocation6 + $0x1e]]  ;;  %v378_v33 = vstv %s3074_s22 }
  0x7b   : > { %4876 = sst [smem:[#allocation36_spill]] %s3128_s6  ;;  %s3151_s14 = sld [smem:[#allocation2 + $0xb]] }
  0x7c   : > { %740 = vrot.lane.b32.xlu1 %v735_v44, %s4719_s27  ;;  %v3079_v44 = vmul.f32 %v300_v35, %v2840_v0  ;;  %s3153_s11 = sld [smem:[#allocation4 + $0x3]]  ;;  %s3162_s16 = sld [smem:[#allocation2 + $0x10]] }
  0x7d   : > { %738 = vrot.lane.b32.xlu0 %v734_v46, %s4719_s27  ;;  %v280_v46 = vstv %s2976_s28  ;;  %s3099_s28 = sld [smem:[#allocation6 + $0x2]]  ;;  %s4882_s0 = sld [smem:[#allocation31_spill]]  ;;  %v3233_v13 = vstv %s3101_s24 }
  0x7e   : > { %s3164_s17 = sld [smem:[#allocation2 + $0x18]]  ;;  %s3171_s1 = sld [smem:[#allocation6 + $0x3]] }
  0x7f   : > { %s3177_s10 = sld [smem:[#allocation2 + $0x2c]]  ;;  %s3186_s3 = sld [smem:[#allocation6 + $0x7]]  ;;  %v3244_v26 = vstv %s3111_s20 }
  0x80   : > { %766 = vrot.lane.b32.xlu1 %v761_v47, %s4719_s27  ;;  %v3084_v47 = vmul.f32 %v300_v35, %v2843_v1  ;;  %4880 = sst [smem:[#allocation38_spill]] %s3143_s12  ;;  %v3174_v35 = vld [vmem:[%s2837_s25 + $0x1] sm:$0xff]  ;;  %s3188_s22 = sld [smem:[#allocation6 + $0xb]]  ;;  %4887 = vst [vmem:[#allocation40_spill] sm:$0xff] %v3244_v26  ;;  %v2398_v26 = vld [vmem:[%s2837_s25 + $0x39] sm:$0xff] }
  0x81   : > { %764 = vrot.lane.b32.xlu0 %v760_v49, %s4719_s27  ;;  %v878_v49 = vmul.f32 %v2911_v37, %v877_v39  ;;  %4884 = vst [vmem:[#allocation39_spill] sm:$0xff] %v3174_v35  ;;  %v3181_v39 = vmul.f32 %v2866_v14, %v349_v2  ;;  %s4886_s18 = sld [smem:[#allocation35_spill]]  ;;  %s3198_s19 = sld [smem:[#allocation6 + $0x13]] }
  0x82   : > { %s3212_s2 = sld [smem:[#allocation2 + $0x11]]  ;;  %s3228_s21 = sld [smem:[#allocation2 + $0x26]]  ;;  %v707_v60 = vstv %s3162_s16 }
  0x83   : > { %s3224_s9 = sld [smem:[#allocation2 + $0x19]]  ;;  %s3260_s24 = sld [smem:[#allocation2 + $0x1a]] }
  0x84   : > { %788 = vrot.lane.b32.xlu1 %v783_v50, %s4719_s27  ;;  %v3094_v50 = vmul.f32 %v3062_v40, %v1789_v41  ;;  %s3262_s20 = sld [smem:[#allocation6 + $0x4]]  ;;  %s3302_s16 = sld [smem:[#allocation6 + $0x8]] }
  0x85   : > { %786 = vrot.lane.b32.xlu0 %v782_v52, %s4719_s27  ;;  %v3104_v52 = vstv %s2980_s29  ;;  %s3120_s29 = sld [smem:[#allocation6 + $0x12]]  ;;  %v1221_v57 = vstv %s3177_s10  ;;  %s3284_s10 = sld [smem:[#allocation2 + $0x30]] }
  0x86   : > { %s3313_s12 = sld [smem:[#allocation6 + $0x1]]  ;;  %s3315_s6 = sld [smem:[#allocation7 + $0x2]] }
  0x88   : > { %814 = vrot.lane.b32.xlu1 %v809_v53, %s4719_s27  ;;  %v1295_v53 = vstv %s3228_s21  ;;  %s3356_s21 = sld [smem:[#allocation2 + $0x39]] }
  0x89   : > { %812 = vrot.lane.b32.xlu0 %v808_v55, %s4719_s27  ;;  %v775_v55 = vstv %s3224_s9  ;;  %s3343_s9 = sld [smem:[#allocation7 + $0x3]] }
  0x8c   : > { %836 = vrot.lane.b32.xlu1 %v831_v56, %s4719_s27  ;;  %v3295_v56 = vmul.f32 %v707_v60, %v2847_v4 }
  0x8d   : > { %834 = vrot.lane.b32.xlu0 %v830_v58, %s4719_s27  ;;  %v727_v58 = vstv %s3164_s17  ;;  %s3286_s17 = sld [smem:[#allocation2 + $0x31]] }
  0x90   : > { %1630 = vrot.lane.b32.xlu1 %v1625_v59, %s4719_s27  ;;  %v3118_v59 = vmul.f32 %v280_v46, %v2847_v4  ;;  %v1222_v4 = vmul.f32 %v2955_v6, %v1221_v57 }
  0x91   : > { %1628 = vrot.lane.b32.xlu0 %v1624_v61, %s4719_s27  ;;  %v3281_v61 = vstv %s3153_s11  ;;  %s3300_s11 = sld [smem:[#allocation2 + $0x38]] }
  0x94   : > { %1678 = vrot.lane.b32.xlu1 %v1673_v62, %s4719_s27  ;;  %v329_v62 = vstv %s3006_s13  ;;  %s3145_s13 = sld [smem:[#allocation2 + $0x3]] }
  0x95   : > { %1676 = vrot.lane.b32.xlu0 %v1672_v3, %s4719_s27  ;;  %v3134_v3 = vmul.f32 %v280_v46, %v2850_v5  ;;  %v3157_v20 = vmul.f32 %v2856_v9, %v329_v62 }
  0x98   : > { %1652 = vrot.lane.b32.xlu1 %v1647_v7, %s4719_s27  ;;  %v3137_v7 = vstv %s3013_s15  ;;  %s4881_s15 = sld [smem:[#allocation30_spill]] }
  0x99   : > { %1650 = vrot.lane.b32.xlu0 %v1646_v10, %s4719_s27 }
  0x9a   : > { %v427_v46 = vstv %s3145_s13  ;;  %s3270_s13 = sld [smem:[#allocation2 + $0x2d]] }
  0x9c   : > { %1726 = vrot.lane.b32.xlu1 %v1721_v11, %s4719_s27  ;;  %v2389_v11 = vld [vmem:[%s2837_s25 + $0x21] sm:$0xff] }
  0x9d   : > { %1724 = vrot.lane.b32.xlu0 %v1720_v15, %s4719_s27 }
  0xa0   : > { %862 = vrot.lane.b32.xlu1 %v857_v16, %s4719_s27  ;;  %v1247_v16 = vstv %s3130_s8  ;;  %s3251_s8 = sld [smem:[#allocation2 + $0x12]] }
  0xa1   : > { %860 = vrot.lane.b32.xlu0 %v856_v21, %s4719_s27  ;;  %v3267_v21 = vmul.f32 %v2896_v29, %v427_v46 }
  0xa4   : > { %1700 = vrot.lane.b32.xlu1 %v1695_v25, %s4719_s27 }
  0xa5   : > { %1698 = vrot.lane.b32.xlu0 %v1694_v28, %s4719_s27  ;;  %v3167_v28 = vmul.f32 %v2861_v12, %v329_v62  ;;  %v3208_v62 = vmul.f32 %v2881_v22, %v378_v33 }
  0xa8   : > { %1774 = vrot.lane.b32.xlu1 %v1769_v30, %s4719_s27  ;;  %v3194_v30 = vmul.f32 %v2871_v17, %v349_v2 }
  0xa9   : > { %1772 = vrot.lane.b32.xlu0 %v1768_v36, %s4719_s27  ;;  %s3109_s27 = sld [smem:[#allocation6 + $0xa]]  ;;  %v1199_v36 = vstv %s3088_s26  ;;  %s3196_s26 = sld [smem:[#allocation6 + $0xf]] }
  0xaa   : > { %v1200_v2 = vmul.f32 %v1199_v36, %v3174_v35  ;;  %v3334_v35 = vstv %s3198_s19  ;;  %s3354_s19 = sld [smem:[#allocation2 + $0x13]] }
  0xab   : > { %4892 = vst [vmem:[#allocation45_spill] sm:$0xff] %v3334_v35  ;;  %v803_v35 = vstv %s3251_s8  ;;  %s3390_s8 = sld [smem:[#allocation7 + $0x4]] }
  0xac   : > { %1748 = vrot.lane.b32.xlu1 %v1743_v43, %s4875_s23  ;;  %v3222_v43 = vstv %s3099_s28  ;;  %s3241_s28 = sld [smem:[#allocation6 + $0x1f]] }
  0xad   : > { %1746 = vrot.lane.b32.xlu0 %v1742_v45, %s4875_s23  ;;  %v398_v45 = vstv %s3076_s4  ;;  %s3210_s4 = sld [smem:[#allocation6 + $0x17]] }
  0xae   : > { %v3216_v25 = vmul.f32 %v2886_v24, %v398_v45  ;;  %v3248_v15 = vmul.f32 %v2891_v27, %v398_v45  ;;  %v1249_v45 = vmul.f32 %v2389_v11, %v1247_v16  ;;  %v3305_v11 = vstv %s3171_s1  ;;  %s3326_s1 = sld [smem:[#allocation2 + $0x27]] }
  0xaf   : > { %v3236_v10 = vstv %s3109_s27  ;;  %s3254_s27 = sld [smem:[#allocation6]]  ;;  %4888 = vst [vmem:[#allocation41_spill] sm:$0xff] %v3305_v11  ;;  %v823_v11 = vstv %s3260_s24  ;;  %s3392_s24 = sld [smem:[#allocation6 + $0x14]] }
  0xb0   : > { %884 = vrot.lane.b32.xlu1 %v879_v48, %s4875_s23  ;;  %v3205_v48 = vmul.f32 %v2876_v19, %v378_v33  ;;  %v2388_v33 = vld [vmem:[%s2837_s25 + $0x19] sm:$0xff] }
  0xb1   : > { %882 = vrot.lane.b32.xlu0 %v878_v49, %s4875_s23  ;;  %v1194_v49 = vld [vmem:[%s2837_s25 + $0x9] sm:$0xff] }
  0xb2   : > { %v1201_v41 = vmul.f32 %v1199_v36, %v1194_v49  ;;  %v1248_v36 = vmul.f32 %v2388_v33, %v1247_v16  ;;  %v3308_v16 = vstv %s3186_s3  ;;  %s3341_s3 = sld [smem:[#allocation2 + $0x32]] }
  0xb3   : > { %4889 = vst [vmem:[#allocation42_spill] sm:$0xff] %v3308_v16  ;;  %v3337_v16 = vstv %s3210_s4  ;;  %s3374_s4 = sld [smem:[#allocation2 + $0x2e]] }
  0xb4   : > { %1796 = vrot.lane.b32.xlu1 %v3094_v50, %s4875_s23  ;;  %v3219_v50 = vstv %s4886_s18  ;;  %s3239_s18 = sld [smem:[#allocation6 + $0x1b]]  ;;  %4893 = vst [vmem:[#allocation46_spill] sm:$0xff] %v3337_v16  ;;  %v1269_v16 = vstv %s3270_s13  ;;  %s3413_s13 = sld [smem:[#allocation2 + $0x2f]] }
  0xb5   : > { %1794 = vrot.lane.b32.xlu0 %v3097_v51, %s4875_s23  ;;  %v447_v51 = vstv %s3151_s14  ;;  %s3272_s14 = sld [smem:[#allocation7 + $0x1]] }
  0xb6   : > { %v3278_v33 = vmul.f32 %v2906_v34, %v447_v51  ;;  %v3289_v49 = vmul.f32 %v2911_v37, %v447_v51  ;;  %v3321_v51 = vmul.f32 %v727_v58, %v2840_v0 }
  0xb8   : > { %1204 = vrot.lane.b32.xlu1 %v1200_v2, %s4875_s23  ;;  %v3275_v2 = vmul.f32 %v2901_v32, %v427_v46  ;;  %v3292_v46 = vmul.f32 %v707_v60, %v2850_v5  ;;  %v755_v5 = vstv %s3212_s2  ;;  %v3318_v60 = vstv %s3188_s22  ;;  %s3328_s2 = sld [smem:[#allocation6 + $0x5]]  ;;  %s3366_s22 = sld [smem:[#allocation6 + $0xc]] }
  0xb9   : > { %1206 = vrot.lane.b32.xlu0 %v1201_v41, %s4875_s23  ;;  %v3298_v41 = vmul.f32 %v727_v58, %v2843_v1  ;;  %4890 = vst [vmem:[#allocation43_spill] sm:$0xff] %v3318_v60  ;;  %v1223_v58 = vmul.f32 %v2948_v63, %v1221_v57  ;;  %v3359_v57 = vmul.f32 %v2861_v12, %v755_v5  ;;  %v3377_v12 = vstv %s3254_s27  ;;  %s3401_s27 = sld [smem:[#allocation2 + $0x3a]] }
  0xba   : > { %v3346_v60 = vstv %s3239_s18  ;;  %4896 = vst [vmem:[#allocation49_spill] sm:$0xff] %v3377_v12  ;;  %s3382_s18 = sld [smem:[#allocation6 + $0x9]]  ;;  %v3395_v12 = vmul.f32 %v2881_v22, %v803_v35  ;;  %v1270_v22 = vmul.f32 %v3009_v23, %v1269_v16 }
  0xbb   : > { %4894 = vst [vmem:[#allocation47_spill] sm:$0xff] %v3346_v60  ;;  %v3371_v60 = vmul.f32 %v2871_v17, %v775_v55 }
  0xbc   : > { %1252 = vrot.lane.b32.xlu1 %v1248_v36, %s4875_s23  ;;  %v3331_v36 = vstv %s3196_s26  ;;  %s3368_s26 = sld [smem:[#allocation6 + $0x10]] }
  0xbd   : > { %4891 = vst [vmem:[#allocation44_spill] sm:$0xff] %v3331_v36  ;;  %1254 = vrot.lane.b32.xlu0 %v1249_v45, %s4875_s23  ;;  %v3350_v36 = vmul.f32 %v2856_v9, %v755_v5  ;;  %v3362_v45 = vmul.f32 %v2866_v14, %v775_v55  ;;  %v1296_v9 = vmul.f32 %v2397_v54, %v1295_v53  ;;  %4895 = vst [vmem:[#allocation48_spill] sm:$0xff] %v3371_v60 }
  0xbe   : > { %v3380_v5 = vstv %s3262_s20  ;;  %v3385_v54 = vmul.f32 %v2876_v19, %v803_v35  ;;  %v1667_v55 = vstv %s3286_s17  ;;  %v1297_v60 = vmul.f32 %v2398_v26, %v1295_v53  ;;  %s3406_s20 = sld [smem:[#allocation6 + $0xd]]  ;;  %s3447_s17 = sld [smem:[#allocation2 + $0x1b]] }
  0xbf   : > { %4897 = vst [vmem:[#allocation50_spill] sm:$0xff] %v3380_v5  ;;  %v3398_v5 = vmul.f32 %v2886_v24, %v823_v11  ;;  %v1639_v19 = vstv %s3300_s11  ;;  %v3409_v53 = vmul.f32 %v2891_v27, %v823_v11  ;;  %v3416_v26 = vstv %s3313_s12  ;;  %s3434_s12 = sld [smem:[#allocation2 + $0x33]]  ;;  %s3449_s11 = sld [smem:[#allocation6 + $0x11]] }
  0xc0   : > { %1226 = vrot.lane.b32.xlu1 %v1222_v4, %s4875_s23  ;;  %4898 = vst [vmem:[#allocation51_spill] sm:$0xff] %v3385_v54  ;;  %v1619_v4 = vstv %s3284_s10  ;;  %v3404_v54 = vstv %s3272_s14  ;;  %4901 = vst [vmem:[#allocation54_spill] sm:$0xff] %v3416_v26  ;;  %v3419_v35 = vstv %s3302_s16  ;;  %s3421_s10 = sld [smem:[#allocation7 + $0x5]]  ;;  %s3436_s14 = sld [smem:[#allocation6 + $0x18]] }
  0xc1   : > { %1228 = vrot.lane.b32.xlu0 %v1223_v58, %s4875_s23  ;;  %4899 = vst [vmem:[#allocation52_spill] sm:$0xff] %v3404_v54  ;;  %4900 = vst [vmem:[#allocation53_spill] sm:$0xff] %v3409_v53  ;;  %v3424_v58 = vmul.f32 %v1619_v4, %v2843_v1  ;;  %v3427_v11 = vmul.f32 %v1619_v4, %v2840_v0  ;;  %v2406_v54 = vld [vmem:[%s2837_s25 + $0x49] sm:$0xff]  ;;  %v1343_v53 = vstv %s3326_s1  ;;  %v3458_v26 = vstv %s3328_s2  ;;  %s3460_s16 = sld [smem:[#allocation7 + $0x6]]  ;;  %s3472_s1 = sld [smem:[#allocation6 + $0x15]] }
  0xc2   : > { %4902 = vst [vmem:[#allocation55_spill] sm:$0xff] %v3419_v35  ;;  %v3439_v35 = vmul.f32 %v2871_v17, %v1667_v55  ;;  %v3443_v0 = vmul.f32 %v1639_v19, %v2948_v63  ;;  %v1271_v1 = vmul.f32 %v2995_v18, %v1269_v16  ;;  %v3452_v4 = vmul.f32 %v1639_v19, %v2955_v6  ;;  %v2407_v17 = vld [vmem:[%s2837_s25 + $0x51] sm:$0xff]  ;;  %s3482_s2 = sld [smem:[#allocation2 + $0x3b]] }
  0xc3   : > { %4903 = vst [vmem:[#allocation56_spill] sm:$0xff] %v3427_v11  ;;  %4908 = vst [vmem:[#allocation61_spill] sm:$0xff] %v3458_v26  ;;  %v1344_v63 = vmul.f32 %v2406_v54, %v1343_v53  ;;  %v3464_v16 = vstv %s3315_s6  ;;  %v1317_v26 = vstv %s3374_s4  ;;  %v3485_v54 = vstv %s3382_s18  ;;  %s3487_s6 = sld [smem:[#allocation6 + $0x1c]]  ;;  %s3537_s4 = sld [smem:[#allocation6 + $0x1e]] }
  0xc4   : > { %1300 = vrot.lane.b32.xlu1 %v1296_v9, %s4875_s23  ;;  %v3430_v9 = vmul.f32 %v2866_v14, %v1667_v55  ;;  %4905 = vst [vmem:[#allocation58_spill] sm:$0xff] %v3439_v35  ;;  %4906 = vst [vmem:[#allocation59_spill] sm:$0xff] %v3443_v0  ;;  %v1715_v14 = vstv %s3341_s3  ;;  %v851_v55 = vstv %s3354_s19  ;;  %v3467_v35 = vstv %s3366_s22  ;;  %s3499_s3 = sld [smem:[#allocation6 + $0x12]]  ;;  %s3513_s19 = sld [smem:[#allocation6 + $0x16]] }
  0xc5   : > { %1302 = vrot.lane.b32.xlu0 %v1297_v60, %s4875_s23  ;;  %4907 = vst [vmem:[#allocation60_spill] sm:$0xff] %v3452_v4  ;;  %v1687_v60 = vstv %s3356_s21  ;;  %4909 = vst [vmem:[#allocation62_spill] sm:$0xff] %v3464_v16  ;;  %v3470_v0 = vstv %s3343_s9  ;;  %v3475_v6 = vmul.f32 %v2886_v24, %v1715_v14  ;;  %v3478_v19 = vmul.f32 %v2891_v27, %v1715_v14  ;;  %s3501_s9 = sld [smem:[#allocation6 + $0x19]]  ;;  %s3515_s21 = sld [smem:[#allocation7 + $0x7]] }
  0xc6   : > { %4904 = vst [vmem:[#allocation57_spill] sm:$0xff] %v3430_v9  ;;  %4910 = vst [vmem:[#allocation63_spill] sm:$0xff] %v3467_v35  ;;  %v1345_v35 = vmul.f32 %v2407_v17, %v1343_v53  ;;  %v3491_v24 = vmul.f32 %v2896_v29, %v851_v55  ;;  %v3494_v27 = vmul.f32 %v2901_v32, %v851_v55  ;;  %v1735_v53 = vstv %s3401_s27  ;;  %v2410_v17 = vld [vmem:[%s2837_s25 + $0x4a] sm:$0xff]  ;;  %s3524_s22 = sld [smem:[#allocation6 + $0x1a]]  ;;  %s3550_s18 = sld [smem:[#allocation6 + $0x1f]] }
  0xc7   : > { %4911 = vst [vmem:[#allocation64_spill] sm:$0xff] %v3470_v0  ;;  %4912 = vst [vmem:[#allocation65_spill] sm:$0xff] %v3475_v6  ;;  %v3497_v14 = vmul.f32 %v2995_v18, %v1687_v60  ;;  %v3504_v16 = vmul.f32 %v3009_v23, %v1687_v60  ;;  %v3508_v29 = vstv %s3406_s20  ;;  %v1318_v18 = vmul.f32 %v3054_v38, %v1317_v26  ;;  %s3573_s27 = sld [smem:[#allocation6 + $0x3]]  ;;  %s3575_s20 = sld [smem:[#allocation6 + $0x6]] }
  0xc8   : > { %1274 = vrot.lane.b32.xlu1 %v1270_v22, %s4875_s23  ;;  %4913 = vst [vmem:[#allocation66_spill] sm:$0xff] %v3478_v19  ;;  %v2402_v22 = vld [vmem:[%s2837_s25 + $0x3a] sm:$0xff]  ;;  %4914 = vst [vmem:[#allocation67_spill] sm:$0xff] %v3485_v54  ;;  %v1365_v55 = vstv %s3413_s13  ;;  %v3522_v60 = vstv %s3390_s8  ;;  %s3552_s8 = sld [smem:[#allocation7]]  ;;  %s3582_s13 = sld [smem:[#allocation6 + $0x7]] }
  0xc9   : > { %1276 = vrot.lane.b32.xlu0 %v1271_v1, %s4875_s23  ;;  %4915 = vst [vmem:[#allocation68_spill] sm:$0xff] %v3491_v24  ;;  %4916 = vst [vmem:[#allocation69_spill] sm:$0xff] %v3494_v27  ;;  %v3511_v1 = vstv %s3368_s26  ;;  %v1319_v23 = vmul.f32 %v2402_v22, %v1317_v26  ;;  %s3526_s26 = sld [smem:[#allocation6 + $0x1d]]  ;;  %v1763_v27 = vstv %s3434_s12  ;;  %v3535_v24 = vstv %s3421_s10  ;;  %s4938_s10 = sld [smem:[#allocation14_spill]] }
  0xca   : > { %v312_v0 = vpop.permute.xlu1 %311  ;;  %4917 = vst [vmem:[#allocation70_spill] sm:$0xff] %v3497_v14  ;;  %4918 = vst [vmem:[#allocation71_spill] sm:$0xff] %v3504_v16  ;;  %v3541_v22 = vmul.f32 %v3043_v31, %v1735_v53  ;;  %v3545_v54 = vstv %s3449_s11  ;;  %s4940_s12 = sld [smem:[#allocation15_spill]]  ;;  %s4948_s11 = sld [smem:[#allocation18_spill]]  ;;  %v4993_v16 = vstv %s4882_s0 }
  0xcb   : > { %4919 = vst [vmem:[#allocation72_spill] sm:$0xff] %v3508_v29  ;;  %4920 = vst [vmem:[#allocation73_spill] sm:$0xff] %v3511_v1  ;;  %v290_v32 = vpop.permute.xlu0 %289  ;;  %v2411_v29 = vld [vmem:[%s2837_s25 + $0x52] sm:$0xff] }
  0xcc   : > { %1348 = vrot.lane.b32.xlu1 %v1344_v63, %s4875_s23  ;;  %4921 = vst [vmem:[#allocation74_spill] sm:$0xff] %v3522_v60  ;;  %v295_v1 = vadd.f32 %v290_v32, %v3118_v59  ;;  %v3532_v63 = vstv %s3392_s24  ;;  %4923 = vst [vmem:[#allocation76_spill] sm:$0xff] %v3535_v24  ;;  %v871_v60 = vstv %s3447_s17  ;;  %v3548_v59 = vstv %s3436_s14  ;;  %s3561_s24 = sld [smem:[#allocation6 + $0x2]]  ;;  %s4943_s14 = sld [smem:[#allocation16_spill]] }
  0xcd   : > { %4922 = vst [vmem:[#allocation75_spill] sm:$0xff] %v3532_v63  ;;  %1350 = vrot.lane.b32.xlu0 %v1345_v35, %s4875_s23  ;;  %4924 = vst [vmem:[#allocation77_spill] sm:$0xff] %v3541_v22  ;;  %v1366_v24 = vmul.f32 %v2410_v17, %v1365_v55  ;;  %v3556_v63 = vmul.f32 %v3054_v38, %v1735_v53  ;;  %v3559_v35 = vstv %s3460_s16  ;;  %s4945_s17 = sld [smem:[#allocation17_spill]]  ;;  %s4950_s16 = sld [smem:[#allocation19_spill]] }
  0xce   : > { %v314_v26 = vpop.permute.xlu1 %313  ;;  %4925 = vst [vmem:[#allocation78_spill] sm:$0xff] %v3545_v54  ;;  %4926 = vst [vmem:[#allocation79_spill] sm:$0xff] %v3548_v59  ;;  %v303_v32 = vadd.f32 %v3079_v44, %v295_v1  ;;  %v1367_v59 = vmul.f32 %v2411_v29, %v1365_v55  ;;  %v3565_v54 = vmul.f32 %v2906_v34, %v1763_v27  ;;  %v3571_v1 = vstv %s3472_s1  ;;  %s4953_s1 = sld [smem:[#allocation20_spill]] }
  0xcf   : > { %4927 = vst [vmem:[#allocation80_spill] sm:$0xff] %v3556_v63  ;;  %4928 = vst [vmem:[#allocation81_spill] sm:$0xff] %v3559_v35  ;;  %v292_v31 = vpop.permute.xlu0 %291  ;;  %v3568_v44 = vmul.f32 %v2911_v37, %v1763_v27  ;;  %v1783_v29 = vstv %s3482_s2  ;;  %v3586_v17 = vmul.f32 %v2911_v37, %v871_v60  ;;  %v3589_v55 = vstv %s3499_s3  ;;  %s4959_s2 = sld [smem:[#allocation22_spill]]  ;;  %s4962_s3 = sld [smem:[#allocation26_spill]] }
  0xd0   : > { %1322 = vrot.lane.b32.xlu1 %v1318_v18, %s4875_s23  ;;  %4929 = vst [vmem:[#allocation82_spill] sm:$0xff] %v3565_v54  ;;  %4931 = vst [vmem:[#allocation84_spill] sm:$0xff] %v3571_v1  ;;  %v317_v38 = vadd.f32 %v312_v0, %v303_v32  ;;  %v296_v53 = vadd.f32 %v292_v31, %v3134_v3  ;;  %v3579_v18 = vmul.f32 %v2906_v34, %v871_v60 }
  0xd1   : > { %4930 = vst [vmem:[#allocation83_spill] sm:$0xff] %v3568_v44  ;;  %1324 = vrot.lane.b32.xlu0 %v1319_v23, %s4875_s23  ;;  %4933 = vst [vmem:[#allocation86_spill] sm:$0xff] %v3586_v17  ;;  %v3592_v0 = vstv %s3501_s9  ;;  %v3595_v3 = vstv %s3487_s6  ;;  %v3601_v35 = vstv %s3515_s21  ;;  %v3605_v37 = vmul.f32 %v3062_v40, %v1783_v29  ;;  %s4960_s6 = sld [smem:[#allocation24_spill]]  ;;  %s4964_s9 = sld [smem:[#allocation28_spill]] }
  0xd2   : > { %4932 = vst [vmem:[#allocation85_spill] sm:$0xff] %v3579_v18  ;;  %v341_v27 = vpop.permute.xlu1 %340  ;;  %4934 = vst [vmem:[#allocation87_spill] sm:$0xff] %v3589_v55  ;;  %v321_v34 = vadd.f32 %v3104_v52, %v317_v38  ;;  %v304_v32 = vadd.f32 %v3084_v47, %v296_v53  ;;  %v3608_v60 = vstv %s3513_s19  ;;  %v3611_v47 = vstv %s3524_s22  ;;  %s4979_s19 = sld [smem:[#allocation21_spill]]  ;;  %s4981_s21 = sld [smem:[#allocation23_spill]] }
  0xd3   : > { %4935 = vst [vmem:[#allocation88_spill] sm:$0xff] %v3592_v0  ;;  %4936 = vst [vmem:[#allocation89_spill] sm:$0xff] %v3595_v3  ;;  %v345_v31 = vadd.f32 %v341_v27, %v3157_v20  ;;  %v339_v23 = vpop.permute.xlu0 %338  ;;  %v3614_v20 = vstv %s3526_s26  ;;  %v3623_v3 = vstv %s3537_s4  ;;  %v4978_v54 = vstv %s4948_s11  ;;  %s4984_s22 = sld [smem:[#allocation27_spill]]  ;;  %s4985_s26 = sld [smem:[#allocation29_spill]] }
  0xd4   : > { %4937 = vst [vmem:[#allocation90_spill] sm:$0xff] %v3601_v35  ;;  %1370 = vrot.lane.b32.xlu1 %v1366_v24, %s4875_s23  ;;  %4939 = vst [vmem:[#allocation91_spill] sm:$0xff] %v3605_v37  ;;  %v323_v38 = vmax.f32 %v321_v34, 0.0  ;;  %v318_v53 = vadd.f32 %v314_v26, %v304_v32  ;;  %v344_v27 = vadd.f32 %v339_v23, %v3167_v28  ;;  %v3629_v26 = vstv %s3552_s8  ;;  %s4987_s4 = sld [smem:[#allocation32_spill]]  ;;  %s3703_s8 = sld [smem:[#allocation6 + $0xa]] }
  0xd5   : > { %4941 = vst [vmem:[#allocation92_spill] sm:$0xff] %v3608_v60  ;;  %4942 = vst [vmem:[#allocation93_spill] sm:$0xff] %v3611_v47  ;;  %v353_v24 = vadd.f32 %v3181_v39, %v345_v31  ;;  %1372 = vrot.lane.b32.xlu0 %v1367_v59, %s4875_s23  ;;  %v3620_v35 = vmul.f32 %v3066_v42, %v1783_v29  ;;  %v4952_v34 = vstv %s2982_s30  ;;  %v4954_v32 = vstv %s4938_s10 }
  0xd6   : > { %4944 = vst [vmem:[#allocation94_spill] sm:$0xff] %v3614_v20  ;;  %v363_v40 = vpop.permute.xlu1 %362  ;;  %4947 = vst [vmem:[#allocation96_spill] sm:$0xff] %v3623_v3  ;;  %v3626_v20 = vstv %s3550_s18  ;;  %v475_v28 = vmul.f32 %v4952_v34, %v323_v38  ;;  %v504_v39 = vmul.f32 %v4954_v32, %v323_v38  ;;  %v4955_v31 = vstv %s4940_s12  ;;  %s4989_s18 = sld [smem:[#allocation33_spill]] }
  0xd7   : > { %4946 = vst [vmem:[#allocation95_spill] sm:$0xff] %v3620_v35  ;;  %4949 = vst [vmem:[#allocation97_spill] sm:$0xff] %v3626_v20  ;;  %v533_v23 = vmul.f32 %v4955_v31, %v323_v38  ;;  %v3638_v59 = vstv %s3561_s24  ;;  %v4957_v42 = vstv %s4943_s14  ;;  %v4958_v47 = vstv %s4945_s17  ;;  %v361_v0 = vpop.permute.xlu0 %360  ;;  %s3713_s24 = sld [smem:[#allocation6 + $0xb]] }
  0xd8   : > { %4951 = vst [vmem:[#allocation98_spill] sm:$0xff] %v3629_v26  ;;  %4956 = vst [vmem:[#allocation99_spill] sm:$0xff] %v3638_v59  ;;  %v562_v29 = vmul.f32 %v4957_v42, %v323_v38  ;;  %v591_v3 = vmul.f32 %v4958_v47, %v323_v38  ;;  %v3645_v20 = vstv %s3573_s27  ;;  %v3648_v26 = vstv %s3575_s20  ;;  %s4996_s27 = sld [smem:[#allocation34_spill]] }
  0xd9   : > { %4961 = vst [vmem:[#allocation100_spill] sm:$0xff] %v3645_v20  ;;  %4963 = vst [vmem:[#allocation101_spill] sm:$0xff] %v3648_v26  ;;  %v322_v34 = vadd.f32 %v3104_v52, %v318_v53  ;;  %v367_v32 = vadd.f32 %v363_v40, %v353_v24  ;;  %v352_v31 = vadd.f32 %v3194_v30, %v344_v27  ;;  %v3653_v59 = vstv %s3582_s13  ;;  %s3758_s20 = sld [smem:[#allocation6 + $0xe]]  ;;  %s3760_s13 = sld [smem:[#allocation6 + $0xf]] }
  0xda   : > { %4965 = vst [vmem:[#allocation102_spill] sm:$0xff] %v3653_v59  ;;  %v4966_v42 = vstv %s4948_s11  ;;  %v4967_v47 = vstv %s4950_s16  ;;  %v4968_v1 = vstv %s4953_s1  ;;  %v3662_v26 = vadd.f32 %v3140_v8, %v475_v28  ;;  %v390_v53 = vpop.permute.xlu1 %389  ;;  %s5037_s11 = sld [smem:[#allocation114_spill]] }
  0xdb   : > { %v620_v35 = vmul.f32 %v4966_v42, %v323_v38  ;;  %v649_v60 = vmul.f32 %v4967_v47, %v323_v38  ;;  %v678_v20 = vmul.f32 %v4968_v1, %v323_v38  ;;  %v324_v30 = vmax.f32 %v322_v34, 0.0  ;;  %v388_v44 = vpop.permute.xlu0 %387 }
  0xdc   : > { %v371_v27 = vadd.f32 %v3137_v7, %v367_v32  ;;  %v4969_v24 = vstv %s4959_s2  ;;  %v4970_v42 = vstv %s4960_s6  ;;  %v366_v47 = vadd.f32 %v361_v0, %v352_v31 }
  0xdd   : > { %v3667_v40 = vadd.f32 %v4969_v24, %v504_v39  ;;  %v3671_v59 = vadd.f32 %v4970_v42, %v533_v23  ;;  %v4971_v37 = vstv %s4962_s3  ;;  %v4972_v38 = vstv %s4964_s9 }
  0xde   : > { %v3675_v1 = vadd.f32 %v4971_v37, %v562_v29  ;;  %v3679_v28 = vadd.f32 %v4972_v38, %v591_v3  ;;  %v394_v34 = vadd.f32 %v390_v53, %v3205_v48  ;;  %v4973_v32 = vstv %s2982_s30  ;;  %s4983_s30 = sld [smem:[#allocation25_spill]] }
  0xdf   : > { %v476_v39 = vmul.f32 %v4973_v32, %v324_v30  ;;  %v4974_v24 = vstv %s4938_s10  ;;  %v4975_v42 = vstv %s4940_s12  ;;  %v4976_v31 = vstv %s4943_s14  ;;  %v412_v32 = vpop.permute.xlu1 %411  ;;  %s5019_s10 = sld [smem:[#allocation36_spill]]  ;;  %s5020_s12 = sld [smem:[#allocation38_spill]] }
  0xe0   : > { %v505_v23 = vmul.f32 %v4974_v24, %v324_v30  ;;  %v534_v0 = vmul.f32 %v4975_v42, %v324_v30  ;;  %v563_v37 = vmul.f32 %v4976_v31, %v324_v30  ;;  %v4977_v29 = vstv %s4945_s17  ;;  %s5028_s14 = sld [smem:[#allocation13_spill]] }
  0xe1   : > { %v592_v55 = vmul.f32 %v4977_v29, %v324_v30  ;;  %v621_v3 = vmul.f32 %v4978_v54, %v324_v30  ;;  %v4980_v38 = vstv %s4950_s16  ;;  %v4982_v53 = vstv %s4953_s1  ;;  %s3906_s1 = sld [smem:[#allocation6 + $0x1b]] }
  0xe2   : > { %v650_v48 = vmul.f32 %v4980_v38, %v324_v30  ;;  %v679_v17 = vmul.f32 %v4982_v53, %v324_v30  ;;  %v373_v24 = vmax.f32 %v371_v27, 0.0  ;;  %v479_v42 = vadd.f32 %v3140_v8, %v476_v39  ;;  %v410_v27 = vpop.permute.xlu0 %409 }
  0xe3   : > { %v4986_v18 = vstv %s4959_s2  ;;  %v4988_v29 = vstv %s4960_s6  ;;  %v4990_v54 = vstv %s4962_s3  ;;  %v4991_v22 = vstv %s4964_s9  ;;  %s4366_s2 = sld [smem:[#allocation2 + $0x28]]  ;;  %s4394_s6 = sld [smem:[#allocation2 + $0x29]] }
  0xe4   : > { %v508_v31 = vadd.f32 %v4986_v18, %v505_v23  ;;  %v537_v63 = vadd.f32 %v4988_v29, %v534_v0  ;;  %v566_v38 = vadd.f32 %v4990_v54, %v563_v37  ;;  %v595_v19 = vadd.f32 %v4991_v22, %v592_v55  ;;  %s4403_s3 = sld [smem:[#allocation4]]  ;;  %s4424_s9 = sld [smem:[#allocation2 + $0x22]] }
  0xe5   : > { %v4992_v30 = vstv %s3046_s5  ;;  %v653_v6 = vadd.f32 %v4993_v16, %v650_v48  ;;  %v4994_v39 = vstv %s4979_s19  ;;  %v4995_v14 = vstv %s4981_s21  ;;  %v439_v48 = vpop.permute.xlu1 %438 }
  0xe6   : > { %v624_v53 = vadd.f32 %v4992_v30, %v621_v3  ;;  %v483_v8 = vmul.f32 %v4994_v39, %v373_v24  ;;  %v512_v18 = vmul.f32 %v4995_v14, %v373_v24  ;;  %v4997_v23 = vstv %s4983_s30  ;;  %s2555_s17 = sshll.u32 %s5028_s14, 9 }
  0xe7   : > { %v541_v0 = vmul.f32 %v4997_v23, %v373_v24  ;;  %v4998_v29 = vstv %s4984_s22  ;;  %v4999_v9 = vstv %s4985_s26  ;;  %v5000_v54 = vstv %s4881_s15  ;;  %s3899_s16 = scalar_lea.vmem %s5037_s11, %s2555_s17 }
  0xe8   : > { %v570_v4 = vmul.f32 %v4998_v29, %v373_v24  ;;  %v599_v37 = vmul.f32 %v4999_v9, %v373_v24  ;;  %v628_v22 = vmul.f32 %v5000_v54, %v373_v24  ;;  %v5001_v55 = vstv %s4987_s4 }
  0xe9   : > { %v657_v3 = vmul.f32 %v5001_v55, %v373_v24  ;;  %v5002_v30 = vstv %s4989_s18  ;;  %v3731_v11 = vadd.f32 %v483_v8, %v479_v42  ;;  %v3733_v39 = vadd.f32 %v512_v18, %v508_v31  ;;  %v461_v18 = vpop.permute.xlu1 %460 }
  0xea   : > { %v682_v16 = vadd.f32 %v5002_v30, %v679_v17  ;;  %v3735_v14 = vadd.f32 %v541_v0, %v537_v63  ;;  %v3737_v23 = vadd.f32 %v570_v4, %v566_v38  ;;  %v3739_v29 = vadd.f32 %v599_v37, %v595_v19  ;;  %v437_v30 = vpop.permute.xlu0 %436 }
  0xeb   : > { %v3741_v9 = vadd.f32 %v628_v22, %v624_v53  ;;  %v3743_v54 = vadd.f32 %v657_v3, %v653_v6  ;;  %v5003_v55 = vstv %s4996_s27  ;;  %v370_v8 = vadd.f32 %v3137_v7, %v366_v47 }
  0xec   : > { %v686_v17 = vmul.f32 %v5003_v55, %v373_v24  ;;  %v393_v42 = vadd.f32 %v388_v44, %v3208_v62  ;;  %v402_v63 = vadd.f32 %v3216_v25, %v394_v34  ;;  %v443_v4 = vadd.f32 %v439_v48, %v3267_v21 }
  0xed   : > { %v5004_v19 = vstv %s3046_s5  ;;  %v5005_v53 = vstv %s4882_s0  ;;  %v442_v24 = vadd.f32 %v437_v30, %v3275_v2  ;;  %v372_v21 = vmax.f32 %v370_v8, 0.0  ;;  %s3768_s0 = sld [smem:[#allocation6 + $0x13]]  ;;  %s3770_s5 = sld [smem:[#allocation6 + $0x17]] }
  0xee   : > { %v3751_v31 = vadd.f32 %v686_v17, %v682_v16  ;;  %v623_v38 = vadd.f32 %v5004_v19, %v620_v35  ;;  %v652_v6 = vadd.f32 %v5005_v53, %v649_v60  ;;  %v5006_v25 = vstv %s4989_s18  ;;  %v459_v34 = vpop.permute.xlu0 %458  ;;  %s4498_s18 = sld [smem:[#allocation2 + $0x2b]] }
  0xef   : > { %v681_v62 = vadd.f32 %v5006_v25, %v678_v20  ;;  %v401_v35 = vadd.f32 %v3248_v15, %v393_v42  ;;  %v3766_v44 = vstv %s3703_s8  ;;  %v416_v2 = vadd.f32 %v412_v32, %v402_v63  ;;  %s4512_s8 = sld [smem:[#allocation6 + $0x12]] }
  0xf0   : > { %5007 = vst [vmem:[#allocation103_spill] sm:$0xff] %v3766_v44  ;;  %v451_v60 = vadd.f32 %v3278_v33, %v443_v4  ;;  %v450_v47 = vadd.f32 %v3289_v49, %v442_v24  ;;  %v3775_v0 = vstv %s3713_s24  ;;  %v5009_v37 = vstv %s4979_s19  ;;  %v719_v49 = vpop.permute.xlu1 %718  ;;  %s4438_s19 = sld [smem:[#allocation2 + $0x23]] }
  0xf1   : > { %5008 = vst [vmem:[#allocation104_spill] sm:$0xff] %v3775_v0  ;;  %v482_v20 = vmul.f32 %v5009_v37, %v372_v21  ;;  %v5010_v22 = vstv %s4981_s21  ;;  %v5011_v15 = vstv %s4983_s30  ;;  %v5012_v48 = vstv %s4984_s22  ;;  %s4447_s21 = sld [smem:[#allocation4 + $0x1]]  ;;  %s4449_s30 = sld [smem:[#allocation2 + $0x2a]] }
  0xf2   : > { %v511_v3 = vmul.f32 %v5010_v22, %v372_v21  ;;  %v540_v16 = vmul.f32 %v5011_v15, %v372_v21  ;;  %v569_v55 = vmul.f32 %v5012_v48, %v372_v21  ;;  %v5013_v17 = vstv %s4985_s26  ;;  %s4453_s22 = sld [smem:[#allocation6 + $0x1]]  ;;  %s4457_s26 = sld [smem:[#allocation6 + $0x5]] }
  0xf3   : > { %v598_v30 = vmul.f32 %v5013_v17, %v372_v21  ;;  %v5014_v8 = vstv %s4881_s15  ;;  %v5015_v32 = vstv %s4987_s4  ;;  %v5016_v33 = vstv %s4996_s27  ;;  %s3823_s15 = sld [smem:[#allocation2 + $0x20]]  ;;  %v5023_v17 = vld [vmem:[#allocation40_spill] sm:$0xff]  ;;  %s4461_s4 = sld [smem:[#allocation4 + $0x2]] }
  0xf4   : > { %v627_v42 = vmul.f32 %v5014_v8, %v372_v21  ;;  %v656_v63 = vmul.f32 %v5015_v32, %v372_v21  ;;  %v685_v4 = vmul.f32 %v5016_v33, %v372_v21  ;;  %v3794_v19 = vadd.f32 %v482_v20, %v3662_v26  ;;  %s4520_s24 = sld [smem:[#allocation4 + $0x3]] }
  0xf5   : > { %v3797_v53 = vadd.f32 %v511_v3, %v3667_v40  ;;  %v3800_v24 = vadd.f32 %v540_v16, %v3671_v59  ;;  %v3803_v25 = vadd.f32 %v569_v55, %v3675_v1  ;;  %v3806_v37 = vadd.f32 %v598_v30, %v3679_v28  ;;  %v717_v40 = vpop.permute.xlu0 %716  ;;  %v741_v28 = vpop.permute.xlu1 %740 }
  0xf6   : > { %v3808_v22 = vadd.f32 %v627_v42, %v623_v38  ;;  %v3810_v21 = vadd.f32 %v656_v63, %v652_v6  ;;  %v3812_v26 = vadd.f32 %v685_v4, %v681_v62  ;;  %v420_v20 = vadd.f32 %v3219_v50, %v416_v2 }
  0xf7   : > { %v415_v3 = vadd.f32 %v410_v27, %v401_v35  ;;  %v465_v59 = vadd.f32 %v461_v18, %v451_v60  ;;  %v464_v15 = vadd.f32 %v459_v34, %v450_v47  ;;  %v723_v1 = vadd.f32 %v719_v49, %v3292_v46 }
  0xf8   : > { %v722_v16 = vadd.f32 %v717_v40, %v3295_v56  ;;  %v3818_v48 = vstv %s3758_s20  ;;  %v3821_v38 = vstv %s3760_s13  ;;  %v422_v6 = vmax.f32 %v420_v20, 0.0 }
  0xf9   : > { %5017 = vst [vmem:[#allocation105_spill] sm:$0xff] %v3818_v48  ;;  %5018 = vst [vmem:[#allocation106_spill] sm:$0xff] %v3821_v38  ;;  %v419_v27 = vadd.f32 %v3219_v50, %v415_v3  ;;  %v3827_v18 = vstv %s3768_s0  ;;  %v3830_v62 = vstv %s3770_s5  ;;  %v469_v56 = vadd.f32 %v3281_v61, %v465_v59  ;;  %v739_v60 = vpop.permute.xlu0 %738 }
  0xfa   : > { %5021 = vst [vmem:[#allocation107_spill] sm:$0xff] %v3827_v18  ;;  %5022 = vst [vmem:[#allocation108_spill] sm:$0xff] %v3830_v62  ;;  %v468_v46 = vadd.f32 %v3281_v61, %v464_v15  ;;  %v731_v35 = vadd.f32 %v3298_v41, %v723_v1  ;;  %v730_v2 = vadd.f32 %v3321_v51, %v722_v16  ;;  %v5024_v8 = vstv %s3120_s29  ;;  %v767_v41 = vpop.permute.xlu1 %766 }
  0xfb   : > { %v489_v47 = vmul.f32 %v3222_v43, %v422_v6  ;;  %v518_v34 = vmul.f32 %v3233_v13, %v422_v6  ;;  %v547_v55 = vmul.f32 %v3236_v10, %v422_v6  ;;  %v576_v30 = vmul.f32 %v5023_v17, %v422_v6 }
  0xfc   : > { %v605_v42 = vmul.f32 %v5024_v8, %v422_v6  ;;  %v5025_v32 = vstv %s3122_s7  ;;  %v5026_v33 = vstv %s5019_s10  ;;  %v5027_v49 = vstv %s5020_s12 }
  0xfd   : > { %v634_v63 = vmul.f32 %v5025_v32, %v422_v6  ;;  %v663_v4 = vmul.f32 %v5026_v33, %v422_v6  ;;  %v692_v40 = vmul.f32 %v5027_v49, %v422_v6  ;;  %v491_v51 = vadd.f32 %v489_v47, %v3731_v11  ;;  %v765_v6 = vpop.permute.xlu0 %764 }
  0xfe   : > { %v520_v20 = vadd.f32 %v518_v34, %v3733_v39  ;;  %v549_v3 = vadd.f32 %v547_v55, %v3735_v14  ;;  %v578_v59 = vadd.f32 %v576_v30, %v3737_v23  ;;  %v607_v15 = vadd.f32 %v605_v42, %v3739_v29 }
  0xff   : > { %v636_v1 = vadd.f32 %v634_v63, %v3741_v9  ;;  %v665_v16 = vadd.f32 %v663_v4, %v3743_v54  ;;  %v694_v8 = vadd.f32 %v692_v40, %v3751_v31  ;;  %v421_v11 = vmax.f32 %v419_v27, 0.0  ;;  %v3866_v54 = vpop.permute.xlu1 %788 }
 0x100   : > { %v471_v39 = vmax.f32 %v469_v56, 0.0  ;;  %v470_v14 = vmax.f32 %v468_v46, 0.0  ;;  %v3856_v47 = vadd.f32 %v741_v28, %v731_v35  ;;  %v3858_v23 = vadd.f32 %v739_v60, %v730_v2 }
 0x101   : > { %v3861_v29 = vadd.f32 %v767_v41, %v3350_v36  ;;  %v3864_v9 = vadd.f32 %v765_v6, %v3359_v57  ;;  %v488_v34 = vmul.f32 %v3222_v43, %v421_v11  ;;  %v517_v27 = vmul.f32 %v3233_v13, %v421_v11  ;;  %v3881_v42 = vpop.permute.xlu0 %786 }
 0x102   : > { %v546_v56 = vmul.f32 %v3236_v10, %v421_v11  ;;  %v575_v28 = vmul.f32 %v5023_v17, %v421_v11  ;;  %v5029_v46 = vstv %s3120_s29  ;;  %v5030_v2 = vmov %v5025_v32 }
 0x103   : > { %v604_v35 = vmul.f32 %v5029_v46, %v421_v11  ;;  %v633_v36 = vmul.f32 %v5030_v2, %v421_v11  ;;  %v5031_v60 = vmov %v5026_v33  ;;  %v5032_v57 = vmov %v5027_v49  ;;  %v5033_v46 = vld [vmem:[#allocation41_spill] sm:$0xff] }
 0x104   : > { %v662_v55 = vmul.f32 %v5031_v60, %v421_v11  ;;  %v691_v30 = vmul.f32 %v5032_v57, %v421_v11  ;;  %v490_v32 = vadd.f32 %v488_v34, %v3794_v19  ;;  %v519_v63 = vadd.f32 %v517_v27, %v3797_v53  ;;  %v815_v11 = vpop.permute.xlu1 %814  ;;  %v5034_v19 = vld [vmem:[#allocation42_spill] sm:$0xff]  ;;  %v5035_v53 = vld [vmem:[#allocation43_spill] sm:$0xff] }
 0x105   : > { %v548_v33 = vadd.f32 %v546_v56, %v3800_v24  ;;  %v577_v4 = vadd.f32 %v575_v28, %v3803_v25  ;;  %v606_v49 = vadd.f32 %v604_v35, %v3806_v37  ;;  %v635_v40 = vadd.f32 %v633_v36, %v3808_v22  ;;  %v5036_v24 = vld [vmem:[#allocation44_spill] sm:$0xff]  ;;  %v5038_v25 = vld [vmem:[#allocation45_spill] sm:$0xff]  ;;  %v5039_v22 = vld [vmem:[#allocation46_spill] sm:$0xff]  ;;  %v813_v60 = vpop.permute.xlu0 %812 }
 0x106   : > { %v664_v41 = vadd.f32 %v662_v55, %v3810_v21  ;;  %v693_v6 = vadd.f32 %v691_v30, %v3812_v26  ;;  %v495_v2 = vmul.f32 %v5033_v46, %v471_v39  ;;  %v524_v34 = vmul.f32 %v5034_v19, %v471_v39  ;;  %v5040_v26 = vld [vmem:[#allocation47_spill] sm:$0xff] }
 0x107   : > { %v553_v27 = vmul.f32 %v5035_v53, %v471_v39  ;;  %v582_v56 = vmul.f32 %v5036_v24, %v471_v39  ;;  %v611_v37 = vmul.f32 %v5038_v25, %v471_v39  ;;  %v640_v21 = vmul.f32 %v5039_v22, %v471_v39 }
 0x108   : > { %v669_v28 = vmul.f32 %v5040_v26, %v471_v39  ;;  %v5041_v35 = vstv %s3241_s28  ;;  %v497_v55 = vadd.f32 %v495_v2, %v491_v51  ;;  %v526_v57 = vadd.f32 %v524_v34, %v520_v20  ;;  %v837_v0 = vpop.permute.xlu1 %836  ;;  %s4364_s28 = sld [smem:[#allocation2 + $0x21]] }
 0x109   : > { %v698_v36 = vmul.f32 %v5041_v35, %v471_v39  ;;  %v555_v30 = vadd.f32 %v553_v27, %v549_v3  ;;  %v584_v31 = vadd.f32 %v582_v56, %v578_v59  ;;  %v613_v62 = vadd.f32 %v611_v37, %v607_v15 }
 0x10a   : > { %v642_v18 = vadd.f32 %v640_v21, %v636_v1  ;;  %v671_v38 = vadd.f32 %v669_v28, %v665_v16  ;;  %500 = vst.msk [vmem:[%s3899_s16 + $0x8] sm:$0xff] %vm498_vm0, %v497_v55  ;;  %2255 = vst.msk [vmem:[%s3899_s16 + $0x18] sm:$0xff] %vm498_vm0, %v526_v57  ;;  %v494_v51 = vmul.f32 %v5033_v46, %v470_v14 }
 0x10b   : > { %v700_v48 = vadd.f32 %v698_v36, %v694_v8  ;;  %2262 = vst.msk [vmem:[%s3899_s16 + $0x28] sm:$0xff] %vm498_vm0, %v555_v30  ;;  %2269 = vst.msk [vmem:[%s3899_s16 + $0x38] sm:$0xff] %vm498_vm0, %v584_v31  ;;  %v523_v20 = vmul.f32 %v5034_v19, %v470_v14  ;;  %v552_v3 = vmul.f32 %v5035_v53, %v470_v14  ;;  %v5042_v8 = vmov %v5041_v35  ;;  %v835_v31 = vpop.permute.xlu0 %834  ;;  %v5046_v35 = vld [vmem:[#allocation53_spill] sm:$0xff] }
 0x10c   : > { %v581_v59 = vmul.f32 %v5036_v24, %v470_v14  ;;  %2276 = vst.msk [vmem:[%s3899_s16 + $0x48] sm:$0xff] %vm498_vm0, %v613_v62  ;;  %2283 = vst.msk [vmem:[%s3899_s16 + $0x58] sm:$0xff] %vm498_vm0, %v642_v18  ;;  %v610_v15 = vmul.f32 %v5038_v25, %v470_v14  ;;  %v639_v1 = vmul.f32 %v5039_v22, %v470_v14  ;;  %v1631_v37 = vpop.permute.xlu1 %1630 }
 0x10d   : > { %2290 = vst.msk [vmem:[%s3899_s16 + $0x68] sm:$0xff] %vm498_vm0, %v671_v38  ;;  %2297 = vst.msk [vmem:[%s3899_s16 + $0x78] sm:$0xff] %vm498_vm0, %v700_v48  ;;  %v668_v16 = vmul.f32 %v5040_v26, %v470_v14  ;;  %v697_v39 = vmul.f32 %v5042_v8, %v470_v14  ;;  %v496_v62 = vadd.f32 %v494_v51, %v490_v32 }
 0x10e   : > { %v525_v2 = vadd.f32 %v523_v20, %v519_v63  ;;  %v554_v18 = vadd.f32 %v552_v3, %v548_v33  ;;  %v583_v38 = vadd.f32 %v581_v59, %v577_v4  ;;  %v612_v48 = vadd.f32 %v610_v15, %v606_v49  ;;  %v5043_v33 = vld [vmem:[#allocation48_spill] sm:$0xff]  ;;  %v5044_v49 = vld [vmem:[#allocation51_spill] sm:$0xff]  ;;  %v5051_v20 = vld [vmem:[#allocation57_spill] sm:$0xff] }
 0x10f   : > { %v641_v34 = vadd.f32 %v639_v1, %v635_v40  ;;  %v670_v27 = vadd.f32 %v668_v16, %v664_v41  ;;  %v699_v56 = vadd.f32 %v697_v39, %v693_v6  ;;  %499 = vst.msk [vmem:[%s3899_s16] sm:$0xff] %vm498_vm0, %v496_v62  ;;  %v749_v14 = vadd.f32 %v3856_v47, %v3104_v52  ;;  %v1629_v41 = vpop.permute.xlu0 %1628  ;;  %v5053_v1 = vld [vmem:[#allocation59_spill] sm:$0xff] }
 0x110   : > { %2254 = vst.msk [vmem:[%s3899_s16 + $0x10] sm:$0xff] %vm498_vm0, %v525_v2  ;;  %2261 = vst.msk [vmem:[%s3899_s16 + $0x20] sm:$0xff] %vm498_vm0, %v554_v18  ;;  %v748_v32 = vadd.f32 %v3858_v23, %v3104_v52  ;;  %v779_v63 = vadd.f32 %v3362_v45, %v3861_v29  ;;  %v778_v4 = vadd.f32 %v5043_v33, %v3864_v9  ;;  %v3961_v45 = vstv %s3906_s1  ;;  %v5054_v2 = vld [vmem:[#allocation58_spill] sm:$0xff] }
 0x111   : > { %2268 = vst.msk [vmem:[%s3899_s16 + $0x30] sm:$0xff] %vm498_vm0, %v583_v38  ;;  %2275 = vst.msk [vmem:[%s3899_s16 + $0x40] sm:$0xff] %vm498_vm0, %v612_v48  ;;  %v819_v47 = vadd.f32 %v815_v11, %v5044_v49  ;;  %v818_v40 = vadd.f32 %v813_v60, %v3395_v12  ;;  %v1635_v23 = vadd.f32 %v1631_v37, %v3424_v58  ;;  %v3963_v29 = vmax.f32 %v749_v14, 0.0  ;;  %v5047_v11 = vld [vmem:[#allocation56_spill] sm:$0xff]  ;;  %v1679_v12 = vpop.permute.xlu1 %1678  ;;  %v5048_v60 = vld [vmem:[#allocation39_spill] sm:$0xff] }
 0x112   : > { %2282 = vst.msk [vmem:[%s3899_s16 + $0x50] sm:$0xff] %vm498_vm0, %v641_v34  ;;  %2289 = vst.msk [vmem:[%s3899_s16 + $0x60] sm:$0xff] %vm498_vm0, %v670_v27  ;;  %v3965_v9 = vmax.f32 %v748_v32, 0.0  ;;  %v793_v6 = vadd.f32 %v3866_v54, %v779_v63  ;;  %v792_v21 = vadd.f32 %v3881_v42, %v778_v4  ;;  %v1634_v55 = vadd.f32 %v1629_v41, %v5047_v11  ;;  %v5052_v54 = vld [vmem:[#allocation49_spill] sm:$0xff]  ;;  %v5055_v38 = vld [vmem:[#allocation60_spill] sm:$0xff] }
 0x113   : > { %2296 = vst.msk [vmem:[%s3899_s16 + $0x70] sm:$0xff] %vm498_vm0, %v699_v56  ;;  %5045 = vst [vmem:[#allocation40_spill] sm:$0xff] %v3961_v45  ;;  %v827_v28 = vadd.f32 %v3398_v5, %v819_v47  ;;  %v826_v36 = vadd.f32 %v5046_v35, %v818_v40  ;;  %v5049_v58 = vstv %s3823_s15  ;;  %v1683_v3 = vadd.f32 %v1679_v12, %v5051_v20  ;;  %v1677_v15 = vpop.permute.xlu0 %1676  ;;  %v5057_v37 = vld [vmem:[#allocation37_spill] sm:$0xff] }
 0x114   : > { %v3975_v57 = vmul.f32 %v5049_v58, %v5048_v60  ;;  %v797_v30 = vadd.f32 %v793_v6, %v3137_v7  ;;  %v796_v51 = vadd.f32 %v792_v21, %v3137_v7  ;;  %v900_v42 = vmul.f32 %v5052_v54, %v3963_v29  ;;  %v5058_v63 = vld [vmem:[#allocation54_spill] sm:$0xff]  ;;  %v5060_v21 = vld [vmem:[#allocation61_spill] sm:$0xff] }
 0x115   : > { %v841_v59 = vadd.f32 %v837_v0, %v827_v28  ;;  %v840_v5 = vadd.f32 %v835_v31, %v826_v36  ;;  %v1643_v16 = vadd.f32 %v5053_v1, %v1635_v23  ;;  %v899_v8 = vmul.f32 %v5052_v54, %v3965_v9  ;;  %v1653_v0 = vpop.permute.xlu1 %1652  ;;  %v5056_v31 = vld [vmem:[#allocation70_spill] sm:$0xff] }
 0x116   : > { %5050 = vst [vmem:[#allocation41_spill] sm:$0xff] %v3975_v57  ;;  %v3985_v39 = vmax.f32 %v797_v30, 0.0  ;;  %v3987_v62 = vmax.f32 %v796_v51, 0.0  ;;  %v1682_v18 = vadd.f32 %v1677_v15, %v5054_v2  ;;  %v1642_v48 = vadd.f32 %v5055_v38, %v1634_v55  ;;  %v5059_v41 = vld [vmem:[#allocation50_spill] sm:$0xff]  ;;  %v5061_v30 = vld [vmem:[#allocation52_spill] sm:$0xff] }
 0x117   : > { %v845_v34 = vadd.f32 %v841_v59, %v3219_v50  ;;  %v844_v27 = vadd.f32 %v840_v5, %v3219_v50  ;;  %v1691_v56 = vadd.f32 %v5056_v31, %v1683_v3  ;;  %v903_v14 = vadd.f32 %v900_v42, %v5057_v37  ;;  %v1651_v23 = vpop.permute.xlu0 %1650  ;;  %v5062_v42 = vld [vmem:[#allocation65_spill] sm:$0xff]  ;;  %v5063_v5 = vld [vmem:[#allocation71_spill] sm:$0xff] }
 0x118   : > { %v1657_v32 = vadd.f32 %v1653_v0, %v1643_v16  ;;  %v907_v33 = vmul.f32 %v5058_v63, %v3985_v39  ;;  %v902_v4 = vadd.f32 %v899_v8, %v5057_v37  ;;  %v906_v49 = vmul.f32 %v5058_v63, %v3987_v62 }
 0x119   : > { %v4000_v47 = vmax.f32 %v845_v34, 0.0  ;;  %v4002_v40 = vmax.f32 %v844_v27, 0.0  ;;  %v937_v6 = vmul.f32 %v5059_v41, %v3963_v29  ;;  %v944_v28 = vmul.f32 %v5060_v21, %v3985_v39  ;;  %v1727_v12 = vpop.permute.xlu1 %1726  ;;  %v5064_v34 = vld [vmem:[#allocation66_spill] sm:$0xff]  ;;  %v5065_v27 = vld [vmem:[#allocation77_spill] sm:$0xff] }
 0x11a   : > { %v1661_v35 = vadd.f32 %v1657_v32, %v3104_v52  ;;  %v1656_v36 = vadd.f32 %v1651_v23, %v1642_v48  ;;  %v909_v11 = vadd.f32 %v907_v33, %v903_v14  ;;  %v908_v55 = vadd.f32 %v906_v49, %v902_v4  ;;  %v5066_v32 = vld [vmem:[#allocation55_spill] sm:$0xff] }
 0x11b   : > { %v913_v60 = vmul.f32 %v4000_v47, %v3222_v43  ;;  %v912_v58 = vmul.f32 %v4002_v40, %v3222_v43  ;;  %v940_v51 = vadd.f32 %v5061_v30, %v937_v6  ;;  %v950_v20 = vmul.f32 %v4000_v47, %v3233_v13  ;;  %v1725_v16 = vpop.permute.xlu0 %1724  ;;  %v5067_v4 = vld [vmem:[#allocation67_spill] sm:$0xff]  ;;  %v5068_v6 = vld [vmem:[#allocation68_spill] sm:$0xff] }
 0x11c   : > { %v1660_v3 = vadd.f32 %v1656_v36, %v3104_v52  ;;  %v1731_v59 = vadd.f32 %v1727_v12, %v5062_v42  ;;  %v1690_v15 = vadd.f32 %v5063_v5, %v1682_v18  ;;  %v936_v1 = vmul.f32 %v5059_v41, %v3965_v9  ;;  %v5070_v12 = vld [vmem:[#allocation62_spill] sm:$0xff]  ;;  %v5072_v5 = vld [vmem:[#allocation63_spill] sm:$0xff] }
 0x11d   : > { %v4021_v8 = vadd.f32 %v913_v60, %v909_v11  ;;  %v4023_v2 = vadd.f32 %v912_v58, %v908_v55  ;;  %v946_v43 = vadd.f32 %v944_v28, %v940_v51  ;;  %v943_v38 = vmul.f32 %v5060_v21, %v3987_v62  ;;  %v863_v31 = vpop.permute.xlu1 %862 }
 0x11e   : > { %v4027_v48 = vmax.f32 %v1661_v35, 0.0  ;;  %v1730_v52 = vadd.f32 %v1725_v16, %v5064_v34  ;;  %v1739_v0 = vadd.f32 %v5065_v27, %v1731_v59  ;;  %v939_v18 = vadd.f32 %v5061_v30, %v936_v1  ;;  %v5069_v35 = vld [vmem:[#allocation80_spill] sm:$0xff] }
 0x11f   : > { %v4032_v37 = vadd.f32 %v950_v20, %v946_v43  ;;  %v949_v14 = vmul.f32 %v4002_v40, %v3233_v13  ;;  %v974_v33 = vmul.f32 %v5066_v32, %v3963_v29  ;;  %v981_v49 = vmul.f32 %v5067_v4, %v3985_v39  ;;  %v861_v55 = vpop.permute.xlu0 %860  ;;  %v5071_v20 = vld [vmem:[#allocation69_spill] sm:$0xff]  ;;  %v5074_v27 = vld [vmem:[#allocation72_spill] sm:$0xff] }
 0x120   : > { %v4040_v23 = vmax.f32 %v1660_v3, 0.0  ;;  %v867_v28 = vadd.f32 %v863_v31, %v5068_v6  ;;  %v1738_v36 = vadd.f32 %v5069_v35, %v1730_v52  ;;  %v945_v11 = vadd.f32 %v943_v38, %v939_v18  ;;  %v5073_v43 = vld [vmem:[#allocation85_spill] sm:$0xff] }
 0x121   : > { %v977_v60 = vadd.f32 %v5070_v12, %v974_v33  ;;  %v987_v58 = vmul.f32 %v4000_v47, %v3236_v10  ;;  %v973_v13 = vmul.f32 %v5066_v32, %v3965_v9  ;;  %v980_v51 = vmul.f32 %v5067_v4, %v3987_v62  ;;  %v1701_v16 = vpop.permute.xlu1 %1700  ;;  %v5075_v33 = vld [vmem:[#allocation64_spill] sm:$0xff] }
 0x122   : > { %v866_v3 = vadd.f32 %v861_v55, %v5071_v20  ;;  %v4052_v42 = vadd.f32 %v949_v14, %v945_v11  ;;  %v986_v59 = vmul.f32 %v4002_v40, %v3236_v10  ;;  %v1011_v1 = vmul.f32 %v5072_v5, %v3963_v29  ;;  %v5076_v11 = vld [vmem:[#allocation86_spill] sm:$0xff] }
 0x123   : > { %v875_v38 = vadd.f32 %v5073_v43, %v867_v28  ;;  %v983_v34 = vadd.f32 %v981_v49, %v977_v60  ;;  %v976_v52 = vadd.f32 %v5070_v12, %v973_v13  ;;  %v1018_v18 = vmul.f32 %v5074_v27, %v3985_v39  ;;  %v1699_v35 = vpop.permute.xlu0 %1698 }
 0x124   : > { %v1705_v31 = vadd.f32 %v1701_v16, %v1691_v56  ;;  %v1014_v6 = vadd.f32 %v5075_v33, %v1011_v1  ;;  %v1024_v14 = vmul.f32 %v4000_v47, %v5023_v17  ;;  %v1010_v10 = vmul.f32 %v5072_v5, %v3965_v9 }
 0x125   : > { %v874_v55 = vadd.f32 %v5076_v11, %v866_v3  ;;  %v4068_v20 = vadd.f32 %v987_v58, %v983_v34  ;;  %v982_v49 = vadd.f32 %v980_v51, %v976_v52  ;;  %v1017_v28 = vmul.f32 %v5074_v27, %v3987_v62  ;;  %v1775_v16 = vpop.permute.xlu1 %1774  ;;  %v5077_v3 = vld [vmem:[#allocation73_spill] sm:$0xff]  ;;  %v5078_v51 = vld [vmem:[#allocation78_spill] sm:$0xff] }
 0x126   : > { %v1709_v60 = vadd.f32 %v1705_v31, %v3137_v7  ;;  %v1704_v56 = vadd.f32 %v1699_v35, %v1690_v15  ;;  %v1020_v13 = vadd.f32 %v1018_v18, %v1014_v6  ;;  %v1023_v1 = vmul.f32 %v4002_v40, %v5023_v17  ;;  %v5079_v11 = vld [vmem:[#allocation82_spill] sm:$0xff]  ;;  %v5080_v18 = vld [vmem:[#allocation87_spill] sm:$0xff] }
 0x127   : > { %v4075_v43 = vadd.f32 %v986_v59, %v982_v49  ;;  %v1013_v57 = vadd.f32 %v5075_v33, %v1010_v10  ;;  %v1048_v58 = vmul.f32 %v5077_v3, %v3963_v29  ;;  %v1055_v34 = vmul.f32 %v5078_v51, %v3985_v39  ;;  %v1773_v6 = vpop.permute.xlu0 %1772  ;;  %v5081_v35 = vld [vmem:[#allocation74_spill] sm:$0xff] }
 0x128   : > { %v1708_v52 = vadd.f32 %v1704_v56, %v3137_v7  ;;  %v1779_v31 = vadd.f32 %v1775_v16, %v5079_v11  ;;  %v4084_v15 = vadd.f32 %v1024_v14, %v1020_v13  ;;  %v1061_v17 = vmul.f32 %v5080_v18, %v4000_v47  ;;  %v5082_v56 = vld [vmem:[#allocation83_spill] sm:$0xff] }
 0x129   : > { %v1019_v59 = vadd.f32 %v1017_v28, %v1013_v57  ;;  %v1051_v49 = vadd.f32 %v5081_v35, %v1048_v58  ;;  %v1047_v10 = vmul.f32 %v5077_v3, %v3965_v9  ;;  %v1054_v45 = vmul.f32 %v5078_v51, %v3987_v62  ;;  %v1749_v16 = vpop.permute.xlu1 %1748  ;;  %v5083_v58 = vld [vmem:[#allocation75_spill] sm:$0xff] }
 0x12a   : > { %v4093_v33 = vmax.f32 %v1709_v60, 0.0  ;;  %v4095_v7 = vmax.f32 %v1708_v52, 0.0  ;;  %v1778_v14 = vadd.f32 %v1773_v6, %v5082_v56  ;;  %v1060_v13 = vmul.f32 %v5080_v18, %v4002_v40  ;;  %v5084_v51 = vld [vmem:[#allocation91_spill] sm:$0xff]  ;;  %v5085_v52 = vld [vmem:[#allocation84_spill] sm:$0xff] }
 0x12b   : > { %v4100_v11 = vadd.f32 %v1023_v1, %v1019_v59  ;;  %v1057_v57 = vadd.f32 %v1055_v34, %v1051_v49  ;;  %v1050_v28 = vadd.f32 %v5081_v35, %v1047_v10  ;;  %v1085_v3 = vmul.f32 %v5083_v58, %v3963_v29  ;;  %v5086_v6 = vld [vmem:[#allocation92_spill] sm:$0xff]  ;;  %v1747_v12 = vpop.permute.xlu0 %1746 }
 0x12c   : > { %v1753_v27 = vadd.f32 %v1749_v16, %v1739_v0  ;;  %v1787_v60 = vadd.f32 %v5084_v51, %v1779_v31  ;;  %v1092_v5 = vmul.f32 %v5085_v52, %v3985_v39  ;;  %v1098_v56 = vmul.f32 %v5086_v6, %v4000_v47  ;;  %v5087_v59 = vld [vmem:[#allocation76_spill] sm:$0xff] }
 0x12d   : > { %v4110_v18 = vadd.f32 %v1061_v17, %v1057_v57  ;;  %v1056_v1 = vadd.f32 %v1054_v45, %v1050_v28  ;;  %v1088_v34 = vadd.f32 %v5087_v59, %v1085_v3  ;;  %v1084_v49 = vmul.f32 %v5083_v58, %v3965_v9  ;;  %v885_v16 = vpop.permute.xlu1 %884  ;;  %v5088_v45 = vld [vmem:[#allocation79_spill] sm:$0xff] }
 0x12e   : > { %v1757_v10 = vadd.f32 %v1753_v27, %v3219_v50  ;;  %v1752_v0 = vadd.f32 %v1747_v12, %v1738_v36  ;;  %v1091_v51 = vmul.f32 %v5085_v52, %v3987_v62  ;;  %v1097_v31 = vmul.f32 %v5086_v6, %v4002_v40  ;;  %v5089_v58 = vld [vmem:[#allocation95_spill] sm:$0xff]  ;;  %v5090_v36 = vld [vmem:[#allocation88_spill] sm:$0xff]  ;;  %v5091_v6 = vld [vmem:[#allocation81_spill] sm:$0xff] }
 0x12f   : > { %v1062_v35 = vadd.f32 %v1060_v13, %v1056_v1  ;;  %v1094_v44 = vadd.f32 %v1092_v5, %v1088_v34  ;;  %v1087_v17 = vadd.f32 %v5087_v59, %v1084_v49  ;;  %v1122_v3 = vmul.f32 %v5088_v45, %v3963_v29  ;;  %v883_v52 = vpop.permute.xlu0 %882  ;;  %v5092_v5 = vld [vmem:[#allocation93_spill] sm:$0xff] }
 0x130   : > { %v1756_v57 = vadd.f32 %v1752_v0, %v3219_v50  ;;  %v889_v28 = vadd.f32 %v885_v16, %v875_v38  ;;  %v1786_v27 = vadd.f32 %v5089_v58, %v1778_v14  ;;  %v1129_v12 = vmul.f32 %v5090_v36, %v3985_v39 }
 0x131   : > { %v1100_v4 = vadd.f32 %v1098_v56, %v1094_v44  ;;  %v1093_v32 = vadd.f32 %v1091_v51, %v1087_v17  ;;  %v1125_v30 = vadd.f32 %v5091_v6, %v1122_v3  ;;  %v1135_v13 = vmul.f32 %v5092_v5, %v4000_v47  ;;  %v1797_v14 = vpop.permute.xlu1 %1796  ;;  %v5093_v3 = vld [vmem:[#allocation89_spill] sm:$0xff] }
 0x132   : > { %v4130_v1 = vmax.f32 %v1757_v10, 0.0  ;;  %v893_v34 = vadd.f32 %v889_v28, %v3281_v61  ;;  %v888_v49 = vadd.f32 %v883_v52, %v874_v55  ;;  %v1121_v50 = vmul.f32 %v5088_v45, %v3965_v9 }
 0x133   : > { %v4135_v38 = vmax.f32 %v1756_v57, 0.0  ;;  %v1099_v58 = vadd.f32 %v1097_v31, %v1093_v32  ;;  %v1131_v0 = vadd.f32 %v1129_v12, %v1125_v30  ;;  %v1128_v44 = vmul.f32 %v5090_v36, %v3987_v62  ;;  %v1795_v17 = vpop.permute.xlu0 %1794  ;;  %v5094_v32 = vld [vmem:[#allocation94_spill] sm:$0xff] }
 0x134   : > { %v895_v56 = vmax.f32 %v893_v34, 0.0  ;;  %v892_v51 = vadd.f32 %v888_v49, %v3281_v61  ;;  %v1801_v16 = vadd.f32 %v1797_v14, %v1787_v60  ;;  %v1134_v10 = vmul.f32 %v5092_v5, %v4002_v40 }
 0x135   : > { %v1137_v55 = vadd.f32 %v1135_v13, %v1131_v0  ;;  %v1124_v52 = vadd.f32 %v5091_v6, %v1121_v50  ;;  %v1159_v57 = vmul.f32 %v5093_v3, %v3963_v29  ;;  %v1166_v30 = vmul.f32 %v5094_v32, %v3985_v39  ;;  %v5095_v0 = vld [vmem:[#allocation96_spill] sm:$0xff] }
 0x136   : > { %v894_v31 = vmax.f32 %v892_v51, 0.0  ;;  %v1805_v28 = vadd.f32 %v1801_v16, %v3281_v61  ;;  %v1800_v12 = vadd.f32 %v1795_v17, %v1786_v27  ;;  %v919_v34 = vmul.f32 %v895_v56, %v5033_v46 }
 0x137   : > { %v956_v60 = vmul.f32 %v895_v56, %v5034_v19  ;;  %v993_v49 = vmul.f32 %v895_v56, %v5035_v53  ;;  %v1030_v13 = vmul.f32 %v895_v56, %v5036_v24  ;;  %v1067_v50 = vmul.f32 %v895_v56, %v5038_v25 }
 0x138   : > { %v4153_v14 = vmax.f32 %v1805_v28, 0.0  ;;  %v921_v29 = vadd.f32 %v919_v34, %v4021_v8  ;;  %v918_v39 = vmul.f32 %v894_v31, %v5033_v46  ;;  %v1172_v51 = vmul.f32 %v5095_v0, %v4000_v47  ;;  %v5097_v34 = vld [vmem:[#allocation97_spill] sm:$0xff] }
 0x139   : > { %v958_v27 = vadd.f32 %v956_v60, %v4032_v37  ;;  %v955_v16 = vmul.f32 %v894_v31, %v5034_v19  ;;  %v995_v17 = vadd.f32 %v993_v49, %v4068_v20  ;;  %v992_v6 = vmul.f32 %v894_v31, %v5035_v53 }
 0x13a   : > { %v1804_v5 = vadd.f32 %v1800_v12, %v3281_v61  ;;  %926 = vrot.lane.b32.xlu1 %v921_v29, %s4875_s23  ;;  %v920_v28 = vadd.f32 %v918_v39, %v4023_v2  ;;  %v1032_v8 = vadd.f32 %v1030_v13, %v4084_v15  ;;  %v1029_v46 = vmul.f32 %v894_v31, %v5036_v24  ;;  %v5100_v39 = vld [vmem:[#allocation100_spill] sm:$0xff] }
 0x13b   : > { %v957_v47 = vadd.f32 %v955_v16, %v4052_v42  ;;  %v994_v37 = vadd.f32 %v992_v6, %v4075_v43  ;;  %v4171_v19 = vadd.f32 %v1067_v50, %v4110_v18  ;;  %v1066_v20 = vmul.f32 %v894_v31, %v5038_v25  ;;  %v5096_v6 = vld [vmem:[#allocation90_spill] sm:$0xff] }
 0x13c   : > { %924 = vrot.lane.b32.xlu0 %v920_v28, %s4875_s23  ;;  %v1031_v61 = vadd.f32 %v1029_v46, %v4100_v11  ;;  %v1104_v53 = vmul.f32 %v895_v56, %v5039_v22  ;;  %v1103_v2 = vmul.f32 %v894_v31, %v5039_v22  ;;  %v1141_v15 = vmul.f32 %v895_v56, %v5040_v26 }
 0x13d   : > { %v4179_v24 = vadd.f32 %v1066_v20, %v1062_v35  ;;  %v1130_v42 = vadd.f32 %v1128_v44, %v1124_v52  ;;  %v1140_v43 = vmul.f32 %v894_v31, %v5040_v26  ;;  %v1162_v18 = vadd.f32 %v5096_v6, %v1159_v57  ;;  %v5099_v57 = vld [vmem:[#allocation99_spill] sm:$0xff] }
 0x13e   : > { %963 = vrot.lane.b32.xlu1 %v958_v27, %s4875_s23  ;;  %v4184_v25 = vadd.f32 %v1104_v53, %v1100_v4  ;;  %v4186_v12 = vadd.f32 %v1103_v2, %v1099_v58  ;;  %v4188_v11 = vadd.f32 %v1141_v15, %v1137_v55  ;;  %v1178_v60 = vmul.f32 %v5097_v34, %v895_v56  ;;  %v5102_v15 = vld [vmem:[#allocation52_spill] sm:$0xff] }
 0x13f   : > { %v1136_v22 = vadd.f32 %v1134_v10, %v1130_v42  ;;  %v1168_v49 = vadd.f32 %v1166_v30, %v1162_v18  ;;  %v1158_v35 = vmul.f32 %v5093_v3, %v3965_v9  ;;  %v1165_v26 = vmul.f32 %v5094_v32, %v3987_v62 }
 0x140   : > { %v4195_v44 = vmax.f32 %v1804_v5, 0.0  ;;  %961 = vrot.lane.b32.xlu0 %v957_v47, %s4875_s23  ;;  %v1171_v4 = vmul.f32 %v5095_v0, %v4002_v40  ;;  %v1812_v58 = vmul.f32 %v4027_v48, %v5052_v54  ;;  %v1819_v56 = vmul.f32 %v4093_v33, %v5058_v63  ;;  %v5098_v5 = vld [vmem:[#allocation98_spill] sm:$0xff]  ;;  %v5101_v47 = vld [vmem:[#allocation101_spill] sm:$0xff] }
 0x141   : > { %v4204_v10 = vadd.f32 %v1140_v43, %v1136_v22  ;;  %v1174_v55 = vadd.f32 %v1172_v51, %v1168_v49  ;;  %v1161_v9 = vadd.f32 %v5096_v6, %v1158_v35  ;;  %v1177_v62 = vmul.f32 %v5097_v34, %v894_v31 }
 0x142   : > { %1000 = vrot.lane.b32.xlu1 %v995_v17, %s4875_s23  ;;  %v1815_v52 = vadd.f32 %v5098_v5, %v1812_v58  ;;  %v1825_v40 = vmul.f32 %v5099_v57, %v4130_v1  ;;  %v1811_v30 = vmul.f32 %v4040_v23, %v5052_v54  ;;  %v1818_v13 = vmul.f32 %v4095_v7, %v5058_v63  ;;  %v5104_v58 = vld [vmem:[#allocation55_spill] sm:$0xff] }
 0x143   : > { %v4216_v50 = vadd.f32 %v1178_v60, %v1174_v55  ;;  %v1167_v29 = vadd.f32 %v1165_v26, %v1161_v9  ;;  %v1831_v51 = vmul.f32 %v5100_v39, %v4153_v14  ;;  %v1824_v31 = vmul.f32 %v5099_v57, %v4135_v38  ;;  %v5103_v60 = vld [vmem:[#allocation102_spill] sm:$0xff]  ;;  %v5105_v9 = vld [vmem:[#allocation67_spill] sm:$0xff]  ;;  %v5125_v57 = vld [vmem:[#allocation40_spill] sm:$0xff] }
 0x144   : > { %998 = vrot.lane.b32.xlu0 %v994_v37, %s4875_s23  ;;  %v1821_v27 = vadd.f32 %v1819_v56, %v1815_v52  ;;  %v1814_v16 = vadd.f32 %v5098_v5, %v1811_v30  ;;  %v1849_v17 = vmul.f32 %v4027_v48, %v5059_v41  ;;  %v1856_v63 = vmul.f32 %v4093_v33, %v5060_v21  ;;  %v5106_v52 = vld [vmem:[#allocation103_spill] sm:$0xff] }
 0x145   : > { %v1173_v28 = vadd.f32 %v1171_v4, %v1167_v29  ;;  %v1830_v46 = vmul.f32 %v5100_v39, %v4195_v44  ;;  %v1862_v20 = vmul.f32 %v5101_v47, %v4130_v1  ;;  %v1848_v53 = vmul.f32 %v4040_v23, %v5059_v41  ;;  %v5117_v39 = vld [vmem:[#allocation87_spill] sm:$0xff] }
 0x146   : > { %1037 = vrot.lane.b32.xlu1 %v1032_v8, %s4875_s23  ;;  %v1827_v37 = vadd.f32 %v1825_v40, %v1821_v27  ;;  %v1820_v2 = vadd.f32 %v1818_v13, %v1814_v16  ;;  %v1852_v42 = vadd.f32 %v1849_v17, %v5102_v15  ;;  %v1855_v43 = vmul.f32 %v4095_v7, %v5060_v21  ;;  %v5107_v13 = vld [vmem:[#allocation62_spill] sm:$0xff]  ;;  %v5108_v27 = vld [vmem:[#allocation104_spill] sm:$0xff] }
 0x147   : > { %v4238_v18 = vadd.f32 %v1177_v62, %v1173_v28  ;;  %v1868_v22 = vmul.f32 %v5103_v60, %v4153_v14  ;;  %v1851_v49 = vadd.f32 %v1848_v53, %v5102_v15  ;;  %v1861_v35 = vmul.f32 %v5101_v47, %v4135_v38 }
 0x148   : > { %1035 = vrot.lane.b32.xlu0 %v1031_v61, %s4875_s23  ;;  %v4246_v8 = vadd.f32 %v1831_v51, %v1827_v37  ;;  %v1826_v26 = vadd.f32 %v1824_v31, %v1820_v2  ;;  %v1858_v4 = vadd.f32 %v1856_v63, %v1852_v42  ;;  %v1886_v56 = vmul.f32 %v4027_v48, %v5104_v58  ;;  %v5110_v42 = vld [vmem:[#allocation72_spill] sm:$0xff] }
 0x149   : > { %v1857_v21 = vadd.f32 %v1855_v43, %v1851_v49  ;;  %v1867_v55 = vmul.f32 %v5103_v60, %v4195_v44  ;;  %v1893_v62 = vmul.f32 %v4093_v33, %v5105_v9  ;;  %v1899_v40 = vmul.f32 %v5106_v52, %v4130_v1  ;;  %v5111_v49 = vld [vmem:[#allocation105_spill] sm:$0xff] }
 0x14a   : > { %1074 = vrot.lane.b32.xlu1 %v4171_v19, %s4875_s23  ;;  %v4258_v61 = vadd.f32 %v1830_v46, %v1826_v26  ;;  %v1864_v30 = vadd.f32 %v1862_v20, %v1858_v4  ;;  %v1889_v29 = vadd.f32 %v1886_v56, %v5107_v13  ;;  %v1885_v51 = vmul.f32 %v4040_v23, %v5104_v58  ;;  %v5109_v20 = vld [vmem:[#allocation63_spill] sm:$0xff]  ;;  %v5112_v26 = vld [vmem:[#allocation64_spill] sm:$0xff] }
 0x14b   : > { %v1863_v31 = vadd.f32 %v1861_v35, %v1857_v21  ;;  %v1905_v16 = vmul.f32 %v5108_v27, %v4153_v14  ;;  %v1892_v17 = vmul.f32 %v4095_v7, %v5105_v9  ;;  %v1898_v63 = vmul.f32 %v5106_v52, %v4135_v38  ;;  %v5113_v21 = vld [vmem:[#allocation106_spill] sm:$0xff]  ;;  %v5121_v52 = vld [vmem:[#allocation92_spill] sm:$0xff] }
 0x14c   : > { %1072 = vrot.lane.b32.xlu0 %v4179_v24, %s4875_s23  ;;  %v4271_v19 = vadd.f32 %v1868_v22, %v1864_v30  ;;  %v1895_v28 = vadd.f32 %v1893_v62, %v1889_v29  ;;  %v1888_v46 = vadd.f32 %v1885_v51, %v5107_v13  ;;  %v1923_v53 = vmul.f32 %v4027_v48, %v5109_v20  ;;  %v5114_v29 = vld [vmem:[#allocation73_spill] sm:$0xff] }
 0x14d   : > { %v4276_v37 = vadd.f32 %v1867_v55, %v1863_v31  ;;  %v1904_v2 = vmul.f32 %v5108_v27, %v4195_v44  ;;  %v1930_v43 = vmul.f32 %v4093_v33, %v5110_v42  ;;  %v1936_v35 = vmul.f32 %v5111_v49, %v4130_v1  ;;  %v5116_v27 = vld [vmem:[#allocation78_spill] sm:$0xff] }
 0x14e   : > { %1111 = vrot.lane.b32.xlu1 %v4184_v25, %s4875_s23  ;;  %v1901_v24 = vadd.f32 %v1899_v40, %v1895_v28  ;;  %v1894_v22 = vadd.f32 %v1892_v17, %v1888_v46  ;;  %v1926_v4 = vadd.f32 %v1923_v53, %v5112_v26  ;;  %v1922_v56 = vmul.f32 %v4040_v23, %v5109_v20  ;;  %v5115_v46 = vld [vmem:[#allocation74_spill] sm:$0xff] }
 0x14f   : > { %v1942_v55 = vmul.f32 %v5113_v21, %v4153_v14  ;;  %v1929_v62 = vmul.f32 %v4095_v7, %v5110_v42  ;;  %v1935_v30 = vmul.f32 %v5111_v49, %v4135_v38  ;;  %v1960_v51 = vmul.f32 %v4027_v48, %v5114_v29 }
 0x150   : > { %1109 = vrot.lane.b32.xlu0 %v4186_v12, %s4875_s23  ;;  %v4299_v25 = vadd.f32 %v1905_v16, %v1901_v24  ;;  %v1900_v40 = vadd.f32 %v1898_v63, %v1894_v22  ;;  %v1932_v31 = vadd.f32 %v1930_v43, %v1926_v4  ;;  %v1925_v17 = vadd.f32 %v1922_v56, %v5112_v26  ;;  %v5118_v22 = vld [vmem:[#allocation107_spill] sm:$0xff] }
 0x151   : > { %v1941_v28 = vmul.f32 %v5113_v21, %v4195_v44  ;;  %v1963_v53 = vadd.f32 %v1960_v51, %v5115_v46  ;;  %v1967_v60 = vmul.f32 %v4093_v33, %v5116_v27  ;;  %v1973_v49 = vmul.f32 %v4130_v1, %v5117_v39  ;;  %v5120_v21 = vld [vmem:[#allocation84_spill] sm:$0xff] }
 0x152   : > { %1148 = vrot.lane.b32.xlu1 %v4188_v11, %s4875_s23  ;;  %v4311_v12 = vadd.f32 %v1904_v2, %v1900_v40  ;;  %v1938_v16 = vadd.f32 %v1936_v35, %v1932_v31  ;;  %v1931_v63 = vadd.f32 %v1929_v62, %v1925_v17  ;;  %v1959_v43 = vmul.f32 %v4040_v23, %v5114_v29  ;;  %v5119_v62 = vld [vmem:[#allocation75_spill] sm:$0xff]  ;;  %v1205_v40 = vpop.permute.xlu1 %1204  ;;  %v4328_v31 = vpop.permute.xlu0 %1206 }
 0x153   : > { %v1969_v24 = vadd.f32 %v1967_v60, %v1963_v53  ;;  %v1979_v4 = vmul.f32 %v5118_v22, %v4153_v14  ;;  %v1966_v56 = vmul.f32 %v4095_v7, %v5116_v27  ;;  %v1972_v51 = vmul.f32 %v4135_v38, %v5117_v39 }
 0x154   : > { %1146 = vrot.lane.b32.xlu0 %v4204_v10, %s4875_s23  ;;  %v4323_v11 = vadd.f32 %v1942_v55, %v1938_v16  ;;  %v1937_v2 = vadd.f32 %v1935_v30, %v1931_v63  ;;  %v1962_v35 = vadd.f32 %v1959_v43, %v5115_v46  ;;  %v1997_v60 = vmul.f32 %v4027_v48, %v5119_v62  ;;  %v5122_v43 = vld [vmem:[#allocation108_spill] sm:$0xff] }
 0x155   : > { %v1975_v17 = vadd.f32 %v1973_v49, %v1969_v24  ;;  %v1978_v53 = vmul.f32 %v5118_v22, %v4195_v44  ;;  %v2004_v39 = vmul.f32 %v4093_v33, %v5120_v21  ;;  %v2010_v10 = vmul.f32 %v4130_v1, %v5121_v52 }
 0x156   : > { %1185 = vrot.lane.b32.xlu1 %v4216_v50, %s4875_s23  ;;  %v4338_v55 = vadd.f32 %v1941_v28, %v1937_v2  ;;  %v1968_v30 = vadd.f32 %v1966_v56, %v1962_v35  ;;  %v2000_v16 = vadd.f32 %v1997_v60, %v5087_v59  ;;  %v1996_v49 = vmul.f32 %v4040_v23, %v5119_v62  ;;  %v5123_v60 = vld [vmem:[#allocation93_spill] sm:$0xff] }
 0x157   : > { %v4343_v63 = vadd.f32 %v1979_v4, %v1975_v17  ;;  %v2016_v24 = vmul.f32 %v5122_v43, %v4153_v14  ;;  %v2003_v22 = vmul.f32 %v4095_v7, %v5120_v21  ;;  %v2009_v47 = vmul.f32 %v4135_v38, %v5121_v52 }
 0x158   : > { %1183 = vrot.lane.b32.xlu0 %v4238_v18, %s4875_s23  ;;  %v1974_v50 = vadd.f32 %v1972_v51, %v1968_v30  ;;  %v2006_v28 = vadd.f32 %v2004_v39, %v2000_v16  ;;  %v1999_v56 = vadd.f32 %v1996_v49, %v5087_v59  ;;  %v2034_v4 = vmul.f32 %v4027_v48, %v5088_v45  ;;  %v5124_v30 = vld [vmem:[#allocation81_spill] sm:$0xff]  ;;  %v1253_v49 = vpop.permute.xlu1 %1252 }
 0x159   : > { %v2015_v2 = vmul.f32 %v5122_v43, %v4195_v44  ;;  %v2041_v35 = vmul.f32 %v4093_v33, %v5090_v36  ;;  %v2047_v17 = vmul.f32 %v4130_v1, %v5123_v60  ;;  %v2033_v52 = vmul.f32 %v4040_v23, %v5088_v45  ;;  %v4373_v43 = vpop.permute.xlu0 %1254 }
 0x15a   : > { %1838 = vrot.lane.b32.xlu1 %v4246_v8, %s4875_s23  ;;  %v4370_v18 = vadd.f32 %v1978_v53, %v1974_v50  ;;  %v2012_v51 = vadd.f32 %v2010_v10, %v2006_v28  ;;  %v2005_v39 = vadd.f32 %v2003_v22, %v1999_v56  ;;  %v2037_v16 = vadd.f32 %v2034_v4, %v5124_v30 }
 0x15b   : > { %v2053_v21 = vmul.f32 %v5125_v57, %v4153_v14  ;;  %v2036_v27 = vadd.f32 %v2033_v52, %v5124_v30  ;;  %v2040_v42 = vmul.f32 %v4095_v7, %v5090_v36  ;;  %v2046_v8 = vmul.f32 %v4135_v38, %v5123_v60 }
 0x15c   : > { %1836 = vrot.lane.b32.xlu0 %v4258_v61, %s4875_s23  ;;  %v4384_v22 = vadd.f32 %v2016_v24, %v2012_v51  ;;  %v2011_v53 = vadd.f32 %v2009_v47, %v2005_v39  ;;  %v2043_v10 = vadd.f32 %v2041_v35, %v2037_v16  ;;  %v2071_v50 = vmul.f32 %v4027_v48, %v5093_v3  ;;  %v5126_v35 = vld [vmem:[#allocation41_spill] sm:$0xff]  ;;  %v1227_v51 = vpop.permute.xlu1 %1226 }
 0x15d   : > { %v2042_v28 = vadd.f32 %v2040_v42, %v2036_v27  ;;  %v2052_v52 = vmul.f32 %v5125_v57, %v4195_v44  ;;  %v2078_v56 = vmul.f32 %v4093_v33, %v5094_v32  ;;  %v2084_v4 = vmul.f32 %v4130_v1, %v5095_v0 }
 0x15e   : > { %1875 = vrot.lane.b32.xlu1 %v4271_v19, %s4875_s23  ;;  %v4398_v47 = vadd.f32 %v2015_v2, %v2011_v53  ;;  %v2049_v61 = vadd.f32 %v2047_v17, %v2043_v10  ;;  %v2074_v48 = vadd.f32 %v2071_v50, %v5096_v6  ;;  %v2070_v27 = vmul.f32 %v4040_v23, %v5093_v3  ;;  %v2608_v10 = vld [vmem:[%s2837_s25 + $0x19] sm:$0xff] }
 0x15f   : > { %v2048_v33 = vadd.f32 %v2046_v8, %v2042_v28  ;;  %v2090_v1 = vmul.f32 %v4153_v14, %v5097_v34  ;;  %v2077_v19 = vmul.f32 %v4095_v7, %v5094_v32  ;;  %v2083_v42 = vmul.f32 %v4135_v38, %v5095_v0  ;;  %v1229_v14 = vpop.permute.xlu0 %1228  ;;  %v2607_v7 = vld [vmem:[%s2837_s25 + $0x9] sm:$0xff] }
 0x160   : > { %1873 = vrot.lane.b32.xlu0 %v4276_v37, %s4875_s23  ;;  %v4413_v24 = vadd.f32 %v2053_v21, %v2049_v61  ;;  %v2080_v23 = vadd.f32 %v2078_v56, %v2074_v48  ;;  %v2073_v2 = vadd.f32 %v2070_v27, %v5096_v6  ;;  %v1210_v17 = vadd.f32 %v1205_v40, %v5126_v35  ;;  %v2610_v61 = vld [vmem:[%s2837_s25 + $0xa] sm:$0xff] }
 0x161   : > { %v4417_v39 = vadd.f32 %v2052_v52, %v2048_v33  ;;  %v5127_v16 = vstv %s3823_s15  ;;  %v1243_v8 = vstv %s4364_s28  ;;  %v1215_v53 = vstv %s4366_s2  ;;  %v2609_v52 = vld [vmem:[%s2837_s25 + $0x2] sm:$0xff] }
 0x162   : > { %v1197_v38 = vmul.f32 %v2607_v7, %v5127_v16  ;;  %1912 = vrot.lane.b32.xlu1 %v4299_v25, %s4875_s23  ;;  %v2086_v37 = vadd.f32 %v2084_v4, %v2080_v23  ;;  %v2079_v21 = vadd.f32 %v2077_v19, %v2073_v2  ;;  %v2089_v40 = vmul.f32 %v4195_v44, %v5097_v34  ;;  %v1301_v2 = vpop.permute.xlu1 %1300 }
 0x163   : > { %v1244_v50 = vmul.f32 %v2608_v10, %v1243_v8  ;;  %v1216_v56 = vmul.f32 %v2609_v52, %v1215_v53  ;;  %v1217_v48 = vmul.f32 %v2610_v61, %v1215_v53  ;;  %v1263_v33 = vstv %s4394_s6  ;;  %v1303_v35 = vpop.permute.xlu0 %1302  ;;  %v2615_v52 = vld [vmem:[%s2837_s25 + $0x22] sm:$0xff] }
 0x164   : > { %v1211_v28 = vadd.f32 %v4328_v31, %v1197_v38  ;;  %1910 = vrot.lane.b32.xlu0 %v4311_v12, %s4875_s23  ;;  %v4436_v25 = vadd.f32 %v2090_v1, %v2086_v37  ;;  %v2085_v4 = vadd.f32 %v2083_v42, %v2079_v21  ;;  %v1235_v23 = vstv %s4403_s3  ;;  %v2611_v12 = vld [vmem:[%s2837_s25 + $0x1a] sm:$0xff] }
 0x165   : > { %v1218_v27 = vadd.f32 %v1216_v56, %v1210_v17  ;;  %v1258_v19 = vadd.f32 %v1253_v49, %v1244_v50  ;;  %v1264_v1 = vmul.f32 %v2611_v12, %v1263_v33  ;;  %v1291_v16 = vstv %s4424_s9 }
 0x166   : > { %v1219_v44 = vadd.f32 %v1217_v48, %v1211_v28  ;;  %1949 = vrot.lane.b32.xlu1 %v4323_v11, %s4875_s23  ;;  %v4443_v31 = vadd.f32 %v2089_v40, %v2085_v4  ;;  %v2612_v11 = vld [vmem:[%s2837_s25 + $0x21] sm:$0xff]  ;;  %v1275_v53 = vpop.permute.xlu1 %1274  ;;  %v1339_v21 = vstv %s4438_s19  ;;  %v2614_v40 = vld [vmem:[%s2837_s25 + $0x39] sm:$0xff]  ;;  %v1265_v56 = vmul.f32 %v2615_v52, %v1263_v33 }
 0x167   : > { %v1232_v7 = vadd.f32 %v1227_v51, %v1218_v27  ;;  %v1245_v49 = vmul.f32 %v2612_v11, %v1243_v8  ;;  %v1277_v37 = vpop.permute.xlu0 %1276  ;;  %v1293_v10 = vmul.f32 %v2614_v40, %v1291_v16  ;;  %v1283_v61 = vstv %s4447_s21  ;;  %v2616_v48 = vld [vmem:[%s2837_s25 + $0x49] sm:$0xff]  ;;  %v2617_v27 = vld [vmem:[%s2837_s25 + $0x51] sm:$0xff] }
 0x168   : > { %v1233_v42 = vadd.f32 %v1229_v14, %v1219_v44  ;;  %1947 = vrot.lane.b32.xlu0 %v4338_v55, %s4875_s23  ;;  %v1266_v14 = vadd.f32 %v1264_v1, %v1258_v19  ;;  %v2613_v55 = vld [vmem:[%s2837_s25 + $0x31] sm:$0xff]  ;;  %v1340_v4 = vmul.f32 %v2616_v48, %v1339_v21  ;;  %v1341_v44 = vmul.f32 %v2617_v27, %v1339_v21  ;;  %v2619_v48 = vld [vmem:[%s2837_s25 + $0x3a] sm:$0xff] }
 0x169   : > { %v1236_v17 = vadd.f32 %v1235_v23, %v1232_v7  ;;  %v1292_v8 = vmul.f32 %v2613_v55, %v1291_v16  ;;  %v1307_v1 = vadd.f32 %v1303_v35, %v1293_v10  ;;  %v1422_v7 = vstv %s4457_s26  ;;  %v2618_v16 = vld [vmem:[%s2837_s25 + $0x32] sm:$0xff] }
 0x16a   : > { %1986 = vrot.lane.b32.xlu1 %v4343_v63, %s4875_s23  ;;  %v1237_v51 = vadd.f32 %v1235_v23, %v1233_v42  ;;  %v1259_v63 = vadd.f32 %v4373_v43, %v1245_v49  ;;  %v1311_v43 = vstv %s4449_s30  ;;  %v1393_v23 = vstv %s4453_s22  ;;  %v1349_v49 = vpop.permute.xlu1 %1348 }
 0x16b   : > { %v1238_v38 = vmax.f32 %v1236_v17, 0.0  ;;  %v1306_v19 = vadd.f32 %v1301_v2, %v1292_v8  ;;  %v1351_v17 = vpop.permute.xlu0 %1350  ;;  %v1312_v2 = vmul.f32 %v2618_v16, %v1311_v43  ;;  %v1331_v35 = vstv %s4461_s4  ;;  %v2620_v16 = vld [vmem:[%s2837_s25 + $0x4a] sm:$0xff] }
 0x16c   : > { %1984 = vrot.lane.b32.xlu0 %v4370_v18, %s4875_s23  ;;  %v1239_v28 = vmax.f32 %v1237_v51, 0.0  ;;  %v1280_v18 = vadd.f32 %v1275_v53, %v1266_v14  ;;  %v4493_v14 = vadd.f32 %v1349_v49, %v1340_v4  ;;  %v4495_v55 = vadd.f32 %v1351_v17, %v1341_v44 }
 0x16d   : > { %v1590_v50 = vmul.f32 %v1238_v38, %v5093_v3  ;;  %v1387_v12 = vmul.f32 %v1238_v38, %v5052_v54  ;;  %v1416_v33 = vmul.f32 %v1238_v38, %v5059_v41  ;;  %v1445_v51 = vmul.f32 %v1238_v38, %v5104_v58 }
 0x16e   : > { %2023 = vrot.lane.b32.xlu1 %v4384_v22, %s4875_s23  ;;  %v1591_v42 = vmul.f32 %v1239_v28, %v5093_v3  ;;  %v1284_v11 = vadd.f32 %v1283_v61, %v1280_v18  ;;  %v1474_v3 = vmul.f32 %v1238_v38, %v5109_v20  ;;  %v1532_v8 = vmul.f32 %v1238_v38, %v5119_v62 }
 0x16f   : > { %v4480_v22 = vadd.f32 %v1590_v50, %v5096_v6  ;;  %v1390_v21 = vadd.f32 %v5098_v5, %v1387_v12  ;;  %v1561_v40 = vmul.f32 %v1238_v38, %v5088_v45  ;;  %v1388_v10 = vmul.f32 %v1239_v28, %v5052_v54  ;;  %v1323_v12 = vpop.permute.xlu1 %1322  ;;  %v1325_v49 = vpop.permute.xlu0 %1324 }
 0x170   : > { %2021 = vrot.lane.b32.xlu0 %v4398_v47, %s4875_s23  ;;  %v1267_v47 = vadd.f32 %v1265_v56, %v1259_v63  ;;  %v4506_v53 = vadd.f32 %v1591_v42, %v5096_v6  ;;  %v1419_v63 = vadd.f32 %v1416_v33, %v5102_v15  ;;  %v1446_v50 = vmul.f32 %v1239_v28, %v5104_v58  ;;  %v5128_v42 = vld [vmem:[#allocation72_spill] sm:$0xff] }
 0x171   : > { %v1475_v6 = vmul.f32 %v1239_v28, %v5109_v20  ;;  %v1504_v18 = vmul.f32 %v1239_v28, %v5114_v29  ;;  %v1533_v54 = vmul.f32 %v1239_v28, %v5119_v62  ;;  %v1314_v56 = vadd.f32 %v1312_v2, %v1306_v19 }
 0x172   : > { %2060 = vrot.lane.b32.xlu1 %v4413_v24, %s4875_s23  ;;  %v1503_v24 = vmul.f32 %v1238_v38, %v5114_v29  ;;  %v1448_v38 = vadd.f32 %v1445_v51, %v5107_v13  ;;  %v1281_v52 = vadd.f32 %v1277_v37, %v1267_v47  ;;  %v1535_v20 = vadd.f32 %v1532_v8, %v5087_v59  ;;  %v5130_v8 = vld [vmem:[#allocation84_spill] sm:$0xff] }
 0x173   : > { %v1286_v29 = vmax.f32 %v1284_v11, 0.0  ;;  %v1391_v62 = vadd.f32 %v5098_v5, %v1388_v10  ;;  %v1562_v37 = vmul.f32 %v1239_v28, %v5088_v45  ;;  %v1313_v4 = vmul.f32 %v2619_v48, %v1311_v43 }
 0x174   : > { %2058 = vrot.lane.b32.xlu0 %v4417_v39, %s4875_s23  ;;  %v1417_v39 = vmul.f32 %v1239_v28, %v5059_v41  ;;  %v1477_v41 = vadd.f32 %v1474_v3, %v5112_v26  ;;  %v1506_v58 = vadd.f32 %v1503_v24, %v5115_v46  ;;  %v1449_v27 = vadd.f32 %v1446_v50, %v5107_v13  ;;  %v2621_v3 = vld [vmem:[%s2837_s25 + $0x52] sm:$0xff] }
 0x175   : > { %v1478_v44 = vadd.f32 %v1475_v6, %v5112_v26  ;;  %v1507_v19 = vadd.f32 %v1504_v18, %v5115_v46  ;;  %v1536_v33 = vadd.f32 %v1533_v54, %v5087_v59  ;;  %v1285_v5 = vadd.f32 %v1283_v61, %v1281_v52  ;;  %v5129_v61 = vld [vmem:[#allocation78_spill] sm:$0xff] }
 0x176   : > { %2097 = vrot.lane.b32.xlu1 %v4436_v25, %s4875_s23  ;;  %v1564_v25 = vadd.f32 %v1561_v40, %v5124_v30  ;;  %v1328_v45 = vadd.f32 %v1323_v12, %v1314_v56  ;;  %v1359_v28 = vstv %s4498_s18  ;;  %v1394_v43 = vmul.f32 %v1393_v23, %v1286_v29 }
 0x177   : > { %v1452_v13 = vmul.f32 %v1286_v29, %v5105_v9  ;;  %v1481_v26 = vmul.f32 %v1286_v29, %v5128_v42  ;;  %v1565_v46 = vadd.f32 %v1562_v37, %v5124_v30  ;;  %v1287_v11 = vmax.f32 %v1285_v5, 0.0 }
 0x178   : > { %2095 = vrot.lane.b32.xlu0 %v4443_v31, %s4875_s23  ;;  %v1420_v31 = vadd.f32 %v1417_v39, %v5102_v15  ;;  %v1423_v15 = vmul.f32 %v1422_v7, %v1286_v29  ;;  %v1515_v47 = vstv %s4512_s8  ;;  %v1315_v59 = vadd.f32 %v1313_v4, %v1307_v1 }
 0x179   : > { %v1510_v17 = vmul.f32 %v1286_v29, %v5129_v61  ;;  %v1360_v2 = vmul.f32 %v2620_v16, %v1359_v28  ;;  %v1379_v51 = vstv %s4520_s24  ;;  %v1361_v24 = vmul.f32 %v2621_v3, %v1359_v28 }
 0x17a   : > { %v1539_v40 = vmul.f32 %v1286_v29, %v5130_v8  ;;  %v1568_v10 = vmul.f32 %v1286_v29, %v5090_v36  ;;  %v1597_v39 = vmul.f32 %v1286_v29, %v5094_v32  ;;  %v1332_v30 = vadd.f32 %v1331_v35, %v1328_v45 }
 0x17b   : > { %v1396_v50 = vadd.f32 %v1394_v43, %v1390_v21  ;;  %v1425_v1 = vadd.f32 %v1423_v15, %v1419_v63  ;;  %v1454_v6 = vadd.f32 %v1452_v13, %v1448_v38  ;;  %v1483_v18 = vadd.f32 %v1481_v26, %v1477_v41  ;;  %v1371_v41 = vpop.permute.xlu1 %1370  ;;  %v5131_v15 = vld [vmem:[#allocation99_spill] sm:$0xff] }
 0x17c   : > { %v1395_v54 = vmul.f32 %v1393_v23, %v1287_v11  ;;  %v1424_v52 = vmul.f32 %v1422_v7, %v1287_v11  ;;  %v1453_v56 = vmul.f32 %v1287_v11, %v5105_v9  ;;  %v1329_v37 = vadd.f32 %v1325_v49, %v1315_v59  ;;  %v1373_v7 = vpop.permute.xlu0 %1372 }
 0x17d   : > { %v1512_v48 = vadd.f32 %v1510_v17, %v1506_v58  ;;  %v1482_v4 = vmul.f32 %v1287_v11, %v5128_v42  ;;  %v1362_v12 = vadd.f32 %v1360_v2, %v4493_v14  ;;  %v1363_v29 = vadd.f32 %v1361_v24, %v4495_v55  ;;  %v5132_v42 = vld [vmem:[#allocation101_spill] sm:$0xff]  ;;  %v5133_v17 = vld [vmem:[#allocation103_spill] sm:$0xff] }
 0x17e   : > { %v1511_v21 = vmul.f32 %v1287_v11, %v5129_v61  ;;  %v1540_v63 = vmul.f32 %v1287_v11, %v5130_v8  ;;  %v1569_v38 = vmul.f32 %v1287_v11, %v5090_v36  ;;  %v1334_v23 = vmax.f32 %v1332_v30, 0.0 }
 0x17f   : > { %v1541_v5 = vadd.f32 %v1539_v40, %v1535_v20  ;;  %v1570_v9 = vadd.f32 %v1568_v10, %v1564_v25  ;;  %v1599_v58 = vadd.f32 %v1597_v39, %v4480_v22  ;;  %v1598_v45 = vmul.f32 %v1287_v11, %v5094_v32 }
 0x180   : > { %v1397_v28 = vadd.f32 %v1395_v54, %v1391_v62  ;;  %v1426_v14 = vadd.f32 %v1424_v52, %v1420_v31  ;;  %v1455_v43 = vadd.f32 %v1453_v56, %v1449_v27  ;;  %v1333_v55 = vadd.f32 %v1331_v35, %v1329_v37  ;;  %v5134_v62 = vld [vmem:[#allocation105_spill] sm:$0xff]  ;;  %v5135_v35 = vld [vmem:[#allocation92_spill] sm:$0xff] }
 0x181   : > { %v1400_v13 = vmul.f32 %v5131_v15, %v1334_v23  ;;  %v1429_v26 = vmul.f32 %v5132_v42, %v1334_v23  ;;  %v1376_v36 = vadd.f32 %v1371_v41, %v1362_v12  ;;  %v1377_v59 = vadd.f32 %v1373_v7, %v1363_v29 }
 0x182   : > { %v1484_v49 = vadd.f32 %v1482_v4, %v1478_v44  ;;  %v1513_v61 = vadd.f32 %v1511_v21, %v1507_v19  ;;  %v1542_v20 = vadd.f32 %v1540_v63, %v1536_v33  ;;  %v1571_v25 = vadd.f32 %v1569_v38, %v1565_v46 }
 0x183   : > { %v1600_v22 = vadd.f32 %v1598_v45, %v4506_v53  ;;  %v1458_v32 = vmul.f32 %v5133_v17, %v1334_v23  ;;  %v1487_v31 = vmul.f32 %v5134_v62, %v1334_v23  ;;  %v1516_v27 = vmul.f32 %v1515_v47, %v1334_v23  ;;  %v5136_v45 = vld [vmem:[#allocation100_spill] sm:$0xff] }
 0x184   : > { %v1545_v11 = vmul.f32 %v1334_v23, %v5135_v35  ;;  %v1574_v16 = vmul.f32 %v1334_v23, %v5123_v60  ;;  %v1603_v2 = vmul.f32 %v1334_v23, %v5095_v0  ;;  %v1335_v3 = vmax.f32 %v1333_v55, 0.0  ;;  %v5137_v55 = vld [vmem:[#allocation102_spill] sm:$0xff] }
 0x185   : > { %v1402_v44 = vadd.f32 %v1400_v13, %v1396_v50  ;;  %v1431_v19 = vadd.f32 %v1429_v26, %v1425_v1  ;;  %v1380_v33 = vadd.f32 %v1379_v51, %v1376_v36  ;;  %v1381_v46 = vadd.f32 %v1379_v51, %v1377_v59 }
 0x186   : > { %v1401_v53 = vmul.f32 %v5131_v15, %v1335_v3  ;;  %v1430_v24 = vmul.f32 %v5132_v42, %v1335_v3  ;;  %v1459_v8 = vmul.f32 %v5133_v17, %v1335_v3  ;;  %v1488_v40 = vmul.f32 %v5134_v62, %v1335_v3 }
 0x187   : > { %v1517_v10 = vmul.f32 %v1515_v47, %v1335_v3  ;;  %v1546_v39 = vmul.f32 %v1335_v3, %v5135_v35  ;;  %v1575_v30 = vmul.f32 %v1335_v3, %v5123_v60  ;;  %v1604_v54 = vmul.f32 %v1335_v3, %v5095_v0 }
 0x188   : > { %v1460_v50 = vadd.f32 %v1458_v32, %v1454_v6  ;;  %v1489_v1 = vadd.f32 %v1487_v31, %v1483_v18  ;;  %v1518_v52 = vadd.f32 %v1516_v27, %v1512_v48  ;;  %v1547_v51 = vadd.f32 %v1545_v11, %v1541_v5  ;;  %v5138_v6 = vld [vmem:[#allocation104_spill] sm:$0xff]  ;;  %v5139_v48 = vld [vmem:[#allocation106_spill] sm:$0xff] }
 0x189   : > { %v1576_v56 = vadd.f32 %v1574_v16, %v1570_v9  ;;  %v1605_v37 = vadd.f32 %v1603_v2, %v1599_v58  ;;  %v1403_v4 = vadd.f32 %v1401_v53, %v1397_v28  ;;  %v1432_v12 = vadd.f32 %v1430_v24, %v1426_v14  ;;  %v5140_v9 = vld [vmem:[#allocation107_spill] sm:$0xff]  ;;  %v5141_v28 = vld [vmem:[#allocation108_spill] sm:$0xff] }
 0x18a   : > { %v1461_v29 = vadd.f32 %v1459_v8, %v1455_v43  ;;  %v1490_v21 = vadd.f32 %v1488_v40, %v1484_v49  ;;  %v1519_v63 = vadd.f32 %v1517_v10, %v1513_v61  ;;  %v1382_v38 = vmax.f32 %v1380_v33, 0.0 }
 0x18b   : > { %v1548_v23 = vadd.f32 %v1546_v39, %v1542_v20  ;;  %v1577_v47 = vadd.f32 %v1575_v30, %v1571_v25  ;;  %v1606_v41 = vadd.f32 %v1604_v54, %v1600_v22  ;;  %v1383_v7 = vmax.f32 %v1381_v46, 0.0 }
 0x18c   : > { %v1406_v60 = vmul.f32 %v5136_v45, %v1382_v38  ;;  %v1435_v0 = vmul.f32 %v5137_v55, %v1382_v38  ;;  %v1464_v18 = vmul.f32 %v5138_v6, %v1382_v38  ;;  %v1493_v5 = vmul.f32 %v5139_v48, %v1382_v38 }
 0x18d   : > { %v1522_v58 = vmul.f32 %v5140_v9, %v1382_v38  ;;  %v1551_v14 = vmul.f32 %v5141_v28, %v1382_v38  ;;  %v1580_v43 = vmul.f32 %v5125_v57, %v1382_v38  ;;  %v1609_v15 = vmul.f32 %v1382_v38, %v5097_v34 }
 0x18e   : > { %v1408_v13 = vadd.f32 %v1406_v60, %v1402_v44  ;;  %v1437_v42 = vadd.f32 %v1435_v0, %v1431_v19  ;;  %v1466_v26 = vadd.f32 %v1464_v18, %v1460_v50  ;;  %v1495_v36 = vadd.f32 %v1493_v5, %v1489_v1 }
 0x18f   : > { %v1524_v59 = vadd.f32 %v1522_v58, %v1518_v52  ;;  %v1553_v49 = vadd.f32 %v1551_v14, %v1547_v51  ;;  %v1582_v61 = vadd.f32 %v1580_v43, %v1576_v56  ;;  %v1611_v20 = vadd.f32 %v1609_v15, %v1605_v37 }
 0x190   : > { %2417 = vst.msk [vmem:[%s3899_s16 + $0x100] sm:$0xff] %vm498_vm0, %v1408_v13  ;;  %2424 = vst.msk [vmem:[%s3899_s16 + $0x110] sm:$0xff] %vm498_vm0, %v1437_v42  ;;  %v1407_v25 = vmul.f32 %v5136_v45, %v1383_v7  ;;  %v1436_v22 = vmul.f32 %v5137_v55, %v1383_v7  ;;  %v1465_v17 = vmul.f32 %v5138_v6, %v1383_v7 }
 0x191   : > { %2431 = vst.msk [vmem:[%s3899_s16 + $0x120] sm:$0xff] %vm498_vm0, %v1466_v26  ;;  %2438 = vst.msk [vmem:[%s3899_s16 + $0x130] sm:$0xff] %vm498_vm0, %v1495_v36  ;;  %v1494_v32 = vmul.f32 %v5139_v48, %v1383_v7  ;;  %v1523_v62 = vmul.f32 %v5140_v9, %v1383_v7  ;;  %v1552_v31 = vmul.f32 %v5141_v28, %v1383_v7 }
 0x192   : > { %2445 = vst.msk [vmem:[%s3899_s16 + $0x140] sm:$0xff] %vm498_vm0, %v1524_v59  ;;  %2452 = vst.msk [vmem:[%s3899_s16 + $0x150] sm:$0xff] %vm498_vm0, %v1553_v49  ;;  %v1581_v27 = vmul.f32 %v5125_v57, %v1383_v7  ;;  %v1610_v35 = vmul.f32 %v1383_v7, %v5097_v34  ;;  %v1409_v11 = vadd.f32 %v1407_v25, %v1403_v4 }
 0x193   : > { %2459 = vst.msk [vmem:[%s3899_s16 + $0x160] sm:$0xff] %vm498_vm0, %v1582_v61  ;;  %2466 = vst.msk [vmem:[%s3899_s16 + $0x170] sm:$0xff] %vm498_vm0, %v1611_v20  ;;  %v1438_v16 = vadd.f32 %v1436_v22, %v1432_v12  ;;  %v1467_v2 = vadd.f32 %v1465_v17, %v1461_v29  ;;  %v1496_v3 = vadd.f32 %v1494_v32, %v1490_v21 }
 0x194   : > { %v1525_v44 = vadd.f32 %v1523_v62, %v1519_v63  ;;  %v1554_v19 = vadd.f32 %v1552_v31, %v1548_v23  ;;  %v1583_v33 = vadd.f32 %v1581_v27, %v1577_v47  ;;  %v1612_v46 = vadd.f32 %v1610_v35, %v1606_v41  ;;  %2418 = vst.msk [vmem:[%s3899_s16 + $0x108] sm:$0xff] %vm498_vm0, %v1409_v11 }
 0x195   : > { %2425 = vst.msk [vmem:[%s3899_s16 + $0x118] sm:$0xff] %vm498_vm0, %v1438_v16  ;;  %2432 = vst.msk [vmem:[%s3899_s16 + $0x128] sm:$0xff] %vm498_vm0, %v1467_v2 }
 0x196   : > { %2439 = vst.msk [vmem:[%s3899_s16 + $0x138] sm:$0xff] %vm498_vm0, %v1496_v3  ;;  %2446 = vst.msk [vmem:[%s3899_s16 + $0x148] sm:$0xff] %vm498_vm0, %v1525_v44 }
 0x197   : > { %2453 = vst.msk [vmem:[%s3899_s16 + $0x158] sm:$0xff] %vm498_vm0, %v1554_v19  ;;  %2460 = vst.msk [vmem:[%s3899_s16 + $0x168] sm:$0xff] %vm498_vm0, %v1583_v33 }
 0x198   : > { %2467 = vst.msk [vmem:[%s3899_s16 + $0x178] sm:$0xff] %vm498_vm0, %v1612_v46 }
 0x1ac   : > { %v927_v34 = vpop.permute.xlu1 %926 }
 0x1ad   : > { %2333 = vst.msk [vmem:[%s3899_s16 + $0x88] sm:$0xff] %vm498_vm0, %v927_v34 }
 0x1ae   : > { %v925_v57 = vpop.permute.xlu0 %924 }
 0x1af   : > { %2332 = vst.msk [vmem:[%s3899_s16 + $0x80] sm:$0xff] %vm498_vm0, %v925_v57 }
 0x1b0   : > { %v964_v53 = vpop.permute.xlu1 %963 }
 0x1b1   : > { %2340 = vst.msk [vmem:[%s3899_s16 + $0x98] sm:$0xff] %vm498_vm0, %v964_v53 }
 0x1b2   : > { %v962_v24 = vpop.permute.xlu0 %961 }
 0x1b3   : > { %2339 = vst.msk [vmem:[%s3899_s16 + $0x90] sm:$0xff] %vm498_vm0, %v962_v24 }
 0x1b4   : > { %v1001_v8 = vpop.permute.xlu1 %1000 }
 0x1b5   : > { %2347 = vst.msk [vmem:[%s3899_s16 + $0xa8] sm:$0xff] %vm498_vm0, %v1001_v8 }
 0x1b6   : > { %v999_v40 = vpop.permute.xlu0 %998 }
 0x1b7   : > { %2346 = vst.msk [vmem:[%s3899_s16 + $0xa0] sm:$0xff] %vm498_vm0, %v999_v40 }
 0x1b8   : > { %v1038_v10 = vpop.permute.xlu1 %1037 }
 0x1b9   : > { %2354 = vst.msk [vmem:[%s3899_s16 + $0xb8] sm:$0xff] %vm498_vm0, %v1038_v10 }
 0x1ba   : > { %v1036_v39 = vpop.permute.xlu0 %1035 }
 0x1bb   : > { %2353 = vst.msk [vmem:[%s3899_s16 + $0xb0] sm:$0xff] %vm498_vm0, %v1036_v39 }
 0x1bc   : > { %v1075_v30 = vpop.permute.xlu1 %1074 }
 0x1bd   : > { %2361 = vst.msk [vmem:[%s3899_s16 + $0xc8] sm:$0xff] %vm498_vm0, %v1075_v30 }
 0x1be   : > { %v1073_v54 = vpop.permute.xlu0 %1072 }
 0x1bf   : > { %2360 = vst.msk [vmem:[%s3899_s16 + $0xc0] sm:$0xff] %vm498_vm0, %v1073_v54 }
 0x1c0   : > { %v1112_v50 = vpop.permute.xlu1 %1111 }
 0x1c1   : > { %2368 = vst.msk [vmem:[%s3899_s16 + $0xd8] sm:$0xff] %vm498_vm0, %v1112_v50 }
 0x1c2   : > { %v1110_v1 = vpop.permute.xlu0 %1109 }
 0x1c3   : > { %2367 = vst.msk [vmem:[%s3899_s16 + $0xd0] sm:$0xff] %vm498_vm0, %v1110_v1 }
 0x1c4   : > { %v1149_v52 = vpop.permute.xlu1 %1148 }
 0x1c5   : > { %2375 = vst.msk [vmem:[%s3899_s16 + $0xe8] sm:$0xff] %vm498_vm0, %v1149_v52 }
 0x1c6   : > { %v1147_v51 = vpop.permute.xlu0 %1146 }
 0x1c7   : > { %2374 = vst.msk [vmem:[%s3899_s16 + $0xe0] sm:$0xff] %vm498_vm0, %v1147_v51 }
 0x1c8   : > { %v1186_v56 = vpop.permute.xlu1 %1185 }
 0x1c9   : > { %2382 = vst.msk [vmem:[%s3899_s16 + $0xf8] sm:$0xff] %vm498_vm0, %v1186_v56 }
 0x1ca   : > { %v1184_v37 = vpop.permute.xlu0 %1183 }
 0x1cb   : > { %2381 = vst.msk [vmem:[%s3899_s16 + $0xf0] sm:$0xff] %vm498_vm0, %v1184_v37 }
 0x1cc   : > { %v1839_v4 = vpop.permute.xlu1 %1838 }
 0x1cd   : > { %2503 = vst.msk [vmem:[%s3899_s16 + $0x188] sm:$0xff] %vm498_vm0, %v1839_v4 }
 0x1ce   : > { %v1837_v12 = vpop.permute.xlu0 %1836 }
 0x1cf   : > { %2502 = vst.msk [vmem:[%s3899_s16 + $0x180] sm:$0xff] %vm498_vm0, %v1837_v12 }
 0x1d0   : > { %v1876_v29 = vpop.permute.xlu1 %1875 }
 0x1d1   : > { %2510 = vst.msk [vmem:[%s3899_s16 + $0x198] sm:$0xff] %vm498_vm0, %v1876_v29 }
 0x1d2   : > { %v1874_v21 = vpop.permute.xlu0 %1873 }
 0x1d3   : > { %2509 = vst.msk [vmem:[%s3899_s16 + $0x190] sm:$0xff] %vm498_vm0, %v1874_v21 }
 0x1d4   : > { %v1913_v63 = vpop.permute.xlu1 %1912 }
 0x1d5   : > { %2517 = vst.msk [vmem:[%s3899_s16 + $0x1a8] sm:$0xff] %vm498_vm0, %v1913_v63 }
 0x1d6   : > { %v1911_v38 = vpop.permute.xlu0 %1910 }
 0x1d7   : > { %2516 = vst.msk [vmem:[%s3899_s16 + $0x1a0] sm:$0xff] %vm498_vm0, %v1911_v38 }
 0x1d8   : > { %v1950_v23 = vpop.permute.xlu1 %1949 }
 0x1d9   : > { %2524 = vst.msk [vmem:[%s3899_s16 + $0x1b8] sm:$0xff] %vm498_vm0, %v1950_v23 }
 0x1da   : > { %v1948_v47 = vpop.permute.xlu0 %1947 }
 0x1db   : > { %2523 = vst.msk [vmem:[%s3899_s16 + $0x1b0] sm:$0xff] %vm498_vm0, %v1948_v47 }
 0x1dc   : > { %v1987_v41 = vpop.permute.xlu1 %1986 }
 0x1dd   : > { %2531 = vst.msk [vmem:[%s3899_s16 + $0x1c8] sm:$0xff] %vm498_vm0, %v1987_v41 }
 0x1de   : > { %v1985_v7 = vpop.permute.xlu0 %1984 }
 0x1df   : > { %2530 = vst.msk [vmem:[%s3899_s16 + $0x1c0] sm:$0xff] %vm498_vm0, %v1985_v7 }
 0x1e0   : > { %v2024_v45 = vpop.permute.xlu1 %2023 }
 0x1e1   : > { %2538 = vst.msk [vmem:[%s3899_s16 + $0x1d8] sm:$0xff] %vm498_vm0, %v2024_v45 }
 0x1e2   : > { %v2022_v60 = vpop.permute.xlu0 %2021 }
 0x1e3   : > { %2537 = vst.msk [vmem:[%s3899_s16 + $0x1d0] sm:$0xff] %vm498_vm0, %v2022_v60 }
 0x1e4   : > { %v2061_v55 = vpop.permute.xlu1 %2060 }
 0x1e5   : > { %2545 = vst.msk [vmem:[%s3899_s16 + $0x1e8] sm:$0xff] %vm498_vm0, %v2061_v55 }
 0x1e6   : > { %v2059_v0 = vpop.permute.xlu0 %2058 }
 0x1e7   : > { %2544 = vst.msk [vmem:[%s3899_s16 + $0x1e0] sm:$0xff] %vm498_vm0, %v2059_v0 }
 0x1e8   : > { %v2098_v6 = vpop.permute.xlu1 %2097 }
 0x1e9   : > { %2552 = vst.msk [vmem:[%s3899_s16 + $0x1f8] sm:$0xff] %vm498_vm0, %v2098_v6 }
 0x1ea   : > { %v2096_v18 = vpop.permute.xlu0 %2095 }
 0x1eb   : > { %2551 = vst.msk [vmem:[%s3899_s16 + $0x1f0] sm:$0xff] %vm498_vm0, %v2096_v18 }
 0x1ec PF: > { %s5142_s25 = sld [smem:[#allocation12_spill]] }
 0x1f2   : > { %s18_s18 = sadd.s32 1, %s5142_s25  }
 0x1f3   : > { %p15_p2 = scmp.ge.s32.totalorder %s18_s18, 4  }
 0x1f5   :  { %17 = sbr.rel (!%p15_p2) target bundleno = 10 (0xa), region = 121 }
 0x1fc   :  { %2125 = vsyncpa [#allocation3], 1 }
 0x1fd   :  { %2127 = vsyncpa [#allocation3 + $0x1], 1 }
 0x1fe   :  { %2128 = vsyncpa [#allocation5], 1 }
 0x1ff   :  { %2129 = vsyncpa [#allocation8], 1 }

</bundles_post_ra>
